<compile_context>
chip_gen: v6e
topology: v6e:2x2x1
jax: 0.10.0
libtpu: 0.0.40
codegen_flags: <defaults>
</compile_context>

<pallas_src>
import math
import functools

import jax
import jax.numpy as jnp
from jax.experimental import pallas as pl
from jax.experimental.pallas import tpu as pltpu


# ----------------------------- Pallas kernel ---------------------------------
def _encoder_layer_kernel(
    # activations / mask (one batch element per grid step, batch dim squeezed)
    x_ref, mask_ref,
    # self-attention params (fused qkv weight/bias, output proj)
    wqkv_ref, bqkv_ref, wo_ref, bo_ref,
    # feed-forward params
    w1_ref, b1_ref, w2_ref, b2_ref,
    # output
    out_ref,
    # VMEM scratch: per-head Q/K/V, merged attention context
    q_scr, k_scr, v_scr, ctx_scr,
    *, h: int, eps: float = 1e-6,
):
    f32, bf16 = jnp.float32, jnp.bfloat16

    x = x_ref[...].astype(f32)                 # (S, D)
    S, D = x.shape
    dk = D // h
    inv_sqrt_dk = 1.0 / math.sqrt(dk)

    def layer_norm(z):
        # torch .std() default is UNBIASED (divide by N-1); alpha=1, bias=0.
        mean = jnp.mean(z, axis=-1, keepdims=True)
        var = jnp.sum((z - mean) ** 2, axis=-1, keepdims=True) * (1.0 / (D - 1))
        inv_std = 1.0 / (jnp.sqrt(var) + eps)   # (S,1): divide once per row, broadcast-mul
        return (z - mean) * inv_std

    # ---- fused QKV projection: one (S,D)x(D,3D) MXU matmul (bf16 in, f32 acc) ----
    x_bf = x.astype(bf16)
    qkv = jnp.dot(x_bf, wqkv_ref[...], preferred_element_type=f32) + bqkv_ref[...]  # (S, 3D)

    # ---- head split -> (h, S, dk) scratch; dk % 128 == 0 so lane slices are tile-aligned ----
    for i in range(h):
        q_scr[i] = (qkv[:, i * dk:(i + 1) * dk] * inv_sqrt_dk).astype(bf16)
        k_scr[i] = qkv[:, D + i * dk:D + (i + 1) * dk].astype(bf16)
        v_scr[i] = qkv[:, 2 * D + i * dk:2 * D + (i + 1) * dk].astype(bf16)

    qh = q_scr[...]                            # (h, S, dk) bf16
    kh = k_scr[...]
    vh = v_scr[...]

    # additive mask bias, computed once and shared across all heads
    mask_bias = jnp.where(mask_ref[...] == 0.0, -1e9, 0.0)     # (S, S) f32

    # ---- attention core: batched over heads on the MXU ----
    scores = jnp.einsum("hqd,hkd->hqk", qh, kh, preferred_element_type=f32)
    scores = scores + mask_bias[None, :, :]
    m = jnp.max(scores, axis=-1, keepdims=True)
    e = jnp.exp(scores - m)
    p = e * pl.reciprocal(jnp.sum(e, axis=-1, keepdims=True), approx=True)
    ctx = jnp.einsum("hqk,hkd->hqd", p.astype(bf16), vh, preferred_element_type=f32)

    # merge heads back into an (S, D) bf16 VMEM scratch (no lane concatenate)
    for i in range(h):
        ctx_scr[:, i * dk:(i + 1) * dk] = ctx[i].astype(bf16)

    sa = jnp.dot(ctx_scr[...], wo_ref[...], preferred_element_type=f32) + bo_ref[...]
    x1 = layer_norm(x + sa)

    # ---- feed-forward: relu(x1 @ W1 + b1) @ W2 + b2 ----
    hdn = jnp.maximum(
        jnp.dot(x1.astype(bf16), w1_ref[...], preferred_element_type=f32) + b1_ref[...], 0.0)
    ff = jnp.dot(hdn.astype(bf16), w2_ref[...], preferred_element_type=f32) + b2_ref[...]
    x2 = layer_norm(x1 + ff)

    out_ref[...] = x2.astype(out_ref.dtype)    # (S, D) lane-dense full-tile store


# ------------------------------ wrapper ---------------------------------------
def encoder_layer(x, mask, params, h):
    B, S, D = x.shape
    assert D % h == 0, "d_model must be divisible by h"
    dk = D // h
    # dk chosen as a multiple of 128 so head split/merge is tile-aligned (see kernel).
    assert dk % 128 == 0 and S % 8 == 0, "use lane/sublane-aligned shapes for this kernel"

    bf16 = jnp.bfloat16
    # Fuse QKV weights/biases into one operand (done once at trace time, outside the kernel).
    wqkv = jnp.concatenate([params["wq"], params["wk"], params["wv"]], axis=1).astype(bf16)
    bqkv = jnp.concatenate([params["bq"], params["bk"], params["bv"]], axis=1)
    ordered = [
        wqkv, bqkv,
        params["wo"].astype(bf16), params["bo"],
        params["w1"].astype(bf16), params["b1"],
        params["w2"].astype(bf16), params["b2"],
    ]

    in_specs = [
        pl.BlockSpec((None, S, D), lambda b: (b, 0, 0)),   # x  (batch dim squeezed)
        pl.BlockSpec((None, S, S), lambda b: (b, 0, 0)),   # mask
    ]
    for p in ordered:
        in_specs.append(pl.BlockSpec(p.shape, lambda b: (0, 0)))

    scratch_shapes = [
        pltpu.VMEM((h, S, dk), bf16),          # q heads
        pltpu.VMEM((h, S, dk), bf16),          # k heads
        pltpu.VMEM((h, S, dk), bf16),          # v heads
        pltpu.VMEM((S, D), bf16),              # merged attention context
    ]

    kernel = functools.partial(_encoder_layer_kernel, h=h)
    return pl.pallas_call(
        kernel,
        out_shape=jax.ShapeDtypeStruct((B, S, D), x.dtype),
        grid_spec=pltpu.PrefetchScalarGridSpec(
            num_scalar_prefetch=0,
            grid=(B,),
            in_specs=in_specs,
            out_specs=pl.BlockSpec((None, S, D), lambda b: (b, 0, 0)),
            scratch_shapes=scratch_shapes,
        ),
        compiler_params=pltpu.CompilerParams(
            dimension_semantics=("parallel",),
            vmem_limit_bytes=32 * 1024 * 1024,
        ),
    )(x, mask, *ordered)


# ---------------------------- pure-JAX reference -------------------------------
def encoder_layer_ref(x, mask, p, h):
    B, S, D = x.shape
    dk = D // h
    eps = 1e-6

    def add_and_norm(a, b):
        z = a + b
        mean = z.mean(-1, keepdims=True)
        std = z.std(-1, ddof=1, keepdims=True)
        return (z - mean) / (std + eps)

    def mha(xx):
        q = (xx @ p["wq"] + p["bq"]).reshape(B, S, h, dk).transpose(0, 2, 1, 3)
        k = (xx @ p["wk"] + p["bk"]).reshape(B, S, h, dk).transpose(0, 2, 1, 3)
        v = (xx @ p["wv"] + p["bv"]).reshape(B, S, h, dk).transpose(0, 2, 1, 3)
        scores = q @ k.transpose(0, 1, 3, 2) / math.sqrt(dk)
        scores = jnp.where(mask[:, None, :, :] == 0.0, -1e9, scores)
        attn = jax.nn.softmax(scores, axis=-1) @ v
        attn = attn.transpose(0, 2, 1, 3).reshape(B, S, D)
        return attn @ p["wo"] + p["bo"]

    x1 = add_and_norm(x, mha(x))
    ff = jnp.maximum(x1 @ p["w1"] + p["b1"], 0.0) @ p["w2"] + p["b2"]
    return add_and_norm(x1, ff)


# --------------------------------- main ----------------------------------------
if __name__ == "__main__":
    # TPU-friendly small shapes: lane-dense d_model/d_ff (multiples of 128), dk = 128.
    B, S = 2, 128
    d_model, h, d_ff = 256, 2, 512

    key = jax.random.PRNGKey(0)
    keys = jax.random.split(key, 10)

    def lin(k, n_in, n_out):
        kw, kb = jax.random.split(k)
        w = jax.random.normal(kw, (n_in, n_out), jnp.float32) * 0.02
        b = jax.random.normal(kb, (1, n_out), jnp.float32) * 0.01
        return w, b

    params = {}
    params["wq"], params["bq"] = lin(keys[0], d_model, d_model)
    params["wk"], params["bk"] = lin(keys[1], d_model, d_model)
    params["wv"], params["bv"] = lin(keys[2], d_model, d_model)
    params["wo"], params["bo"] = lin(keys[3], d_model, d_model)
    params["w1"], params["b1"] = lin(keys[4], d_model, d_ff)
    params["w2"], params["b2"] = lin(keys[5], d_ff, d_model)

    x = jax.random.normal(keys[6], (B, S, d_model), jnp.float32)

    # Per-batch padding mask over keys (float, 0 == masked-out), broadcast to (B, S, S).
    valid_len = jnp.array([S, S - 16], dtype=jnp.int32)
    key_ids = jnp.arange(S)[None, None, :]
    mask = (key_ids < valid_len[:, None, None]).astype(jnp.float32)   # (B, 1, S)
    mask = jnp.broadcast_to(mask, (B, S, S)) * jnp.ones((B, S, S), jnp.float32)

    out = encoder_layer(x, mask, params, h)
    out = jax.block_until_ready(out)

    ref = encoder_layer_ref(x, mask, params, h)
    assert out.shape == (B, S, d_model)
    err = float(jnp.max(jnp.abs(out - ref)))
    # Tolerance accounts for bf16 MXU operands + approx softmax reciprocal (f32 reference).
    assert err < 2e-2, f"mismatch vs reference: max abs err = {err}"
    print("KERNEL_OK")
</pallas_src>

<mosaic_0001>
module attributes {stable_mosaic.version = 11 : i64} {
  func.func @_encoder_layer_kernel(%arg0: i32, %arg1: memref<1x128x256xf32, #tpu.memory_space<vmem>>, %arg2: memref<1x128x128xf32, #tpu.memory_space<vmem>>, %arg3: memref<256x768xbf16, #tpu.memory_space<vmem>>, %arg4: memref<1x768xf32, #tpu.memory_space<vmem>>, %arg5: memref<256x256xbf16, #tpu.memory_space<vmem>>, %arg6: memref<1x256xf32, #tpu.memory_space<vmem>>, %arg7: memref<256x512xbf16, #tpu.memory_space<vmem>>, %arg8: memref<1x512xf32, #tpu.memory_space<vmem>>, %arg9: memref<512x256xbf16, #tpu.memory_space<vmem>>, %arg10: memref<1x256xf32, #tpu.memory_space<vmem>>, %arg11: memref<1x128x256xf32, #tpu.memory_space<vmem>>, %arg12: memref<2x128x128xbf16, #tpu.memory_space<vmem>>, %arg13: memref<2x128x128xbf16, #tpu.memory_space<vmem>>, %arg14: memref<2x128x128xbf16, #tpu.memory_space<vmem>>, %arg15: memref<128x256xbf16, #tpu.memory_space<vmem>>) attributes {dimension_semantics = [#tpu.dimension_semantics<parallel>], iteration_bounds = array<i64: 2>, scalar_prefetch = 0 : i64, scratch_operands = 4 : i64, tpu.core_type = #tpu.core_type<tc>, window_params = [{transform_indices = @transform_0, window_bounds = array<i64: 1, 128, 256>}, {transform_indices = @transform_1, window_bounds = array<i64: 1, 128, 128>}, {pipeline_mode = #tpu.pipeline_mode<synchronous>, transform_indices = @transform_2, window_bounds = array<i64: 256, 768>}, {pipeline_mode = #tpu.pipeline_mode<synchronous>, transform_indices = @transform_3, window_bounds = array<i64: 1, 768>}, {pipeline_mode = #tpu.pipeline_mode<synchronous>, transform_indices = @transform_4, window_bounds = array<i64: 256, 256>}, {pipeline_mode = #tpu.pipeline_mode<synchronous>, transform_indices = @transform_5, window_bounds = array<i64: 1, 256>}, {pipeline_mode = #tpu.pipeline_mode<synchronous>, transform_indices = @transform_6, window_bounds = array<i64: 256, 512>}, {pipeline_mode = #tpu.pipeline_mode<synchronous>, transform_indices = @transform_7, window_bounds = array<i64: 1, 512>}, {pipeline_mode = #tpu.pipeline_mode<synchronous>, transform_indices = @transform_8, window_bounds = array<i64: 512, 256>}, {pipeline_mode = #tpu.pipeline_mode<synchronous>, transform_indices = @transform_9, window_bounds = array<i64: 1, 256>}, {transform_indices = @transform_10, window_bounds = array<i64: 1, 128, 256>}]} {
    %c0 = arith.constant 0 : index
    %c0_0 = arith.constant 0 : index
    %c0_1 = arith.constant 0 : index
    %0 = vector.load %arg1[%c0, %c0_0, %c0_1] : memref<1x128x256xf32, #tpu.memory_space<vmem>>, vector<1x128x256xf32>
    %1 = vector.shape_cast %0 : vector<1x128x256xf32> to vector<128x256xf32>
    %2 = arith.truncf %1 : vector<128x256xf32> to vector<128x256xbf16>
    %c0_2 = arith.constant 0 : index
    %c0_3 = arith.constant 0 : index
    %3 = vector.load %arg3[%c0_2, %c0_3] : memref<256x768xbf16, #tpu.memory_space<vmem>>, vector<256x768xbf16>
    %cst = arith.constant dense<0.000000e+00> : vector<128x768xf32>
    %4 = tpu.matmul %2, %3, %cst {dimension_numbers = #tpu.dot_dimension_numbers<[1], [0], [0], [1], [0, 0, 1, 1], [], []>} : vector<128x256xbf16>, vector<256x768xbf16>, vector<128x768xf32> -> vector<128x768xf32>
    %c0_4 = arith.constant 0 : index
    %c0_5 = arith.constant 0 : index
    %5 = vector.load %arg4[%c0_4, %c0_5] : memref<1x768xf32, #tpu.memory_space<vmem>>, vector<1x768xf32>
    %6 = vector.broadcast %5 : vector<1x768xf32> to vector<128x768xf32>
    %7 = arith.addf %4, %6 : vector<128x768xf32>
    %8 = vector.extract_strided_slice %7 {offsets = [0, 0], sizes = [128, 128], strides = [1, 1]} : vector<128x768xf32> to vector<128x128xf32>
    %cst_6 = arith.constant 0.0883883461 : f32
    %9 = vector.broadcast %cst_6 : f32 to vector<128x128xf32>
    %10 = arith.mulf %8, %9 : vector<128x128xf32>
    %11 = arith.truncf %10 : vector<128x128xf32> to vector<128x128xbf16>
    %c0_7 = arith.constant 0 : index
    %c0_8 = arith.constant 0 : index
    %c0_9 = arith.constant 0 : index
    %12 = vector.load %arg12[%c0_7, %c0_8, %c0_9] : memref<2x128x128xbf16, #tpu.memory_space<vmem>>, vector<1x128x128xbf16>
    %13 = vector.shape_cast %12 : vector<1x128x128xbf16> to vector<128x128xbf16>
    %14 = vector.shape_cast %11 : vector<128x128xbf16> to vector<1x128x128xbf16>
    tpu.vector_store %arg12[%c0_7, %c0_8, %c0_9], %14 {strides = array<i32>} : memref<2x128x128xbf16, #tpu.memory_space<vmem>>, vector<1x128x128xbf16>,
    %15 = vector.extract_strided_slice %7 {offsets = [0, 256], sizes = [128, 128], strides = [1, 1]} : vector<128x768xf32> to vector<128x128xf32>
    %16 = arith.truncf %15 : vector<128x128xf32> to vector<128x128xbf16>
    %c0_10 = arith.constant 0 : index
    %c0_11 = arith.constant 0 : index
    %c0_12 = arith.constant 0 : index
    %17 = vector.load %arg13[%c0_10, %c0_11, %c0_12] : memref<2x128x128xbf16, #tpu.memory_space<vmem>>, vector<1x128x128xbf16>
    %18 = vector.shape_cast %17 : vector<1x128x128xbf16> to vector<128x128xbf16>
    %19 = vector.shape_cast %16 : vector<128x128xbf16> to vector<1x128x128xbf16>
    tpu.vector_store %arg13[%c0_10, %c0_11, %c0_12], %19 {strides = array<i32>} : memref<2x128x128xbf16, #tpu.memory_space<vmem>>, vector<1x128x128xbf16>,
    %20 = vector.extract_strided_slice %7 {offsets = [0, 512], sizes = [128, 128], strides = [1, 1]} : vector<128x768xf32> to vector<128x128xf32>
    %21 = arith.truncf %20 : vector<128x128xf32> to vector<128x128xbf16>
    %c0_13 = arith.constant 0 : index
    %c0_14 = arith.constant 0 : index
    %c0_15 = arith.constant 0 : index
    %22 = vector.load %arg14[%c0_13, %c0_14, %c0_15] : memref<2x128x128xbf16, #tpu.memory_space<vmem>>, vector<1x128x128xbf16>
    %23 = vector.shape_cast %22 : vector<1x128x128xbf16> to vector<128x128xbf16>
    %24 = vector.shape_cast %21 : vector<128x128xbf16> to vector<1x128x128xbf16>
    tpu.vector_store %arg14[%c0_13, %c0_14, %c0_15], %24 {strides = array<i32>} : memref<2x128x128xbf16, #tpu.memory_space<vmem>>, vector<1x128x128xbf16>,
    %25 = vector.extract_strided_slice %7 {offsets = [0, 128], sizes = [128, 128], strides = [1, 1]} : vector<128x768xf32> to vector<128x128xf32>
    %cst_16 = arith.constant 0.0883883461 : f32
    %26 = vector.broadcast %cst_16 : f32 to vector<128x128xf32>
    %27 = arith.mulf %25, %26 : vector<128x128xf32>
    %28 = arith.truncf %27 : vector<128x128xf32> to vector<128x128xbf16>
    %c1 = arith.constant 1 : index
    %c0_17 = arith.constant 0 : index
    %c0_18 = arith.constant 0 : index
    %29 = vector.load %arg12[%c1, %c0_17, %c0_18] : memref<2x128x128xbf16, #tpu.memory_space<vmem>>, vector<1x128x128xbf16>
    %30 = vector.shape_cast %29 : vector<1x128x128xbf16> to vector<128x128xbf16>
    %31 = vector.shape_cast %28 : vector<128x128xbf16> to vector<1x128x128xbf16>
    tpu.vector_store %arg12[%c1, %c0_17, %c0_18], %31 {strides = array<i32>} : memref<2x128x128xbf16, #tpu.memory_space<vmem>>, vector<1x128x128xbf16>,
    %32 = vector.extract_strided_slice %7 {offsets = [0, 384], sizes = [128, 128], strides = [1, 1]} : vector<128x768xf32> to vector<128x128xf32>
    %33 = arith.truncf %32 : vector<128x128xf32> to vector<128x128xbf16>
    %c1_19 = arith.constant 1 : index
    %c0_20 = arith.constant 0 : index
    %c0_21 = arith.constant 0 : index
    %34 = vector.load %arg13[%c1_19, %c0_20, %c0_21] : memref<2x128x128xbf16, #tpu.memory_space<vmem>>, vector<1x128x128xbf16>
    %35 = vector.shape_cast %34 : vector<1x128x128xbf16> to vector<128x128xbf16>
    %36 = vector.shape_cast %33 : vector<128x128xbf16> to vector<1x128x128xbf16>
    tpu.vector_store %arg13[%c1_19, %c0_20, %c0_21], %36 {strides = array<i32>} : memref<2x128x128xbf16, #tpu.memory_space<vmem>>, vector<1x128x128xbf16>,
    %37 = vector.extract_strided_slice %7 {offsets = [0, 640], sizes = [128, 128], strides = [1, 1]} : vector<128x768xf32> to vector<128x128xf32>
    %38 = arith.truncf %37 : vector<128x128xf32> to vector<128x128xbf16>
    %c1_22 = arith.constant 1 : index
    %c0_23 = arith.constant 0 : index
    %c0_24 = arith.constant 0 : index
    %39 = vector.load %arg14[%c1_22, %c0_23, %c0_24] : memref<2x128x128xbf16, #tpu.memory_space<vmem>>, vector<1x128x128xbf16>
    %40 = vector.shape_cast %39 : vector<1x128x128xbf16> to vector<128x128xbf16>
    %41 = vector.shape_cast %38 : vector<128x128xbf16> to vector<1x128x128xbf16>
    tpu.vector_store %arg14[%c1_22, %c0_23, %c0_24], %41 {strides = array<i32>} : memref<2x128x128xbf16, #tpu.memory_space<vmem>>, vector<1x128x128xbf16>,
    %c0_25 = arith.constant 0 : index
    %c0_26 = arith.constant 0 : index
    %c0_27 = arith.constant 0 : index
    %42 = vector.load %arg12[%c0_25, %c0_26, %c0_27] : memref<2x128x128xbf16, #tpu.memory_space<vmem>>, vector<2x128x128xbf16>
    %c0_28 = arith.constant 0 : index
    %c0_29 = arith.constant 0 : index
    %c0_30 = arith.constant 0 : index
    %43 = vector.load %arg13[%c0_28, %c0_29, %c0_30] : memref<2x128x128xbf16, #tpu.memory_space<vmem>>, vector<2x128x128xbf16>
    %c0_31 = arith.constant 0 : index
    %c0_32 = arith.constant 0 : index
    %c0_33 = arith.constant 0 : index
    %44 = vector.load %arg14[%c0_31, %c0_32, %c0_33] : memref<2x128x128xbf16, #tpu.memory_space<vmem>>, vector<2x128x128xbf16>
    %c0_34 = arith.constant 0 : index
    %c0_35 = arith.constant 0 : index
    %c0_36 = arith.constant 0 : index
    %45 = vector.load %arg2[%c0_34, %c0_35, %c0_36] : memref<1x128x128xf32, #tpu.memory_space<vmem>>, vector<1x128x128xf32>
    %46 = vector.shape_cast %45 : vector<1x128x128xf32> to vector<128x128xf32>
    %cst_37 = arith.constant 0.000000e+00 : f32
    %47 = vector.broadcast %cst_37 : f32 to vector<128x128xf32>
    %48 = arith.cmpf oeq, %46, %47 : vector<128x128xf32>
    %cst_38 = arith.constant -1.000000e+09 : f32
    %cst_39 = arith.constant 0.000000e+00 : f32
    %49 = vector.broadcast %cst_38 : f32 to vector<128x128xf32>
    %50 = vector.broadcast %cst_39 : f32 to vector<128x128xf32>
    %51 = arith.select %48, %49, %50 : vector<128x128xi1>, vector<128x128xf32>
    "tpu.trace_start"() <{level = 10 : i32, message = "hqd,hkd->hqk"}> : () -> ()
    %cst_40 = arith.constant dense<0.000000e+00> : vector<2x128x128xf32>
    %52 = tpu.matmul %42, %43, %cst_40 {dimension_numbers = #tpu.dot_dimension_numbers<[2], [2], [1], [1], [0, 0, 0, 1, 1, 1], [0], [0]>} : vector<2x128x128xbf16>, vector<2x128x128xbf16>, vector<2x128x128xf32> -> vector<2x128x128xf32>
    "tpu.trace_stop"() : () -> ()
    %53 = vector.shape_cast %51 : vector<128x128xf32> to vector<1x128x128xf32>
    %54 = vector.broadcast %53 : vector<1x128x128xf32> to vector<2x128x128xf32>
    %55 = arith.addf %52, %54 : vector<2x128x128xf32>
    %cst_41 = arith.constant dense<0xFF800000> : vector<2x128xf32>
    %56 = vector.multi_reduction <maximumf>, %55, %cst_41 [2] : vector<2x128x128xf32> to vector<2x128xf32>
    %57 = vector.shape_cast %56 : vector<2x128xf32> to vector<2x128x1xf32>
    %58 = vector.broadcast %57 : vector<2x128x1xf32> to vector<2x128x128xf32>
    %59 = arith.subf %55, %58 : vector<2x128x128xf32>
    %60 = math.exp %59 : vector<2x128x128xf32>
    %cst_42 = arith.constant dense<0.000000e+00> : vector<2x128xf32>
    %61 = vector.multi_reduction <add>, %60, %cst_42 [2] : vector<2x128x128xf32> to vector<2x128xf32>
    %62 = vector.shape_cast %61 : vector<2x128xf32> to vector<2x128x1xf32>
    %63 = tpu.reciprocal %62 {approx = true} : vector<2x128x1xf32> -> vector<2x128x1xf32>
    %64 = vector.broadcast %63 : vector<2x128x1xf32> to vector<2x128x128xf32>
    %65 = arith.mulf %60, %64 : vector<2x128x128xf32>
    %66 = arith.truncf %65 : vector<2x128x128xf32> to vector<2x128x128xbf16>
    "tpu.trace_start"() <{level = 10 : i32, message = "hqk,hkd->hqd"}> : () -> ()
    %cst_43 = arith.constant dense<0.000000e+00> : vector<2x128x128xf32>
    %67 = tpu.matmul %66, %44, %cst_43 {dimension_numbers = #tpu.dot_dimension_numbers<[2], [1], [1], [2], [0, 0, 0, 1, 1, 2], [0], [0]>} : vector<2x128x128xbf16>, vector<2x128x128xbf16>, vector<2x128x128xf32> -> vector<2x128x128xf32>
    "tpu.trace_stop"() : () -> ()
    %68 = vector.extract_strided_slice %67 {offsets = [0, 0, 0], sizes = [1, 128, 128], strides = [1, 1, 1]} : vector<2x128x128xf32> to vector<1x128x128xf32>
    %69 = vector.shape_cast %68 : vector<1x128x128xf32> to vector<128x128xf32>
    %70 = arith.truncf %69 : vector<128x128xf32> to vector<128x128xbf16>
    %c0_44 = arith.constant 0 : index
    %c0_45 = arith.constant 0 : index
    %71 = vector.load %arg15[%c0_44, %c0_45] : memref<128x256xbf16, #tpu.memory_space<vmem>>, vector<128x128xbf16>
    tpu.vector_store %arg15[%c0_44, %c0_45], %70 {strides = array<i32>} : memref<128x256xbf16, #tpu.memory_space<vmem>>, vector<128x128xbf16>,
    %72 = vector.extract_strided_slice %67 {offsets = [1, 0, 0], sizes = [1, 128, 128], strides = [1, 1, 1]} : vector<2x128x128xf32> to vector<1x128x128xf32>
    %73 = vector.shape_cast %72 : vector<1x128x128xf32> to vector<128x128xf32>
    %74 = arith.truncf %73 : vector<128x128xf32> to vector<128x128xbf16>
    %c0_46 = arith.constant 0 : index
    %c128 = arith.constant 128 : index
    %75 = vector.load %arg15[%c0_46, %c128] : memref<128x256xbf16, #tpu.memory_space<vmem>>, vector<128x128xbf16>
    tpu.vector_store %arg15[%c0_46, %c128], %74 {strides = array<i32>} : memref<128x256xbf16, #tpu.memory_space<vmem>>, vector<128x128xbf16>,
    %c0_47 = arith.constant 0 : index
    %c0_48 = arith.constant 0 : index
    %76 = vector.load %arg15[%c0_47, %c0_48] : memref<128x256xbf16, #tpu.memory_space<vmem>>, vector<128x256xbf16>
    %c0_49 = arith.constant 0 : index
    %c0_50 = arith.constant 0 : index
    %77 = vector.load %arg5[%c0_49, %c0_50] : memref<256x256xbf16, #tpu.memory_space<vmem>>, vector<256x256xbf16>
    %cst_51 = arith.constant dense<0.000000e+00> : vector<128x256xf32>
    %78 = tpu.matmul %76, %77, %cst_51 {dimension_numbers = #tpu.dot_dimension_numbers<[1], [0], [0], [1], [0, 0, 1, 1], [], []>} : vector<128x256xbf16>, vector<256x256xbf16>, vector<128x256xf32> -> vector<128x256xf32>
    %c0_52 = arith.constant 0 : index
    %c0_53 = arith.constant 0 : index
    %79 = vector.load %arg6[%c0_52, %c0_53] : memref<1x256xf32, #tpu.memory_space<vmem>>, vector<1x256xf32>
    %80 = vector.broadcast %79 : vector<1x256xf32> to vector<128x256xf32>
    %81 = arith.addf %78, %80 : vector<128x256xf32>
    %82 = arith.addf %1, %81 : vector<128x256xf32>
    %cst_54 = arith.constant dense<0.000000e+00> : vector<128xf32>
    %83 = vector.multi_reduction <add>, %82, %cst_54 [1] : vector<128x256xf32> to vector<128xf32>
    %84 = vector.shape_cast %83 : vector<128xf32> to vector<128x1xf32>
    %cst_55 = arith.constant 2.560000e+02 : f32
    %85 = vector.broadcast %cst_55 : f32 to vector<128x1xf32>
    %86 = arith.divf %84, %85 : vector<128x1xf32>
    %87 = vector.broadcast %86 : vector<128x1xf32> to vector<128x256xf32>
    %88 = arith.subf %82, %87 : vector<128x256xf32>
    %89 = arith.mulf %88, %88 : vector<128x256xf32>
    %cst_56 = arith.constant dense<0.000000e+00> : vector<128xf32>
    %90 = vector.multi_reduction <add>, %89, %cst_56 [1] : vector<128x256xf32> to vector<128xf32>
    %91 = vector.shape_cast %90 : vector<128xf32> to vector<128x1xf32>
    %cst_57 = arith.constant 0.00392156886 : f32
    %92 = vector.broadcast %cst_57 : f32 to vector<128x1xf32>
    %93 = arith.mulf %91, %92 : vector<128x1xf32>
    %94 = math.sqrt %93 : vector<128x1xf32>
    %cst_58 = arith.constant 9.99999997E-7 : f32
    %95 = vector.broadcast %cst_58 : f32 to vector<128x1xf32>
    %96 = arith.addf %94, %95 : vector<128x1xf32>
    %cst_59 = arith.constant 1.000000e+00 : f32
    %97 = vector.broadcast %cst_59 : f32 to vector<128x1xf32>
    %98 = arith.divf %97, %96 : vector<128x1xf32>
    %99 = vector.broadcast %86 : vector<128x1xf32> to vector<128x256xf32>
    %100 = arith.subf %82, %99 : vector<128x256xf32>
    %101 = vector.broadcast %98 : vector<128x1xf32> to vector<128x256xf32>
    %102 = arith.mulf %100, %101 : vector<128x256xf32>
    %103 = arith.truncf %102 : vector<128x256xf32> to vector<128x256xbf16>
    %c0_60 = arith.constant 0 : index
    %c0_61 = arith.constant 0 : index
    %104 = vector.load %arg7[%c0_60, %c0_61] : memref<256x512xbf16, #tpu.memory_space<vmem>>, vector<256x512xbf16>
    %cst_62 = arith.constant dense<0.000000e+00> : vector<128x512xf32>
    %105 = tpu.matmul %103, %104, %cst_62 {dimension_numbers = #tpu.dot_dimension_numbers<[1], [0], [0], [1], [0, 0, 1, 1], [], []>} : vector<128x256xbf16>, vector<256x512xbf16>, vector<128x512xf32> -> vector<128x512xf32>
    %c0_63 = arith.constant 0 : index
    %c0_64 = arith.constant 0 : index
    %106 = vector.load %arg8[%c0_63, %c0_64] : memref<1x512xf32, #tpu.memory_space<vmem>>, vector<1x512xf32>
    %107 = vector.broadcast %106 : vector<1x512xf32> to vector<128x512xf32>
    %108 = arith.addf %105, %107 : vector<128x512xf32>
    %cst_65 = arith.constant 0.000000e+00 : f32
    %109 = vector.broadcast %cst_65 : f32 to vector<128x512xf32>
    %110 = arith.maximumf %108, %109 : vector<128x512xf32>
    %111 = arith.truncf %110 : vector<128x512xf32> to vector<128x512xbf16>
    %c0_66 = arith.constant 0 : index
    %c0_67 = arith.constant 0 : index
    %112 = vector.load %arg9[%c0_66, %c0_67] : memref<512x256xbf16, #tpu.memory_space<vmem>>, vector<512x256xbf16>
    %cst_68 = arith.constant dense<0.000000e+00> : vector<128x256xf32>
    %113 = tpu.matmul %111, %112, %cst_68 {dimension_numbers = #tpu.dot_dimension_numbers<[1], [0], [0], [1], [0, 0, 1, 1], [], []>} : vector<128x512xbf16>, vector<512x256xbf16>, vector<128x256xf32> -> vector<128x256xf32>
    %c0_69 = arith.constant 0 : index
    %c0_70 = arith.constant 0 : index
    %114 = vector.load %arg10[%c0_69, %c0_70] : memref<1x256xf32, #tpu.memory_space<vmem>>, vector<1x256xf32>
    %115 = vector.broadcast %114 : vector<1x256xf32> to vector<128x256xf32>
    %116 = arith.addf %113, %115 : vector<128x256xf32>
    %117 = arith.addf %102, %116 : vector<128x256xf32>
    %cst_71 = arith.constant dense<0.000000e+00> : vector<128xf32>
    %118 = vector.multi_reduction <add>, %117, %cst_71 [1] : vector<128x256xf32> to vector<128xf32>
    %119 = vector.shape_cast %118 : vector<128xf32> to vector<128x1xf32>
    %cst_72 = arith.constant 2.560000e+02 : f32
    %120 = vector.broadcast %cst_72 : f32 to vector<128x1xf32>
    %121 = arith.divf %119, %120 : vector<128x1xf32>
    %122 = vector.broadcast %121 : vector<128x1xf32> to vector<128x256xf32>
    %123 = arith.subf %117, %122 : vector<128x256xf32>
    %124 = arith.mulf %123, %123 : vector<128x256xf32>
    %cst_73 = arith.constant dense<0.000000e+00> : vector<128xf32>
    %125 = vector.multi_reduction <add>, %124, %cst_73 [1] : vector<128x256xf32> to vector<128xf32>
    %126 = vector.shape_cast %125 : vector<128xf32> to vector<128x1xf32>
    %cst_74 = arith.constant 0.00392156886 : f32
    %127 = vector.broadcast %cst_74 : f32 to vector<128x1xf32>
    %128 = arith.mulf %126, %127 : vector<128x1xf32>
    %129 = math.sqrt %128 : vector<128x1xf32>
    %cst_75 = arith.constant 9.99999997E-7 : f32
    %130 = vector.broadcast %cst_75 : f32 to vector<128x1xf32>
    %131 = arith.addf %129, %130 : vector<128x1xf32>
    %cst_76 = arith.constant 1.000000e+00 : f32
    %132 = vector.broadcast %cst_76 : f32 to vector<128x1xf32>
    %133 = arith.divf %132, %131 : vector<128x1xf32>
    %134 = vector.broadcast %121 : vector<128x1xf32> to vector<128x256xf32>
    %135 = arith.subf %117, %134 : vector<128x256xf32>
    %136 = vector.broadcast %133 : vector<128x1xf32> to vector<128x256xf32>
    %137 = arith.mulf %135, %136 : vector<128x256xf32>
    %c0_77 = arith.constant 0 : index
    %c0_78 = arith.constant 0 : index
    %c0_79 = arith.constant 0 : index
    %138 = vector.load %arg11[%c0_77, %c0_78, %c0_79] : memref<1x128x256xf32, #tpu.memory_space<vmem>>, vector<1x128x256xf32>
    %139 = vector.shape_cast %138 : vector<1x128x256xf32> to vector<128x256xf32>
    %140 = vector.shape_cast %137 : vector<128x256xf32> to vector<1x128x256xf32>
    tpu.vector_store %arg11[%c0_77, %c0_78, %c0_79], %140 {strides = array<i32>} : memref<1x128x256xf32, #tpu.memory_space<vmem>>, vector<1x128x256xf32>,
    return
  }
  func.func @transform_0(%arg0: i32) -> (i32, i32, i32) {
    %c0_i32 = arith.constant 0 : i32
    %c0_i32_0 = arith.constant 0 : i32
    %c0_i32_1 = arith.constant 0 : i32
    return %arg0, %c0_i32, %c0_i32_0 : i32, i32, i32
  }
  func.func @transform_1(%arg0: i32) -> (i32, i32, i32) {
    %c0_i32 = arith.constant 0 : i32
    %c0_i32_0 = arith.constant 0 : i32
    %c0_i32_1 = arith.constant 0 : i32
    return %arg0, %c0_i32, %c0_i32_0 : i32, i32, i32
  }
  func.func @transform_2(%arg0: i32) -> (i32, i32) {
    %c0_i32 = arith.constant 0 : i32
    %c0_i32_0 = arith.constant 0 : i32
    %c0_i32_1 = arith.constant 0 : i32
    return %c0_i32, %c0_i32_0 : i32, i32
  }
  func.func @transform_3(%arg0: i32) -> (i32, i32) {
    %c0_i32 = arith.constant 0 : i32
    %c0_i32_0 = arith.constant 0 : i32
    %c0_i32_1 = arith.constant 0 : i32
    return %c0_i32, %c0_i32_0 : i32, i32
  }
  func.func @transform_4(%arg0: i32) -> (i32, i32) {
    %c0_i32 = arith.constant 0 : i32
    %c0_i32_0 = arith.constant 0 : i32
    %c0_i32_1 = arith.constant 0 : i32
    return %c0_i32, %c0_i32_0 : i32, i32
  }
  func.func @transform_5(%arg0: i32) -> (i32, i32) {
    %c0_i32 = arith.constant 0 : i32
    %c0_i32_0 = arith.constant 0 : i32
    %c0_i32_1 = arith.constant 0 : i32
    return %c0_i32, %c0_i32_0 : i32, i32
  }
  func.func @transform_6(%arg0: i32) -> (i32, i32) {
    %c0_i32 = arith.constant 0 : i32
    %c0_i32_0 = arith.constant 0 : i32
    %c0_i32_1 = arith.constant 0 : i32
    return %c0_i32, %c0_i32_0 : i32, i32
  }
  func.func @transform_7(%arg0: i32) -> (i32, i32) {
    %c0_i32 = arith.constant 0 : i32
    %c0_i32_0 = arith.constant 0 : i32
    %c0_i32_1 = arith.constant 0 : i32
    return %c0_i32, %c0_i32_0 : i32, i32
  }
  func.func @transform_8(%arg0: i32) -> (i32, i32) {
    %c0_i32 = arith.constant 0 : i32
    %c0_i32_0 = arith.constant 0 : i32
    %c0_i32_1 = arith.constant 0 : i32
    return %c0_i32, %c0_i32_0 : i32, i32
  }
  func.func @transform_9(%arg0: i32) -> (i32, i32) {
    %c0_i32 = arith.constant 0 : i32
    %c0_i32_0 = arith.constant 0 : i32
    %c0_i32_1 = arith.constant 0 : i32
    return %c0_i32, %c0_i32_0 : i32, i32
  }
  func.func @transform_10(%arg0: i32) -> (i32, i32, i32) {
    %c0_i32 = arith.constant 0 : i32
    %c0_i32_0 = arith.constant 0 : i32
    %c0_i32_1 = arith.constant 0 : i32
    return %arg0, %c0_i32, %c0_i32_0 : i32, i32, i32
  }
}

</mosaic_0001>

<bundles_post_ra>
// kernel: tpu_custom_call.1
= control target key start
LH: loop header
LB: loop body
LE: loop exit
PB: predicated region body
PF: predicated region fallthrough
CT: control target
= control target key end

     0   :  { %s10476_s0 = inlined_call_operand.hbm [shape: f32[2,128,256], index: 0, kind: input, shape index: {}]   ;;  %s10477_s1 = inlined_call_operand.hbm [shape: f32[2,128,128], index: 1, kind: input, shape index: {}]   ;;  %s10478_s2 = inlined_call_operand.hbm [shape: bf16[256,768], index: 2, kind: input, shape index: {}]   ;;  %s10479_s3 = inlined_call_operand.hbm [shape: f32[1,768], index: 3, kind: input, shape index: {}]   ;;  %s10480_s4 = inlined_call_operand.hbm [shape: bf16[256,256], index: 4, kind: input, shape index: {}]   ;;  %s10481_s5 = inlined_call_operand.vmem [shape: f32[1,256], index: 5, kind: input, shape index: {}]   ;;  %s10482_s6 = inlined_call_operand.hbm [shape: bf16[256,512], index: 6, kind: input, shape index: {}]   ;;  %s10483_s7 = inlined_call_operand.vmem [shape: f32[1,512], index: 7, kind: input, shape index: {}]   ;;  %s10484_s8 = inlined_call_operand.hbm [shape: bf16[512,256], index: 8, kind: input, shape index: {}]   ;;  %s10485_s9 = inlined_call_operand.vmem [shape: f32[1,256], index: 9, kind: input, shape index: {}]   ;;  %s10486_s10 = inlined_call_operand.hbm [shape: f32[2,128,256], index: 10, kind: output, shape index: {}]  }
   0x1   :  { %10529 = sst [smem:[#allocation59_spill]] %s10476_s0 }
   0x2   :  { %10530 = sst [smem:[#allocation60_spill]] %s10478_s2 }
   0x3   :  { %10531 = sst [smem:[#allocation61_spill]] %s10479_s3 }
   0x4   :  { %10532 = sst [smem:[#allocation62_spill]] %s10480_s4 }
   0x5   :  { %10533 = sst [smem:[#allocation63_spill]] %s10482_s6 }
   0x6   :  { %10534 = sst [smem:[#allocation64_spill]] %s10484_s8 }
   0x7   :  { %15 = vsyncpa [#allocation7], 0 }
   0x8   :  { %17 = vsyncpa [#allocation7 + $0x1], 0 }
   0x9   :  { %18 = vsyncpa [#allocation10], 0 }
   0xa   :  { %20 = vsyncpa [#allocation10 + $0x1], 0 }
   0xb   :  { %21 = vsyncpa [#allocation13], 0 }
   0xc   :  { %22 = vsyncpa [#allocation16], 0 }
   0xd   :  { %23 = vsyncpa [#allocation8], 0 }
   0xe   :  { %25 = vsyncpa [#allocation8 + $0x1], 0  ;;  %s8392_s13 = smov 0   ;;  %s8394_s14 = smov 0  }
   0xf   :  { %s8396_s15 = smov 0   ;;  %s8398_s16 = smov 0  }
  0x10 LB: > { %10535 = sst [smem:[#allocation25_spill]] %s8314_s15  ;;  %s8320_s17 = smov [#allocation11]   ;;  %s8318_s16 = sphi %s8398_s16, %s10638_s16   ;;  %s8314_s15 = sphi %s8396_s15, %s10637_s15   ;;  %s8310_s14 = sphi %s8394_s14, %s10636_s14   ;;  %s8306_s13 = sphi %s8392_s13, %s10635_s13  }
  0x11   : > { %s294_s18 = sshll.u32 %s8320_s17, 4  ;;  %s8413_s19 = sadd.s32 4294967295, %s8318_s16   ;;  %s295_s18 = int_to_ptr.vmem [resolvable:$true] %s294_s18 }
  0x12   : > { %p6085_p0 = scmp.ge.s32.totalorder %s8318_s16, 1  ;;  %p10487_p1 = scmp.eq.s32.totalorder %s8413_s19, 0 }
  0x13   : > { %p282_p2 = scmp.lt.s32.totalorder %s8318_s16, 3  ;;  %s8321_s21 = smov [#allocation12]  }
  0x14   : > { %s308_s22 = sshll.u32 %s8321_s21, 4  ;;  %s8322_s24 = smov [#allocation15]   ;;  %s309_s22 = int_to_ptr.vmem [resolvable:$true] %s308_s22 }
  0x15   : > { %p8418_p3 = pnand %p6085_p0, %p282_p2  ;;  %s334_s25 = sshll.u32 %s8322_s24, 4  ;;  %s8431_s25 = int_to_ptr.vmem [resolvable:$true] %s334_s25 }
  0x16   : > { %s8063_s27 = scalar_lea.vmem %s295_s18, 12288  ;;  %p8071_p11 = scmp.lt.s32.totalorder %s295_s18, %s295_s18 }
  0x17   : > { %p7223_p5 = pneg %p8418_p3  ;;  %p8064_p8 = scmp.ne.s32.totalorder %s295_s18, %s8063_s27 }
  0x18   : > { %p8072_p12 = scmp.lt.s32.totalorder %s8063_s27, %s8063_s27 }
  0x19   : > { %p8427_p6 = pnand %p7223_p5, %p10487_p1 }
  0x1a   : > { %p8073_p13 = por %p8072_p12, %p8071_p11 }
  0x1b   : > { %p8435_p7 = pneg %p8427_p6 }
  0x1d   : > { %p8066_p9 = pnand %p8064_p8, %p8435_p7 }
  0x1f   : > { %p8067_p10 = pneg %p8066_p9 }
  0x21   : > { %p8074_p0 = pnand %p8073_p13, %p8067_p10 }
  0x23   : > { %8077 = shalt.err (!%p8074_p0)
}
  0x24   : > { %s8323_s28 = smov 384   ;;  %s8324_s29 = smov 24  }
  0x25   : > { %s10539_s2 = sld [smem:[#allocation60_spill]]  ;;  %s8089_s12 = scalar_lea.vmem %s309_s22, 96 }
  0x26   : > { %p8090_p2 = scmp.ne.s32.totalorder %s309_s22, %s8089_s12  ;;  %p8097_p9 = scmp.lt.s32.totalorder %s309_s22, %s309_s22 }
  0x27   : > { %p8098_p4 = scmp.lt.s32.totalorder %s8089_s12, %s8089_s12 }
  0x28   : > { %p8092_p5 = pnand %p8090_p2, %p8435_p7 }
  0x29   : > { %p8099_p1 = por %p8098_p4, %p8097_p9 }
  0x2a   : > { %p8093_p8 = pneg %p8092_p5 }
  0x2b   : > { %7226 = dma.hbm_to_vmem [thread:$0]  (!%p8427_p6), %s10539_s2, 12288, %s295_s18, [#allocation10], %s8323_s28, %s8323_s28, %s8324_s29  }
  0x2c   : > { %p8100_p11 = pnand %p8099_p1, %p8093_p8 }
  0x2e   : > { %8103 = shalt.err (!%p8100_p11)
}
  0x2f   : > { %s10540_s3 = sld [smem:[#allocation61_spill]]  ;;  %s8115_s18 = scalar_lea.vmem %s8431_s25, 8192 }
  0x30   : > { %p8116_p10 = scmp.ne.s32.totalorder %s8431_s25, %s8115_s18  ;;  %p8123_p0 = scmp.lt.s32.totalorder %s8431_s25, %s8431_s25 }
  0x31   : > { %p8124_p4 = scmp.lt.s32.totalorder %s8115_s18, %s8115_s18 }
  0x32   : > { %p8118_p12 = pnand %p8116_p10, %p8435_p7 }
  0x33   : > { %p8125_p1 = por %p8124_p4, %p8123_p0 }
  0x34   : > { %p8119_p13 = pneg %p8118_p12 }
  0x35   : > { %7229 = dma.hbm_to_vmem [thread:$0]  (!%p8427_p6), %s10540_s3, 96, %s309_s22, [#allocation13]  }
  0x36   : > { %p8126_p2 = pnand %p8125_p1, %p8119_p13 }
  0x38   : > { %8129 = shalt.err (!%p8126_p2)
}
  0x39   : > { %s10490_s24 = smov 256   ;;  %s10491_s27 = smov 16  }
  0x3a   : > { %s10541_s6 = sld [smem:[#allocation63_spill]]  ;;  %s8327_s29 = smov [#allocation14]  }
  0x3b   : > { %s318_s30 = sshll.u32 %s8327_s29, 4  ;;  %s319_s30 = int_to_ptr.vmem [resolvable:$true] %s318_s30 }
  0x3c   : > { %s8141_s11 = scalar_lea.vmem %s319_s30, 4096  ;;  %p8149_p11 = scmp.lt.s32.totalorder %s319_s30, %s319_s30 }
  0x3d   : > { %p8142_p5 = scmp.ne.s32.totalorder %s319_s30, %s8141_s11  ;;  %p8150_p10 = scmp.lt.s32.totalorder %s8141_s11, %s8141_s11 }
  0x3f   : > { %p8144_p8 = pnand %p8142_p5, %p8435_p7  ;;  %p8151_p12 = por %p8150_p10, %p8149_p11 }
  0x40   : > { %7235 = dma.hbm_to_vmem [thread:$0]  (!%p8427_p6), %s10541_s6, 8192, %s8431_s25, [#allocation16], %s10490_s24, %s10490_s24, %s10491_s27  }
  0x41   : > { %p8145_p9 = pneg %p8144_p8 }
  0x43   : > { %p8152_p13 = pnand %p8151_p12, %p8145_p9 }
  0x45   : > { %8155 = shalt.err (!%p8152_p13)
}
  0x46   : > { %s10488_s12 = smov 128   ;;  %s10489_s17 = smov 8  }
  0x47   : > { %s10542_s4 = sld [smem:[#allocation62_spill]]  ;;  %s8330_s18 = smov [#allocation17]  }
  0x48   : > { %s350_s22 = sshll.u32 %s8330_s18, 4  ;;  %s351_s22 = int_to_ptr.vmem [resolvable:$true] %s350_s22 }
  0x49   : > { %s8167_s28 = scalar_lea.vmem %s351_s22, 8192  ;;  %p8175_p2 = scmp.lt.s32.totalorder %s351_s22, %s351_s22 }
  0x4a   : > { %p8168_p0 = scmp.ne.s32.totalorder %s351_s22, %s8167_s28  ;;  %p8176_p5 = scmp.lt.s32.totalorder %s8167_s28, %s8167_s28 }
  0x4c   : > { %p8170_p4 = pnand %p8168_p0, %p8435_p7  ;;  %p8177_p8 = por %p8176_p5, %p8175_p2 }
  0x4d   : > { %7232 = dma.hbm_to_vmem [thread:$0]  (!%p8427_p6), %s10542_s4, 4096, %s319_s30, [#allocation13], %s10488_s12, %s10488_s12, %s10489_s17  }
  0x4e   : > { %p8171_p1 = pneg %p8170_p4 }
  0x50   : > { %p8178_p9 = pnand %p8177_p8, %p8171_p1 }
  0x52   : > { %8181 = shalt.err (!%p8178_p9)
}
  0x53   : > { %s10543_s8 = sld [smem:[#allocation64_spill]]  ;;  %s6084_s23 = sadd.s32 4294967294, %s8318_s16  }
  0x54   : > { %s8490_s26 = sadd.s32 1, %s8318_s16   ;;  %s38_s11 = sadd.s32 1, %s8314_s15 }
  0x55   : > { %s35_s25 = ssub.s32 %s8318_s16, %s8490_s26  ;;  %p45_p7 = scmp.ne.s32.totalorder %s8314_s15, %s8310_s14 }
  0x56   : > { %p36_p11 = scmp.eq.s32.totalorder %s35_s25, 0  ;;  %p46_p10 = scmp.eq.s32.totalorder %s8318_s16, 0 }
  0x57   : > { %p51_p12 = scmp.ne.s32.totalorder %s8310_s14, %s8306_s13  ;;  %p269_p13 = scmp.eq.s32.totalorder %s8413_s19, 1 }
  0x58   : > { %s8502_s21 = scalar_select %p36_p11, %s8314_s15, %s38_s11  }
  0x59   : > { %7238 = dma.hbm_to_vmem [thread:$0]  (!%p8427_p6), %s10543_s8, 8192, %s351_s22, [#allocation16], %s10488_s12, %s10488_s12, %s10489_s17  }
  0x5a   : > { %10544 = sst [smem:[#allocation26_spill]] %s8502_s21  ;;  %p47_p0 = por %p46_p10, %p45_p7 }
  0x5b   : > { %p10545_p4 = scmp.eq.s32.totalorder %s8413_s19, 0  ;;  %p8510_p6 = por %p269_p13, %p45_p7 }
  0x5c   : > { %p275_p2 = scmp.eq.s32.totalorder %s6084_s23, 1  ;;  %p7255_p5 = scmp.lt.s32.totalorder %s8318_s16, 2 }
  0x5d   : > { %p8506_p1 = por %p10545_p4, %p51_p12  ;;  %s8516_s28 = sand.u32 1, %s8314_s15  }
  0x5e   : > { %s10547_s22 = scalar_select %p8510_p6, 1, 0 }
  0x5f   : > { %s10546_s18 = scalar_select %p8506_p1, 1, 0 }
  0x60   : > { %p8518_p8 = por %p275_p2, %p51_p12  ;;  %s6092_s30 = sshll.u32 %s8516_s28, 8 }
  0x61   : > { %s6560_s11 = sshll.u32 %s8318_s16, 12  ;;  %s10549_s0 = sld [smem:[#allocation59_spill]] }
  0x62   : > { %s10548_s29 = scalar_select %p8518_p8, 1, 0 }
  0x63   : > { %s371_s23 = scalar_lea.vmem [#allocation6], %s6092_s30  ;;  %p8529_p9 = pnand %p7255_p5, %p47_p0 }
  0x64   : > { %s378_s24 = sshll.u32 %s371_s23, 4  ;;  %s8533_s24 = int_to_ptr.vmem [resolvable:$true] %s378_s24 }
  0x65   : > { %p8184_p11 = pneg %p8529_p9 }
  0x67   : > { %s8527_s17 = scalar_lea.hbm %s10549_s0, %s6560_s11  ;;  %s8187_s11 = scalar_lea.hbm %s10549_s0, 8192 }
  0x68   : > { %s8182_s4 = scalar_lea.hbm %s8527_s17, 4096  ;;  %p8188_p13 = scmp.lt.s32.totalorder %s8527_s17, %s10549_s0 }
  0x69   : > { %p8183_p7 = scmp.ne.s32.totalorder %s8527_s17, %s8182_s4  ;;  %p8189_p0 = scmp.lt.s32.totalorder %s8187_s11, %s8182_s4 }
  0x6b   : > { %p8185_p10 = pnand %p8184_p11, %p8183_p7  ;;  %p8190_p4 = por %p8189_p0, %p8188_p13 }
  0x6d   : > { %p8186_p12 = pneg %p8185_p10 }
  0x6f   : > { %p8191_p2 = pnand %p8190_p4, %p8186_p12 }
  0x71   : > { %8194 = shalt.err (!%p8191_p2)
}
  0x72   : > { %s8195_s2 = scalar_lea.vmem %s8533_s24, 4096  ;;  %s8331_s12 = smov [#allocation6]  }
  0x73   : > { %p8196_p5 = scmp.ne.s32.totalorder %s8533_s24, %s8195_s2  ;;  %s8200_s30 = sshll.u32 %s8331_s12, 4  ;;  %s8201_s30 = int_to_ptr.vmem [resolvable:$false] %s8200_s30 }
  0x74   : > { %s8202_s3 = scalar_lea.vmem %s8201_s30, 8192  ;;  %p8203_p8 = scmp.lt.s32.totalorder %s8533_s24, %s8201_s30 }
  0x75   : > { %p8198_p7 = pnand %p8196_p5, %p8184_p11  ;;  %p8204_p6 = scmp.lt.s32.totalorder %s8202_s3, %s8195_s2 }
  0x77   : > { %p8199_p10 = pneg %p8198_p7  ;;  %p8205_p1 = por %p8204_p6, %p8203_p8 }
  0x79   : > { %p8206_p13 = pnand %p8205_p1, %p8199_p10 }
  0x7b   : > { %8209 = shalt.err (!%p8206_p13)
}
  0x7c   : > { %s10551_s4 = smov 16   ;;  %s10552_s11 = smov 256  }
  0x7d   : > { %s10553_s25 = scalar_lea.sflag [#allocation7], %s8516_s28  ;;  %s6095_s23 = sshll.u32 %s8516_s28, 7 }
  0x7e   : > { %7242 = dma.hbm_to_vmem [thread:$0]  (!%p8529_p9), %s8527_s17, 4096, %s8533_s24, %s10553_s25, %s10552_s11, %s10552_s11, %s10551_s4  }
  0x7f   : > { %s6561_s12 = sshll.u32 %s8318_s16, 11  ;;  %s392_s0 = scalar_lea.vmem [#allocation9], %s6095_s23 }
  0x80   : > { %s8571_s30 = scalar_lea.hbm %s10477_s1, %s6561_s12  ;;  %s399_s6 = sshll.u32 %s392_s0, 4  ;;  %s8573_s6 = int_to_ptr.vmem [resolvable:$true] %s399_s6 }
  0x81   : > { %s10554_s8 = sand.u32 1, %s8318_s16   ;;  %s8210_s15 = scalar_lea.hbm %s8571_s30, 2048 }
  0x82   : > { %s389_s21 = scalar_lea.sflag [#allocation10], %s10554_s8  ;;  %p8211_p1 = scmp.ne.s32.totalorder %s8571_s30, %s8210_s15 }
  0x83   : > { %s8215_s28 = scalar_lea.hbm %s10477_s1, 4096  ;;  %p8216_p12 = scmp.lt.s32.totalorder %s8571_s30, %s10477_s1 }
  0x84   : > { %p8213_p6 = pnand %p8211_p1, %p8184_p11  ;;  %p8217_p0 = scmp.lt.s32.totalorder %s8215_s28, %s8210_s15 }
  0x86   : > { %p8214_p8 = pneg %p8213_p6  ;;  %p8218_p4 = por %p8217_p0, %p8216_p12 }
  0x88   : > { %p8219_p2 = pnand %p8218_p4, %p8214_p8 }
  0x8a   : > { %8222 = shalt.err (!%p8219_p2)
}
  0x8b   : > { %s8223_s0 = scalar_lea.vmem %s8573_s6, 2048  ;;  %s8332_s8 = smov [#allocation9]  }
  0x8c   : > { %p8224_p5 = scmp.ne.s32.totalorder %s8573_s6, %s8223_s0  ;;  %s8228_s25 = sshll.u32 %s8332_s8, 4  ;;  %s8229_s25 = int_to_ptr.vmem [resolvable:$false] %s8228_s25 }
  0x8d   : > { %s8230_s23 = scalar_lea.vmem %s8229_s25, 4096  ;;  %p8231_p13 = scmp.lt.s32.totalorder %s8573_s6, %s8229_s25 }
  0x8e   : > { %p8226_p7 = pnand %p8224_p5, %p8184_p11  ;;  %p8232_p1 = scmp.lt.s32.totalorder %s8230_s23, %s8223_s0 }
  0x90   : > { %p8227_p10 = pneg %p8226_p7  ;;  %p8233_p6 = por %p8232_p1, %p8231_p13 }
  0x92   : > { %p8234_p12 = pnand %p8233_p6, %p8227_p10 }
  0x94   : > { %8237 = shalt.err (!%p8234_p12)
}
  0x95   : > { %s10555_s15 = smov 8   ;;  %s10556_s12 = smov 128  }
  0x96   : > { %7245 = dma.hbm_to_vmem [thread:$0]  (!%p8529_p9), %s8571_s30, 2048, %s8573_s6, %s389_s21, %s10556_s12, %s10556_s12, %s10555_s15  }
  0x97   : > { %411 = sbr.rel (%p8418_p3) target bundleno = 2693 (0xa85), region = 60 }
  0x9c   : > { %s8605_s2 = sand.u32 1, %s8310_s14   ;;  %p10557_p11 = scmp.ne.s32.totalorder %s10546_s18, 0 }
  0x9d   : > { %s6099_s3 = sshll.u32 %s8605_s2, 8  ;;  %s414_s24 = scalar_lea.sflag [#allocation7], %s8605_s2 }
  0x9e   : > { %s8611_s27 = scalar_lea.vmem [#allocation6], %s6099_s3 }
  0x9f   : > { %8281 = dma.done.wait (%p10557_p11), %s414_s24, 4096  }
  0xa0   : > { %8283 = vsyncadd (%p10557_p11), %s414_s24, 4294963200  ;;  %s422_s6 = sand.u32 1, %s8413_s19   ;;  %s6100_s20 = sshll.u32 %s8605_s2, 7 }
  0xa1   : > { %s423_s21 = scalar_lea.sflag [#allocation10], %s422_s6  ;;  %s8619_s30 = scalar_lea.vmem [#allocation9], %s6100_s20 }
  0xa2   : > { %8285 = dma.done.wait (%p10557_p11), %s423_s21, 2048  }
  0xa3   : > { %8287 = vsyncadd (%p10557_p11), %s423_s21, 4294965248  ;;  %p10558_p3 = scmp.eq.s32.totalorder %s8413_s19, 0 }
  0xa5   : > { %8289 = dma.done.wait (%p10558_p3), [#allocation10], 12288   ;;  %p10559_p9 = pmov %p10558_p3 }
  0xa6   : > { %p10560_p8 = pmov %p10558_p3 }
  0xa7   : > { %8291 = vsyncadd (%p10559_p9), [#allocation10], 4294955008 }
  0xa8   : > { %8293 = dma.done.wait (%p10560_p8), [#allocation13], 4192   ;;  %p10561_p0 = pmov %p10558_p3 }
  0xaa   : > { %8295 = vsyncadd (%p10561_p0), [#allocation13], 4294963104  ;;  %p10562_p4 = pmov %p10561_p0 }
  0xab   : > { %p10563_p2 = pmov %p10561_p0 }
  0xac   : > { %8297 = dma.done.wait (%p10562_p4), [#allocation16], 16384  }
  0xad   : > { %8299 = vsyncadd (%p10563_p2), [#allocation16], 4294950912  ;;  %v7308_v0 = vld [vmem:[#allocation11 + $0x15c] ss:$24 sps:$4 sm:$0xff]   ;;  %v7310_v1 = vld [vmem:[#allocation11 + $0x158] ss:$24 sps:$4 sm:$0xff]  }
  0xae   : > { %1258 = vmatprep.subr.bf16.mxu1 %v7308_v0  ;;  %v7311_v2 = vld [vmem:[#allocation11 + $0x12c] ss:$24 sps:$4 sm:$0xff]   ;;  %v7313_v3 = vld [vmem:[#allocation11 + $0x128] ss:$24 sps:$4 sm:$0xff]   ;;  %v7314_v4 = vld [vmem:[#allocation11 + $0xfc] ss:$24 sps:$4 sm:$0xff]  }
  0xaf   : > { %1259 = vmatpush1.bf16.msra.mxu1 %v7310_v1  ;;  %v7316_v5 = vld [vmem:[#allocation11 + $0xf8] ss:$24 sps:$4 sm:$0xff]   ;;  %v7317_v6 = vld [vmem:[#allocation11 + $0xcc] ss:$24 sps:$4 sm:$0xff]   ;;  %v7319_v7 = vld [vmem:[#allocation11 + $0xc8] ss:$24 sps:$4 sm:$0xff]  }
  0xb0   : > { %1260 = vmatprep.subr.bf16.mxu1 %v7311_v2  ;;  %v7320_v8 = vld [vmem:[#allocation11 + $0x9c] ss:$24 sps:$4 sm:$0xff]   ;;  %v7322_v9 = vld [vmem:[#allocation11 + $0x98] ss:$24 sps:$4 sm:$0xff]   ;;  %v7323_v10 = vld [vmem:[#allocation11 + $0x6c] ss:$24 sps:$4 sm:$0xff]  }
  0xb1   : > { %v7325_v11 = vld [vmem:[#allocation11 + $0x68] ss:$24 sps:$4 sm:$0xff]   ;;  %v7326_v12 = vld [vmem:[#allocation11 + $0x3c] ss:$24 sps:$4 sm:$0xff]   ;;  %v7328_v16 = vld [vmem:[#allocation11 + $0x38] ss:$24 sps:$4 sm:$0xff]  }
  0xb2   : > { %v490_v13 = vld [vmem:[%s8611_s27 + $0x8] sm:$0xff]  ;;  %v492_v14 = vld [vmem:[%s8611_s27 + $0x18] sm:$0xff]  ;;  %v489_v53 = vld [vmem:[%s8611_s27] sm:$0xff]  ;;  %s10344_s8 = scalar_lea.vmem [#allocation18], %s6099_s3  ;;  %s6690_s25 = sshll.u32 %s8413_s19, 12 }
  0xb3   : > { %1261 = vmatpush1.bf16.msra.mxu1 %v7313_v3  ;;  %v8639_v15 = vpack.c.bf16 %v492_v14, %v490_v13  ;;  %v7329_v17 = vld [vmem:[#allocation11 + $0xc] ss:$24 sps:$4 sm:$0xff]   ;;  %v7358_v19 = vld [vmem:[#allocation11 + $0x150] ss:$24 sps:$4 sm:$0xff]   ;;  %v7332_v22 = vld [vmem:[#allocation11 + $0x2dc] ss:$24 sps:$4 sm:$0xff]   ;;  %s10427_s3 = scalar_lea.hbm %s10486_s10, %s6690_s25 }
  0xb4   : > { %1262 = vmatprep.subr.bf16.mxu1 %v7314_v4  ;;  %v7356_v18 = vld [vmem:[#allocation11 + $0x154] ss:$24 sps:$4 sm:$0xff]   ;;  %v7331_v20 = vld [vmem:[#allocation11 + $0x8] ss:$24 sps:$4 sm:$0xff]   ;;  %v7359_v21 = vld [vmem:[#allocation11 + $0x124] ss:$24 sps:$4 sm:$0xff]  }
  0xb5   : > { %1290 = vmatprep.mubr.bf16.mxu1 %v8639_v15  ;;  %1177 = vmatprep.mubr.bf16.mxu0 %v8639_v15  ;;  %v7361_v23 = vld [vmem:[#allocation11 + $0x120] ss:$24 sps:$4 sm:$0xff]   ;;  %v7362_v24 = vld [vmem:[#allocation11 + $0xf4] ss:$24 sps:$4 sm:$0xff]   ;;  %v7364_v27 = vld [vmem:[#allocation11 + $0xf0] ss:$24 sps:$4 sm:$0xff]  }
  0xb6   : > { %1145 = vmatprep.subr.bf16.mxu0 %v7356_v18  ;;  %v7334_v25 = vld [vmem:[#allocation11 + $0x2d8] ss:$24 sps:$4 sm:$0xff]   ;;  %v7335_v26 = vld [vmem:[#allocation11 + $0x2ac] ss:$24 sps:$4 sm:$0xff]   ;;  %v7337_v29 = vld [vmem:[#allocation11 + $0x2a8] ss:$24 sps:$4 sm:$0xff]  }
  0xb7   : > { %1263 = vmatpush1.bf16.msra.mxu1 %v7316_v5  ;;  %1146 = vmatpush1.bf16.msra.mxu0 %v7358_v19  ;;  %v7365_v28 = vld [vmem:[#allocation11 + $0xc4] ss:$24 sps:$4 sm:$0xff]   ;;  %v7367_v31 = vld [vmem:[#allocation11 + $0xc0] ss:$24 sps:$4 sm:$0xff]   ;;  %v7368_v32 = vld [vmem:[#allocation11 + $0x94] ss:$24 sps:$4 sm:$0xff]  }
  0xb8   : > { %1264 = vmatprep.subr.bf16.mxu1 %v7317_v6  ;;  %1147 = vmatprep.subr.bf16.mxu0 %v7359_v21  ;;  %v7338_v30 = vld [vmem:[#allocation11 + $0x27c] ss:$24 sps:$4 sm:$0xff]   ;;  %v7340_v33 = vld [vmem:[#allocation11 + $0x278] ss:$24 sps:$4 sm:$0xff]   ;;  %v7341_v34 = vld [vmem:[#allocation11 + $0x24c] ss:$24 sps:$4 sm:$0xff]  }
  0xb9   : > { %v7370_v35 = vld [vmem:[#allocation11 + $0x90] ss:$24 sps:$4 sm:$0xff]   ;;  %v7371_v36 = vld [vmem:[#allocation11 + $0x64] ss:$24 sps:$4 sm:$0xff]   ;;  %v7373_v39 = vld [vmem:[#allocation11 + $0x60] ss:$24 sps:$4 sm:$0xff]  }
  0xba   : > { %v7343_v37 = vld [vmem:[#allocation11 + $0x248] ss:$24 sps:$4 sm:$0xff]   ;;  %v7344_v38 = vld [vmem:[#allocation11 + $0x21c] ss:$24 sps:$4 sm:$0xff]   ;;  %v7346_v41 = vld [vmem:[#allocation11 + $0x218] ss:$24 sps:$4 sm:$0xff]  }
  0xbb   : > { %1265 = vmatpush1.bf16.msra.mxu1 %v7319_v7  ;;  %1148 = vmatpush1.bf16.msra.mxu0 %v7361_v23  ;;  %v7374_v40 = vld [vmem:[#allocation11 + $0x34] ss:$24 sps:$4 sm:$0xff]   ;;  %v7376_v43 = vld [vmem:[#allocation11 + $0x30] ss:$24 sps:$4 sm:$0xff]   ;;  %v7377_v44 = vld [vmem:[#allocation11 + $0x4] ss:$24 sps:$4 sm:$0xff]  }
  0xbc   : > { %1266 = vmatprep.subr.bf16.mxu1 %v7320_v8  ;;  %1149 = vmatprep.subr.bf16.mxu0 %v7362_v24  ;;  %v7347_v42 = vld [vmem:[#allocation11 + $0x1ec] ss:$24 sps:$4 sm:$0xff]   ;;  %v7349_v45 = vld [vmem:[#allocation11 + $0x1e8] ss:$24 sps:$4 sm:$0xff]   ;;  %v7350_v46 = vld [vmem:[#allocation11 + $0x1bc] ss:$24 sps:$4 sm:$0xff]  }
  0xbd   : > { %v7379_v47 = vld [vmem:[#allocation11] ss:$24 sps:$4 sm:$0xff]   ;;  %v7380_v48 = vld [vmem:[#allocation11 + $0x2d4] ss:$24 sps:$4 sm:$0xff]   ;;  %v7382_v52 = vld [vmem:[#allocation11 + $0x2d0] ss:$24 sps:$4 sm:$0xff]  }
  0xbe   : > { %v7352_v49 = vld [vmem:[#allocation11 + $0x1b8] ss:$24 sps:$4 sm:$0xff]   ;;  %v7353_v50 = vld [vmem:[#allocation11 + $0x18c] ss:$24 sps:$4 sm:$0xff]   ;;  %v7355_v51 = vld [vmem:[#allocation11 + $0x188] ss:$24 sps:$4 sm:$0xff]  }
  0xbf   : > { %1267 = vmatpush1.bf16.msra.mxu1 %v7322_v9  ;;  %1150 = vmatpush1.bf16.msra.mxu0 %v7364_v27  ;;  %v7383_v54 = vld [vmem:[#allocation11 + $0x2a4] ss:$24 sps:$4 sm:$0xff]   ;;  %v491_v55 = vld [vmem:[%s8611_s27 + $0x10] sm:$0xff]  ;;  %v494_v56 = vld [vmem:[%s8611_s27 + $0x28] sm:$0xff]  ;;  %s5941_s23 = sshll.u32 %s10344_s8, 4  ;;  %s5928_s19 = scalar_lea.sflag [#allocation8], %s8605_s2  ;;  %s10429_s23 = int_to_ptr.vmem [resolvable:$true] %s5941_s23 }
  0xc0   : > { %1268 = vmatprep.subr.bf16.mxu1 %v7323_v10  ;;  %1151 = vmatprep.subr.bf16.mxu0 %v7365_v28  ;;  %v496_v57 = vld [vmem:[%s8611_s27 + $0x38] sm:$0xff]  ;;  %v8647_v59 = vpack.c.bf16 %v491_v55, %v489_v53  ;;  %v7386_v60 = vld [vmem:[#allocation11 + $0x274] ss:$24 sps:$4 sm:$0xff]   ;;  %v7388_v62 = vld [vmem:[#allocation11 + $0x270] ss:$24 sps:$4 sm:$0xff]   ;;  %s8238_s24 = scalar_lea.vmem %s10429_s23, 4096 }
  0xc1   : > { %v7385_v58 = vld [vmem:[#allocation11 + $0x2a0] ss:$24 sps:$4 sm:$0xff]   ;;  %v8649_v61 = vpack.c.bf16 %v496_v57, %v494_v56  ;;  %v7389_v0 = vld [vmem:[#allocation11 + $0x244] ss:$24 sps:$4 sm:$0xff]   ;;  %v495_v1 = vld [vmem:[%s8611_s27 + $0x30] sm:$0xff]  ;;  %p8239_p5 = scmp.ne.s32.totalorder %s10429_s23, %s8238_s24  ;;  %p10630_p7 = scmp.ne.s32.totalorder %s10547_s22, 0 }
  0xc2   : > { %v493_v63 = vld [vmem:[%s8611_s27 + $0x20] sm:$0xff]  ;;  %v498_v2 = vld [vmem:[%s8611_s27 + $0x48] sm:$0xff]  ;;  %v500_v3 = vld [vmem:[%s8611_s27 + $0x58] sm:$0xff] }
  0xc3   : > { %1269 = vmatpush1.bf16.msra.mxu1 %v7325_v11  ;;  %1152 = vmatpush1.bf16.msra.mxu0 %v7367_v31  ;;  %v7391_v4 = vld [vmem:[#allocation11 + $0x240] ss:$24 sps:$4 sm:$0xff]   ;;  %v7392_v5 = vld [vmem:[#allocation11 + $0x214] ss:$24 sps:$4 sm:$0xff]   ;;  %v8657_v6 = vpack.c.bf16 %v495_v1, %v493_v63  ;;  %v8659_v7 = vpack.c.bf16 %v500_v3, %v498_v2  ;;  %v7394_v8 = vld [vmem:[#allocation11 + $0x210] ss:$24 sps:$4 sm:$0xff]   ;;  %p8240_p10 = pnand %p8239_p5, %p10630_p7 }
  0xc4   : > { %1270 = vmatprep.subr.bf16.mxu1 %v7326_v12  ;;  %1153 = vmatprep.subr.bf16.mxu0 %v7368_v32  ;;  %v7395_v9 = vld [vmem:[#allocation11 + $0x1e4] ss:$24 sps:$4 sm:$0xff]   ;;  %v499_v11 = vld [vmem:[%s8611_s27 + $0x50] sm:$0xff]  ;;  %v502_v12 = vld [vmem:[%s8611_s27 + $0x68] sm:$0xff] }
  0xc5   : > { %v497_v10 = vld [vmem:[%s8611_s27 + $0x40] sm:$0xff]  ;;  %v504_v13 = vld [vmem:[%s8611_s27 + $0x78] sm:$0xff]  ;;  %v7400_v19 = vld [vmem:[#allocation11 + $0x1b0] ss:$24 sps:$4 sm:$0xff]   ;;  %p8241_p13 = pneg %p8240_p10 }
  0xc6   : > { %v7397_v14 = vld [vmem:[#allocation11 + $0x1e0] ss:$24 sps:$4 sm:$0xff]   ;;  %v8669_v18 = vpack.c.bf16 %v504_v13, %v502_v12  ;;  %v506_v23 = vld [vmem:[%s8611_s27 + $0x88] sm:$0xff]  ;;  %v507_v32 = vld [vmem:[%s8611_s27 + $0x90] sm:$0xff] }
  0xc7   : > { %1271 = vmatpush1.bf16.msra.mxu1 %v7328_v16  ;;  %1154 = vmatpush1.bf16.msra.mxu0 %v7370_v35  ;;  %v7398_v16 = vld [vmem:[#allocation11 + $0x1b4] ss:$24 sps:$4 sm:$0xff]   ;;  %v501_v21 = vld [vmem:[%s8611_s27 + $0x60] sm:$0xff]  ;;  %v508_v24 = vld [vmem:[%s8611_s27 + $0x98] sm:$0xff] }
  0xc8   : > { %1272 = vmatprep.subr.bf16.mxu1 %v7329_v17  ;;  %1155 = vmatprep.subr.bf16.mxu0 %v7371_v36  ;;  %v8667_v17 = vpack.c.bf16 %v499_v11, %v497_v10  ;;  %v8679_v28 = vpack.c.bf16 %v508_v24, %v506_v23  ;;  %v505_v31 = vld [vmem:[%s8611_s27 + $0x80] sm:$0xff]  ;;  %v7407_v35 = vld [vmem:[#allocation11 + $0x130] ss:$24 sps:$4 sm:$0xff]   ;;  %v7439_v11 = vld [vmem:[#allocation11 + $0x254] ss:$24 sps:$4 sm:$0xff]  }
  0xc9   : > { %v7412_v36 = vld [vmem:[#allocation11 + $0x104] ss:$24 sps:$4 sm:$0xff]   ;;  %v518_v53 = vld [vmem:[%s8611_s27 + $0xe8] sm:$0xff]  ;;  %v7434_v10 = vld [vmem:[#allocation11 + $0x280] ss:$24 sps:$4 sm:$0xff]  }
  0xca   : > { %v7419_v55 = vld [vmem:[#allocation11 + $0x70] ss:$24 sps:$4 sm:$0xff]   ;;  %v7424_v56 = vld [vmem:[#allocation11 + $0x44] ss:$24 sps:$4 sm:$0xff]  }
  0xcb   : > { %1273 = vmatpush1.bf16.msra.mxu1 %v7331_v20  ;;  %1156 = vmatpush1.bf16.msra.mxu0 %v7373_v39  ;;  %v7401_v20 = vld [vmem:[#allocation11 + $0x184] ss:$24 sps:$4 sm:$0xff]   ;;  %v7410_v39 = vld [vmem:[#allocation11 + $0x100] ss:$24 sps:$4 sm:$0xff]   ;;  %v7425_v1 = vld [vmem:[#allocation11 + $0x10] ss:$24 sps:$4 sm:$0xff]  }
  0xcc   : > { %1274 = vmatprep.subr.bf16.mxu1 %v7332_v22  ;;  %1157 = vmatprep.subr.bf16.mxu0 %v7374_v40  ;;  %v503_v22 = vld [vmem:[%s8611_s27 + $0x70] sm:$0xff]  ;;  %v517_v63 = vld [vmem:[%s8611_s27 + $0xe0] sm:$0xff] }
  0xcd   : > { %v8677_v27 = vpack.c.bf16 %v503_v22, %v501_v21  ;;  %v7415_v40 = vld [vmem:[#allocation11 + $0xd4] ss:$24 sps:$4 sm:$0xff]   ;;  %v7430_v2 = vld [vmem:[#allocation11 + $0x2e4] ss:$24 sps:$4 sm:$0xff]   ;;  %v7437_v12 = vld [vmem:[#allocation11 + $0x250] ss:$24 sps:$4 sm:$0xff]  }
  0xce   : > { %v7442_v13 = vld [vmem:[#allocation11 + $0x224] ss:$24 sps:$4 sm:$0xff]   ;;  %v7446_v21 = vld [vmem:[#allocation11 + $0x1c0] ss:$24 sps:$4 sm:$0xff]   ;;  %v7451_v22 = vld [vmem:[#allocation11 + $0x194] ss:$24 sps:$4 sm:$0xff]  }
  0xcf   : > { %1275 = vmatpush2.bf16.msra.mxu1 %v7334_v25  ;;  %1158 = vmatpush1.bf16.msra.mxu0 %v7376_v43  ;;  %v7403_v25 = vld [vmem:[#allocation11 + $0x180] ss:$24 sps:$4 sm:$0xff]   ;;  %v514_v43 = vld [vmem:[%s8611_s27 + $0xc8] sm:$0xff] }
  0xd0   : > { %1276 = vmatprep.subr.bf16.mxu1 %v7335_v26  ;;  %1159 = vmatprep.subr.bf16.mxu0 %v7377_v44  ;;  %v7406_v26 = vld [vmem:[#allocation11 + $0x164] ss:$24 sps:$4 sm:$0xff]   ;;  %v7449_v23 = vld [vmem:[#allocation11 + $0x190] ss:$24 sps:$4 sm:$0xff]  }
  0xd1   : > { %v516_v44 = vld [vmem:[%s8611_s27 + $0xd8] sm:$0xff] }
  0xd3   : > { %1277 = vmatpush2.bf16.msra.mxu1 %v7337_v29  ;;  %1160 = vmatpush1.bf16.msra.mxu0 %v7379_v47  ;;  %v7404_v29 = vld [vmem:[#allocation11 + $0x160] ss:$24 sps:$4 sm:$0xff]  }
  0xd4   : > { %1278 = vmatprep.subr.bf16.mxu1 %v7338_v30  ;;  %1161 = vmatprep.subr.bf16.mxu0 %v7380_v48  ;;  %v7409_v30 = vld [vmem:[#allocation11 + $0x134] ss:$24 sps:$4 sm:$0xff]   ;;  %v8703_v48 = vpack.c.bf16 %v516_v44, %v514_v43 }
  0xd7   : > { %1279 = vmatpush2.bf16.msra.mxu1 %v7340_v33  ;;  %1162 = vmatpush2.bf16.msra.mxu0 %v7382_v52  ;;  %v510_v33 = vld [vmem:[%s8611_s27 + $0xa8] sm:$0xff]  ;;  %v515_v52 = vld [vmem:[%s8611_s27 + $0xd0] sm:$0xff] }
  0xd8   : > { %1280 = vmatprep.subr.bf16.mxu1 %v7341_v34  ;;  %1163 = vmatprep.subr.bf16.mxu0 %v7383_v54  ;;  %v512_v34 = vld [vmem:[%s8611_s27 + $0xb8] sm:$0xff] }
  0xd9   : > { %v520_v54 = vld [vmem:[%s8611_s27 + $0xf8] sm:$0xff] }
  0xdb   : > { %1281 = vmatpush2.bf16.msra.mxu1 %v7343_v37  ;;  %1164 = vmatpush2.bf16.msra.mxu0 %v7385_v58  ;;  %v8689_v37 = vpack.c.bf16 %v507_v32, %v505_v31  ;;  %v8715_v58 = vpack.c.bf16 %v520_v54, %v518_v53 }
  0xdc   : > { %1282 = vmatprep.subr.bf16.mxu1 %v7344_v38  ;;  %1165 = vmatprep.subr.bf16.mxu0 %v7386_v60  ;;  %v8691_v38 = vpack.c.bf16 %v512_v34, %v510_v33  ;;  %v7422_v60 = vld [vmem:[#allocation11 + $0x40] ss:$24 sps:$4 sm:$0xff]  }
  0xdf   : > { %1283 = vmatpush2.bf16.msra.mxu1 %v7346_v41  ;;  %1166 = vmatpush2.bf16.msra.mxu0 %v7388_v62  ;;  %v509_v41 = vld [vmem:[%s8611_s27 + $0xa0] sm:$0xff]  ;;  %v7427_v62 = vld [vmem:[#allocation11 + $0x14] ss:$24 sps:$4 sm:$0xff]  }
  0xe0   : > { %1284 = vmatprep.subr.bf16.mxu1 %v7347_v42  ;;  %1167 = vmatprep.subr.bf16.mxu0 %v7389_v0  ;;  %v511_v42 = vld [vmem:[%s8611_s27 + $0xb0] sm:$0xff] }
  0xe1   : > { %v8701_v47 = vpack.c.bf16 %v511_v42, %v509_v41  ;;  %v519_v0 = vld [vmem:[%s8611_s27 + $0xf0] sm:$0xff] }
  0xe2   : > { %v535_v3 = vpack.c.bf16 %v519_v0, %v517_v63 }
  0xe3   : > { %1285 = vmatpush2.bf16.msra.mxu1 %v7349_v45  ;;  %1168 = vmatpush2.bf16.msra.mxu0 %v7391_v4  ;;  %v7413_v45 = vld [vmem:[#allocation11 + $0xd0] ss:$24 sps:$4 sm:$0xff]   ;;  %v7428_v4 = vld [vmem:[#allocation11 + $0x2e0] ss:$24 sps:$4 sm:$0xff]  }
  0xe4   : > { %1286 = vmatprep.subr.bf16.mxu1 %v7350_v46  ;;  %1169 = vmatprep.subr.bf16.mxu0 %v7392_v5  ;;  %v7418_v46 = vld [vmem:[#allocation11 + $0xa4] ss:$24 sps:$4 sm:$0xff]   ;;  %v7433_v5 = vld [vmem:[#allocation11 + $0x2b4] ss:$24 sps:$4 sm:$0xff]  }
  0xe7   : > { %1287 = vmatpush2.bf16.msra.mxu1 %v7352_v49  ;;  %1170 = vmatpush2.bf16.msra.mxu0 %v7394_v8  ;;  %v7416_v49 = vld [vmem:[#allocation11 + $0xa0] ss:$24 sps:$4 sm:$0xff]   ;;  %v7431_v8 = vld [vmem:[#allocation11 + $0x2b0] ss:$24 sps:$4 sm:$0xff]  }
  0xe8   : > { %1288 = vmatprep.subr.bf16.mxu1 %v7353_v50  ;;  %1171 = vmatprep.subr.bf16.mxu0 %v7395_v9  ;;  %v7421_v50 = vld [vmem:[#allocation11 + $0x74] ss:$24 sps:$4 sm:$0xff]   ;;  %v7436_v9 = vld [vmem:[#allocation11 + $0x284] ss:$24 sps:$4 sm:$0xff]  }
  0xeb   : > { %1289 = vmatpush2.bf16.msra.mxu1 %v7355_v51  ;;  %1172 = vmatpush2.bf16.msra.mxu0 %v7397_v14  ;;  %v513_v51 = vld [vmem:[%s8611_s27 + $0xc0] sm:$0xff] }
  0xec   : > { %1173 = vmatprep.subr.bf16.mxu0 %v7398_v16  ;;  %v8713_v57 = vpack.c.bf16 %v515_v52, %v513_v51  ;;  %v7440_v14 = vld [vmem:[#allocation11 + $0x220] ss:$24 sps:$4 sm:$0xff]   ;;  %v7445_v16 = vld [vmem:[#allocation11 + $0x1f4] ss:$24 sps:$4 sm:$0xff]  }
  0xee   : > { %1291 = vmatmul.mubr.bf16.vlgmr.msra.gmra.mxu1 %v8647_v59 }
  0xef   : > { %1300 = vmatprep.mubr.bf16.mxu1 %v8649_v61  ;;  %1174 = vmatpush2.bf16.msra.mxu0 %v7400_v19  ;;  %v7443_v19 = vld [vmem:[#allocation11 + $0x1f0] ss:$24 sps:$4 sm:$0xff]  }
  0xf0   : > { %1175 = vmatprep.subr.bf16.mxu0 %v7401_v20  ;;  %v7448_v20 = vld [vmem:[#allocation11 + $0x1c4] ss:$24 sps:$4 sm:$0xff]  }
  0xf3   : > { %1176 = vmatpush2.bf16.msra.mxu0 %v7403_v25 }
  0xf4   : > { %1371 = vmatprep.subr.bf16.mxu0 %v7406_v26 }
  0xf6   : > { %1301 = vmatmul.mubr.bf16.gmra.mxu1 %v8657_v6  ;;  %1178 = vmatmul.mubr.bf16.vlgmr.msra.gmra.mxu0 %v8647_v59 }
  0xf7   : > { %1310 = vmatprep.mubr.bf16.mxu1 %v8659_v7  ;;  %1187 = vmatprep.mubr.bf16.mxu0 %v8649_v61 }
  0xf8   : > { %1372 = vmatpush1.bf16.msra.mxu0 %v7404_v29 }
  0xf9   : > { %1373 = vmatprep.subr.bf16.mxu0 %v7409_v30 }
  0xfc   : > { %1374 = vmatpush1.bf16.msra.mxu0 %v7407_v35 }
  0xfd   : > { %1375 = vmatprep.subr.bf16.mxu0 %v7412_v36 }
  0xfe   : > { %1311 = vmatmul.mubr.bf16.gmra.mxu1 %v8667_v17  ;;  %1188 = vmatmul.mubr.bf16.gmra.mxu0 %v8657_v6 }
  0xff   : > { %1320 = vmatprep.mubr.bf16.mxu1 %v8669_v18  ;;  %1197 = vmatprep.mubr.bf16.mxu0 %v8659_v7 }
 0x100   : > { %1376 = vmatpush1.bf16.msra.mxu0 %v7410_v39 }
 0x101   : > { %1377 = vmatprep.subr.bf16.mxu0 %v7415_v40 }
 0x104   : > { %1378 = vmatpush1.bf16.msra.mxu0 %v7413_v45 }
 0x105   : > { %1379 = vmatprep.subr.bf16.mxu0 %v7418_v46 }
 0x106   : > { %1321 = vmatmul.mubr.bf16.gmra.mxu1 %v8677_v27  ;;  %1198 = vmatmul.mubr.bf16.gmra.mxu0 %v8667_v17 }
 0x107   : > { %1330 = vmatprep.mubr.bf16.mxu1 %v8679_v28  ;;  %1207 = vmatprep.mubr.bf16.mxu0 %v8669_v18 }
 0x108   : > { %1380 = vmatpush1.bf16.msra.mxu0 %v7416_v49 }
 0x109   : > { %1381 = vmatprep.subr.bf16.mxu0 %v7421_v50 }
 0x10c   : > { %1382 = vmatpush1.bf16.msra.mxu0 %v7419_v55 }
 0x10d   : > { %1383 = vmatprep.subr.bf16.mxu0 %v7424_v56 }
 0x10e   : > { %1331 = vmatmul.mubr.bf16.gmra.mxu1 %v8689_v37  ;;  %1208 = vmatmul.mubr.bf16.gmra.mxu0 %v8677_v27 }
 0x10f   : > { %1340 = vmatprep.mubr.bf16.mxu1 %v8691_v38  ;;  %1217 = vmatprep.mubr.bf16.mxu0 %v8679_v28 }
 0x110   : > { %1384 = vmatpush1.bf16.msra.mxu0 %v7422_v60 }
 0x111   : > { %1385 = vmatprep.subr.bf16.mxu0 %v7427_v62 }
 0x114   : > { %1386 = vmatpush1.bf16.msra.mxu0 %v7425_v1 }
 0x115   : > { %1387 = vmatprep.subr.bf16.mxu0 %v7430_v2 }
 0x116   : > { %1341 = vmatmul.mubr.bf16.gmra.mxu1 %v8701_v47  ;;  %1218 = vmatmul.mubr.bf16.gmra.mxu0 %v8689_v37 }
 0x117   : > { %1350 = vmatprep.mubr.bf16.mxu1 %v8703_v48  ;;  %1227 = vmatprep.mubr.bf16.mxu0 %v8691_v38 }
 0x118   : > { %1388 = vmatpush2.bf16.msra.mxu0 %v7428_v4 }
 0x119   : > { %1389 = vmatprep.subr.bf16.mxu0 %v7433_v5 }
 0x11c   : > { %1390 = vmatpush2.bf16.msra.mxu0 %v7431_v8 }
 0x11d   : > { %1391 = vmatprep.subr.bf16.mxu0 %v7436_v9 }
 0x11e   : > { %1351 = vmatmul.mubr.bf16.gmra.mxu1 %v8713_v57  ;;  %1228 = vmatmul.mubr.bf16.gmra.mxu0 %v8701_v47 }
 0x11f   : > { %1360 = vmatprep.mubr.bf16.mxu1 %v8715_v58  ;;  %1237 = vmatprep.mubr.bf16.mxu0 %v8703_v48 }
 0x120   : > { %1392 = vmatpush2.bf16.msra.mxu0 %v7434_v10 }
 0x121   : > { %1393 = vmatprep.subr.bf16.mxu0 %v7439_v11 }
 0x124   : > { %1394 = vmatpush2.bf16.msra.mxu0 %v7437_v12 }
 0x125   : > { %1395 = vmatprep.subr.bf16.mxu0 %v7442_v13 }
 0x126   : > { %1361 = vmatmul.mubr.bf16.gmra.mxu1 %v535_v3  ;;  %1238 = vmatmul.mubr.bf16.gmra.mxu0 %v8713_v57 }
 0x127   : > { %1247 = vmatprep.mubr.bf16.mxu0 %v8715_v58 }
 0x128   : > { %1396 = vmatpush2.bf16.msra.mxu0 %v7440_v14 }
 0x129   : > { %1397 = vmatprep.subr.bf16.mxu0 %v7445_v16 }
 0x12c   : > { %1398 = vmatpush2.bf16.msra.mxu0 %v7443_v19 }
 0x12d   : > { %1399 = vmatprep.subr.bf16.mxu0 %v7448_v20 }
 0x12e   : > { %1248 = vmatmul.mubr.bf16.gmra.mxu0 %v535_v3 }
 0x12f   : > { %1403 = vmatprep.mubr.bf16.mxu0 %v8639_v15  ;;  %v635_v15 = vlaneseq }
 0x130   : > { %1400 = vmatpush2.bf16.msra.mxu0 %v7446_v21 }
 0x131   : > { %1401 = vmatprep.subr.bf16.mxu0 %v7451_v22 }
 0x134   : > { %1402 = vmatpush2.bf16.msra.mxu0 %v7449_v23 }
 0x137   : > { %1404 = vmatmul.mubr.bf16.vlgmr.msra.gmra.mxu0 %v8647_v59  ;;  %v8744_v59 = vshrl.u32 %v635_v15, 7 }
 0x138   : > { %1413 = vmatprep.mubr.bf16.mxu0 %v8649_v61 }
 0x139   : > { %v10495_v61 = vsub.s32 2, %v8744_v59  ;;  %v8769_v46 = vsub.s32 0, %v8744_v59  ;;  %v8774_v50 = vsub.s32 1, %v8744_v59 }
 0x13f   : > { %1414 = vmatmul.mubr.bf16.gmra.mxu0 %v8657_v6  ;;  %v8747_v6 = vld [vmem:[#allocation12] sm:$0x3f] }
 0x140   : > { %1423 = vmatprep.mubr.bf16.mxu0 %v8659_v7  ;;  %v10496_v7 = vsub.s32 3, %v8744_v59  ;;  %v8780_v55 = vrot.slane %v8747_v6, %v8769_v46 }
 0x142   : > { %v8758_v25 = vrot.slane %v8747_v6, %v10496_v7  ;;  %v9662_v7 = vld [vmem:[#allocation17 + $0x134] ss:$8 sps:$4 sm:$0xff]  }
 0x147   : > { %1424 = vmatmul.mubr.bf16.gmra.mxu0 %v8667_v17 }
 0x148   : > { %1433 = vmatprep.mubr.bf16.mxu0 %v8669_v18  ;;  %v8753_v18 = vrot.slane %v8747_v6, %v10495_v61 }
 0x14f   : > { %1434 = vmatmul.mubr.bf16.gmra.mxu0 %v8677_v27 }
 0x150   : > { %1443 = vmatprep.mubr.bf16.mxu0 %v8679_v28 }
 0x157   : > { %1444 = vmatmul.mubr.bf16.gmra.mxu0 %v8689_v37 }
 0x158   : > { %1453 = vmatprep.mubr.bf16.mxu0 %v8691_v38 }
 0x15f   : > { %1454 = vmatmul.mubr.bf16.gmra.mxu0 %v8701_v47 }
 0x160   : > { %1463 = vmatprep.mubr.bf16.mxu0 %v8703_v48 }
 0x167   : > { %1464 = vmatmul.mubr.bf16.gmra.mxu0 %v8713_v57 }
 0x168   : > { %1473 = vmatprep.mubr.bf16.mxu0 %v8715_v58  ;;  %v8784_v58 = vrot.slane %v8747_v6, %v8774_v50 }
 0x16f   : > { %1474 = vmatmul.mubr.bf16.gmra.mxu0 %v535_v3 }
 0x1ae   : > { %v1292_v17 = vpop.f32.mrf.mxu1 }
 0x1af   : > { %v1293_v27 = vadd.f32 %v1292_v17, %v8753_v18 }
 0x1b0   : > { %v1294_v24 = vpop.f32.mrf.mxu1 }
 0x1b1   : > { %v1295_v30 = vadd.f32 %v1294_v24, %v8758_v25 }
 0x1b2   : > { %v1296_v26 = vpop.f32.mrf.mxu1 }
 0x1b3   : > { %v1297_v28 = vadd.f32 %v1296_v26, %v8753_v18 }
 0x1b4   : > { %v1298_v29 = vpop.f32.mrf.mxu1 }
 0x1b5   : > { %v6734_v31 = vpack.c.bf16 %v1297_v28, %v1293_v27  ;;  %v1299_v32 = vadd.f32 %v1298_v29, %v8758_v25 }
 0x1b6   : > { %v1302_v33 = vpop.f32.mrf.mxu1  ;;  %v1179_v62 = vpop.f32.mrf.mxu0 }
 0x1b7   : > { %6735 = vst [vmem:[#allocation3] sm:$0xff] %v6734_v31   ;;  %v6854_v34 = vpack.c.bf16 %v1299_v32, %v1295_v30  ;;  %v1303_v37 = vadd.f32 %v1302_v33, %v8753_v18  ;;  %v1180_v63 = vadd.f32 %v1179_v62, %v8780_v55 }
 0x1b8   : > { %v1304_v35 = vpop.f32.mrf.mxu1  ;;  %v1181_v1 = vpop.f32.mrf.mxu0 }
 0x1b9   : > { %6855 = vst [vmem:[#allocation3 + $0x40] sm:$0xff] %v6854_v34   ;;  %v1305_v40 = vadd.f32 %v1304_v35, %v8758_v25  ;;  %v1182_v4 = vadd.f32 %v1181_v1, %v8784_v58  ;;  %v1484_v12 = vmul.f32 0.088388346, %v1180_v63 }
 0x1ba   : > { %v1306_v36 = vpop.f32.mrf.mxu1  ;;  %v1183_v9 = vpop.f32.mrf.mxu0 }
 0x1bb   : > { %v1307_v38 = vadd.f32 %v1306_v36, %v8753_v18  ;;  %v1184_v13 = vadd.f32 %v1183_v9, %v8780_v55  ;;  %v1740_v20 = vmul.f32 0.088388346, %v1182_v4 }
 0x1bc   : > { %v1308_v39 = vpop.f32.mrf.mxu1  ;;  %v1185_v16 = vpop.f32.mrf.mxu0 }
 0x1bd   : > { %v6739_v41 = vpack.c.bf16 %v1307_v38, %v1303_v37  ;;  %v1309_v42 = vadd.f32 %v1308_v39, %v8758_v25  ;;  %v1485_v21 = vmul.f32 0.088388346, %v1184_v13  ;;  %v1186_v22 = vadd.f32 %v1185_v16, %v8784_v58 }
 0x1be   : > { %v1312_v43 = vpop.f32.mrf.mxu1  ;;  %v1189_v15 = vpop.f32.mrf.mxu0 }
 0x1bf   : > { %6938 = vst [vmem:[#allocation3 + $0x8] sm:$0xff] %v6739_v41   ;;  %v6859_v44 = vpack.c.bf16 %v1309_v42, %v1305_v40  ;;  %v1313_v48 = vadd.f32 %v1312_v43, %v8753_v18  ;;  %v6694_v17 = vpack.c.bf16 %v1485_v21, %v1484_v12  ;;  %v1741_v24 = vmul.f32 0.088388346, %v1186_v22 }
 0x1c0   : > { %v1314_v45 = vpop.f32.mrf.mxu1  ;;  %v1190_v26 = vadd.f32 %v1189_v15, %v8780_v55  ;;  %v1191_v28 = vpop.f32.mrf.mxu0 }
 0x1c1   : > { %6959 = vst [vmem:[#allocation3 + $0x48] sm:$0xff] %v6859_v44   ;;  %v1315_v52 = vadd.f32 %v1314_v45, %v8758_v25  ;;  %6695 = vst [vmem:[#allocation2] sm:$0xff] %v6694_v17   ;;  %v6814_v31 = vpack.c.bf16 %v1741_v24, %v1740_v20  ;;  %v1192_v32 = vadd.f32 %v1191_v28, %v8784_v58 }
 0x1c2   : > { %v1316_v47 = vpop.f32.mrf.mxu1  ;;  %v1193_v35 = vpop.f32.mrf.mxu0  ;;  %v1486_v38 = vmul.f32 0.088388346, %v1190_v26 }
 0x1c3   : > { %v1317_v49 = vadd.f32 %v1316_v47, %v8753_v18  ;;  %6815 = vst [vmem:[#allocation2 + $0x40] sm:$0xff] %v6814_v31   ;;  %v1194_v39 = vadd.f32 %v1193_v35, %v8780_v55  ;;  %v1742_v43 = vmul.f32 0.088388346, %v1192_v32 }
 0x1c4   : > { %v1318_v51 = vpop.f32.mrf.mxu1  ;;  %v1195_v41 = vpop.f32.mrf.mxu0 }
 0x1c5   : > { %v6744_v53 = vpack.c.bf16 %v1317_v49, %v1313_v48  ;;  %v1319_v54 = vadd.f32 %v1318_v51, %v8758_v25  ;;  %v1487_v44 = vmul.f32 0.088388346, %v1194_v39  ;;  %v1196_v45 = vadd.f32 %v1195_v41, %v8784_v58 }
 0x1c6   : > { %v1322_v56 = vpop.f32.mrf.mxu1  ;;  %v1199_v48 = vpop.f32.mrf.mxu0 }
 0x1c7   : > { %6939 = vst [vmem:[#allocation3 + $0x10] sm:$0xff] %v6744_v53   ;;  %v6864_v57 = vpack.c.bf16 %v1319_v54, %v1315_v52  ;;  %v1323_v2 = vadd.f32 %v1322_v56, %v8753_v18  ;;  %v6699_v49 = vpack.c.bf16 %v1487_v44, %v1486_v38  ;;  %v1743_v51 = vmul.f32 0.088388346, %v1196_v45 }
 0x1c8   : > { %v1324_v60 = vpop.f32.mrf.mxu1  ;;  %v1200_v52 = vadd.f32 %v1199_v48, %v8780_v55  ;;  %v1201_v54 = vpop.f32.mrf.mxu0  ;;  %v7462_v56 = vld [vmem:[#allocation2] sm:$0xff]  }
 0x1c9   : > { %6960 = vst [vmem:[#allocation3 + $0x50] sm:$0xff] %v6864_v57   ;;  %v1325_v5 = vadd.f32 %v1324_v60, %v8758_v25  ;;  %6931 = vst [vmem:[#allocation2 + $0x8] sm:$0xff] %v6699_v49   ;;  %v6819_v62 = vpack.c.bf16 %v1743_v51, %v1742_v43  ;;  %v1202_v63 = vadd.f32 %v1201_v54, %v8784_v58  ;;  %7053 = vmatprep.mubr.bf16.mxu1 %v7462_v56 }
 0x1ca   : > { %v1326_v0 = vpop.f32.mrf.mxu1 }
 0x1cb   : > { %v1327_v3 = vadd.f32 %v1326_v0, %v8753_v18  ;;  %6952 = vst [vmem:[#allocation2 + $0x48] sm:$0xff] %v6819_v62   ;;  %v1744_v13 = vmul.f32 0.088388346, %v1202_v63 }
 0x1cc   : > { %v1328_v8 = vpop.f32.mrf.mxu1 }
 0x1cd   : > { %v6749_v10 = vpack.c.bf16 %v1327_v3, %v1323_v2  ;;  %v1329_v11 = vadd.f32 %v1328_v8, %v8758_v25  ;;  %v1203_v2 = vpop.f32.mrf.mxu0  ;;  %v7463_v3 = vld [vmem:[#allocation2 + $0x40] sm:$0xff]   ;;  %v1488_v8 = vmul.f32 0.088388346, %v1200_v52 }
 0x1ce   : > { %v1332_v14 = vpop.f32.mrf.mxu1  ;;  %v1204_v9 = vadd.f32 %v1203_v2, %v8780_v55  ;;  %7085 = vmatprep.mubr.bf16.mxu0 %v7463_v3 }
 0x1cf   : > { %6940 = vst [vmem:[#allocation3 + $0x18] sm:$0xff] %v6749_v10   ;;  %v6869_v19 = vpack.c.bf16 %v1329_v11, %v1325_v5  ;;  %v1333_v29 = vadd.f32 %v1332_v14, %v8753_v18  ;;  %v1205_v11 = vpop.f32.mrf.mxu0 }
 0x1d0   : > { %v1334_v23 = vpop.f32.mrf.mxu1  ;;  %v1489_v14 = vmul.f32 0.088388346, %v1204_v9  ;;  %v1206_v16 = vadd.f32 %v1205_v11, %v8784_v58 }
 0x1d1   : > { %6961 = vst [vmem:[#allocation3 + $0x58] sm:$0xff] %v6869_v19   ;;  %v1335_v33 = vadd.f32 %v1334_v23, %v8758_v25  ;;  %v1209_v20 = vpop.f32.mrf.mxu0 }
 0x1d2   : > { %v1336_v27 = vpop.f32.mrf.mxu1  ;;  %v6704_v21 = vpack.c.bf16 %v1489_v14, %v1488_v8  ;;  %v1745_v22 = vmul.f32 0.088388346, %v1206_v16  ;;  %v1210_v23 = vadd.f32 %v1209_v20, %v8780_v55 }
 0x1d3   : > { %v1337_v30 = vadd.f32 %v1336_v27, %v8753_v18  ;;  %v1211_v17 = vpop.f32.mrf.mxu0 }
 0x1d4   : > { %v1338_v34 = vpop.f32.mrf.mxu1  ;;  %6932 = vst [vmem:[#allocation2 + $0x10] sm:$0xff] %v6704_v21   ;;  %v6824_v27 = vpack.c.bf16 %v1745_v22, %v1744_v13  ;;  %v1212_v28 = vadd.f32 %v1211_v17, %v8784_v58 }
 0x1d5   : > { %v6754_v36 = vpack.c.bf16 %v1337_v30, %v1333_v29  ;;  %v1339_v37 = vadd.f32 %v1338_v34, %v8758_v25  ;;  %v1213_v31 = vpop.f32.mrf.mxu0  ;;  %v1490_v34 = vmul.f32 0.088388346, %v1210_v23 }
 0x1d6   : > { %v1342_v40 = vpop.f32.mrf.mxu1  ;;  %6953 = vst [vmem:[#allocation2 + $0x50] sm:$0xff] %v6824_v27   ;;  %v1214_v35 = vadd.f32 %v1213_v31, %v8780_v55  ;;  %v1746_v39 = vmul.f32 0.088388346, %v1212_v28 }
 0x1d7   : > { %6941 = vst [vmem:[#allocation3 + $0x20] sm:$0xff] %v6754_v36   ;;  %v6874_v42 = vpack.c.bf16 %v1339_v37, %v1335_v33  ;;  %v1343_v57 = vadd.f32 %v1342_v40, %v8753_v18  ;;  %v1215_v37 = vpop.f32.mrf.mxu0 }
 0x1d8   : > { %v1344_v47 = vpop.f32.mrf.mxu1  ;;  %v1491_v40 = vmul.f32 0.088388346, %v1214_v35  ;;  %v1216_v41 = vadd.f32 %v1215_v37, %v8784_v58 }
 0x1d9   : > { %6962 = vst [vmem:[#allocation3 + $0x60] sm:$0xff] %v6874_v42   ;;  %v1345_v0 = vadd.f32 %v1344_v47, %v8758_v25  ;;  %v1219_v43 = vpop.f32.mrf.mxu0 }
 0x1da   : > { %v1346_v53 = vpop.f32.mrf.mxu1  ;;  %v6709_v44 = vpack.c.bf16 %v1491_v40, %v1490_v34  ;;  %v1747_v45 = vmul.f32 0.088388346, %v1216_v41  ;;  %v1220_v47 = vadd.f32 %v1219_v43, %v8780_v55 }
 0x1db   : > { %v1347_v60 = vadd.f32 %v1346_v53, %v8753_v18  ;;  %v1221_v49 = vpop.f32.mrf.mxu0 }
 0x1dc   : > { %v1348_v1 = vpop.f32.mrf.mxu1  ;;  %6933 = vst [vmem:[#allocation2 + $0x18] sm:$0xff] %v6709_v44   ;;  %v6829_v53 = vpack.c.bf16 %v1747_v45, %v1746_v39  ;;  %v1222_v54 = vadd.f32 %v1221_v49, %v8784_v58 }
 0x1dd   : > { %v6759_v4 = vpack.c.bf16 %v1347_v60, %v1343_v57  ;;  %v1349_v5 = vadd.f32 %v1348_v1, %v8758_v25  ;;  %v1223_v60 = vpop.f32.mrf.mxu0 }
 0x1de   : > { %v1352_v10 = vpop.f32.mrf.mxu1  ;;  %6954 = vst [vmem:[#allocation2 + $0x58] sm:$0xff] %v6829_v53   ;;  %v1224_v1 = vadd.f32 %v1223_v60, %v8780_v55 }
 0x1df   : > { %6942 = vst [vmem:[#allocation3 + $0x28] sm:$0xff] %v6759_v4   ;;  %v6879_v12 = vpack.c.bf16 %v1349_v5, %v1345_v0  ;;  %v1353_v24 = vadd.f32 %v1352_v10, %v8753_v18  ;;  %v1492_v0 = vmul.f32 0.088388346, %v1220_v47  ;;  %v1225_v2 = vpop.f32.mrf.mxu0  ;;  %v1748_v4 = vmul.f32 0.088388346, %v1222_v54 }
 0x1e0   : > { %v1354_v19 = vpop.f32.mrf.mxu1  ;;  %v1226_v5 = vadd.f32 %v1225_v2, %v8784_v58 }
 0x1e1   : > { %6963 = vst [vmem:[#allocation3 + $0x68] sm:$0xff] %v6879_v12   ;;  %v1355_v29 = vadd.f32 %v1354_v19, %v8758_v25  ;;  %v1229_v8 = vpop.f32.mrf.mxu0 }
 0x1e2   : > { %v1356_v15 = vpop.f32.mrf.mxu1  ;;  %v1749_v10 = vmul.f32 0.088388346, %v1226_v5  ;;  %v1230_v11 = vadd.f32 %v1229_v8, %v8780_v55 }
 0x1e3   : > { %v1357_v26 = vadd.f32 %v1356_v15, %v8753_v18  ;;  %v1231_v12 = vpop.f32.mrf.mxu0 }
 0x1e4   : > { %v1358_v30 = vpop.f32.mrf.mxu1  ;;  %v1232_v13 = vadd.f32 %v1231_v12, %v8784_v58  ;;  %v1494_v16 = vmul.f32 0.088388346, %v1230_v11 }
 0x1e5   : > { %v6764_v32 = vpack.c.bf16 %v1357_v26, %v1353_v24  ;;  %v1359_v33 = vadd.f32 %v1358_v30, %v8758_v25  ;;  %v1233_v14 = vpop.f32.mrf.mxu0 }
 0x1e6   : > { %v1362_v36 = vpop.f32.mrf.mxu1  ;;  %v1234_v19 = vadd.f32 %v1233_v14, %v8780_v55  ;;  %v1750_v23 = vmul.f32 0.088388346, %v1232_v13  ;;  %v7456_v41 = vld [vmem:[#allocation3 + $0x28] sm:$0xff]   ;;  %v7460_v14 = vld [vmem:[#allocation3 + $0x18] sm:$0xff]  }
 0x1e7   : > { %6943 = vst [vmem:[#allocation3 + $0x30] sm:$0xff] %v6764_v32   ;;  %v6884_v38 = vpack.c.bf16 %v1359_v33, %v1355_v29  ;;  %v1363_v51 = vadd.f32 %v1362_v36, %v8753_v18  ;;  %v1235_v21 = vpop.f32.mrf.mxu0 }
 0x1e8   : > { %v1364_v42 = vpop.f32.mrf.mxu1  ;;  %v1495_v15 = vmul.f32 0.088388346, %v1234_v19  ;;  %v1236_v17 = vadd.f32 %v1235_v21, %v8784_v58  ;;  %v7457_v47 = vld [vmem:[#allocation3 + $0x68] sm:$0xff]  }
 0x1e9   : > { %6964 = vst [vmem:[#allocation3 + $0x70] sm:$0xff] %v6884_v38   ;;  %v1365_v56 = vadd.f32 %v1364_v42, %v8758_v25  ;;  %v1239_v26 = vpop.f32.mrf.mxu0 }
 0x1ea   : > { %v1366_v48 = vpop.f32.mrf.mxu1  ;;  %v6719_v27 = vpack.c.bf16 %v1495_v15, %v1494_v16  ;;  %v1751_v28 = vmul.f32 0.088388346, %v1236_v17  ;;  %v1240_v29 = vadd.f32 %v1239_v26, %v8780_v55 }
 0x1eb   : > { %v1367_v52 = vadd.f32 %v1366_v48, %v8753_v18  ;;  %v1493_v18 = vmul.f32 0.088388346, %v1224_v1  ;;  %v1241_v31 = vpop.f32.mrf.mxu0  ;;  %v7458_v1 = vld [vmem:[#allocation3 + $0x20] sm:$0xff]  }
 0x1ec   : > { %v1368_v57 = vpop.f32.mrf.mxu1  ;;  %6935 = vst [vmem:[#allocation2 + $0x28] sm:$0xff] %v6719_v27   ;;  %v6839_v32 = vpack.c.bf16 %v1751_v28, %v1750_v23  ;;  %v1242_v33 = vadd.f32 %v1241_v31, %v8784_v58  ;;  %v1496_v35 = vmul.f32 0.088388346, %v1240_v29  ;;  %v7464_v28 = vld [vmem:[#allocation3 + $0x10] sm:$0xff]  }
 0x1ed   : > { %v6769_v62 = vpack.c.bf16 %v1367_v52, %v1363_v51  ;;  %v1369_v63 = vadd.f32 %v1368_v57, %v8758_v25  ;;  %v6714_v9 = vpack.c.bf16 %v1493_v18, %v1492_v0  ;;  %v6834_v25 = vpack.c.bf16 %v1749_v10, %v1748_v4  ;;  %v1243_v34 = vpop.f32.mrf.mxu0  ;;  %v7465_v31 = vld [vmem:[#allocation3 + $0x50] sm:$0xff]  }
 0x1ee   : > { %v7453_v22 = vld [vmem:[#allocation3 + $0x30] sm:$0xff]   ;;  %6956 = vst [vmem:[#allocation2 + $0x68] sm:$0xff] %v6839_v32   ;;  %v1244_v36 = vadd.f32 %v1243_v34, %v8780_v55  ;;  %v1752_v38 = vmul.f32 0.088388346, %v1242_v33  ;;  %v657_v57 = vsub.s32 5, %v8744_v59 }
 0x1ef   : > { %6944 = vst [vmem:[#allocation3 + $0x38] sm:$0xff] %v6769_v62   ;;  %v6889_v3 = vpack.c.bf16 %v1369_v63, %v1365_v56  ;;  %6934 = vst [vmem:[#allocation2 + $0x20] sm:$0xff] %v6714_v9   ;;  %v1245_v37 = vpop.f32.mrf.mxu0  ;;  %v653_v56 = vsub.s32 4, %v8744_v59 }
 0x1f0   : > { %6955 = vst [vmem:[#allocation2 + $0x60] sm:$0xff] %v6834_v25   ;;  %v7455_v30 = vld [vmem:[#allocation3 + $0x70] sm:$0xff]   ;;  %v1497_v39 = vmul.f32 0.088388346, %v1244_v36  ;;  %v1246_v40 = vadd.f32 %v1245_v37, %v8784_v58  ;;  %v8844_v5 = vrot.slane %v8747_v6, %v657_v57 }
 0x1f1   : > { %6965 = vst [vmem:[#allocation3 + $0x78] sm:$0xff] %v6889_v3   ;;  %v1249_v42 = vpop.f32.mrf.mxu0  ;;  %v8841_v18 = vrot.slane %v8747_v6, %v653_v56 }
 0x1f2   : > { %v6724_v43 = vpack.c.bf16 %v1497_v39, %v1496_v35  ;;  %v1753_v44 = vmul.f32 0.088388346, %v1246_v40  ;;  %v1250_v45 = vadd.f32 %v1249_v42, %v8780_v55  ;;  %v7466_v40 = vld [vmem:[#allocation3 + $0x8] sm:$0xff]  }
 0x1f3   : > { %v1251_v48 = vpop.f32.mrf.mxu0 }
 0x1f4   : > { %6936 = vst [vmem:[#allocation2 + $0x30] sm:$0xff] %v6724_v43   ;;  %v6844_v49 = vpack.c.bf16 %v1753_v44, %v1752_v38  ;;  %v1252_v51 = vadd.f32 %v1251_v48, %v8784_v58  ;;  %v1498_v53 = vmul.f32 0.088388346, %v1250_v45  ;;  %v7467_v43 = vld [vmem:[#allocation3 + $0x48] sm:$0xff]  }
 0x1f5   : > { %v1253_v52 = vpop.f32.mrf.mxu0 }
 0x1f6   : > { %v7452_v20 = vld [vmem:[#allocation3 + $0x38] sm:$0xff]   ;;  %6957 = vst [vmem:[#allocation2 + $0x70] sm:$0xff] %v6844_v49   ;;  %v1254_v54 = vadd.f32 %v1253_v52, %v8780_v55  ;;  %v1754_v62 = vmul.f32 0.088388346, %v1252_v51  ;;  %v7459_v55 = vld [vmem:[#allocation3 + $0x60] sm:$0xff]  }
 0x1f7   : > { %7037 = vmatprep.subr.bf16.mxu1 %v7452_v20  ;;  %v1255_v60 = vpop.f32.mrf.mxu0 }
 0x1f8   : > { %v7454_v24 = vld [vmem:[#allocation3 + $0x78] sm:$0xff]   ;;  %7038 = vmatpush3.bf16.xpose.msra.mxu1 %v7452_v20  ;;  %v1499_v63 = vmul.f32 0.088388346, %v1254_v54  ;;  %v1256_v0 = vadd.f32 %v1255_v60, %v8784_v58  ;;  %v7468_v54 = vld [vmem:[#allocation3] sm:$0xff]  }
 0x1f9   : > { %7039 = vmatprep.subr.bf16.mxu1 %v7453_v22  ;;  %7069 = vmatprep.subr.bf16.mxu0 %v7454_v24  ;;  %v1405_v2 = vpop.f32.mrf.mxu0  ;;  %v7461_v20 = vld [vmem:[#allocation3 + $0x58] sm:$0xff]   ;;  %v7469_v60 = vld [vmem:[#allocation3 + $0x40] sm:$0xff]  }
 0x1fa   : > { %7070 = vmatpush3.bf16.xpose.msra.mxu0 %v7454_v24  ;;  %v6729_v3 = vpack.c.bf16 %v1499_v63, %v1498_v53  ;;  %v1755_v4 = vmul.f32 0.088388346, %v1256_v0  ;;  %v1406_v10 = vadd.f32 %v1405_v2, %v8841_v18 }
 0x1fb   : > { %7071 = vmatprep.subr.bf16.mxu0 %v7455_v30  ;;  %v1407_v8 = vpop.f32.mrf.mxu0 }
 0x1fc   : > { %6937 = vst [vmem:[#allocation2 + $0x38] sm:$0xff] %v6729_v3   ;;  %v6849_v9 = vpack.c.bf16 %v1755_v4, %v1754_v62  ;;  %v1408_v11 = vadd.f32 %v1407_v8, %v8844_v5 }
 0x1fd   : > { %v1409_v58 = vpop.f32.mrf.mxu0 }
 0x1fe   : > { %6958 = vst [vmem:[#allocation2 + $0x78] sm:$0xff] %v6849_v9   ;;  %v1410_v12 = vadd.f32 %v1409_v58, %v8841_v18 }
 0x1ff   : > { %v1411_v25 = vpop.f32.mrf.mxu0 }
 0x200   : > { %7040 = vmatpush3.bf16.xpose.msra.mxu1 %v7453_v22  ;;  %v6774_v13 = vpack.c.bf16 %v1410_v12, %v1406_v10  ;;  %v1412_v6 = vadd.f32 %v1411_v25, %v8844_v5 }
 0x201   : > { %7041 = vmatprep.subr.bf16.mxu1 %v7456_v41  ;;  %v1415_v16 = vpop.f32.mrf.mxu0 }
 0x202   : > { %7072 = vmatpush3.bf16.xpose.msra.mxu0 %v7455_v30  ;;  %6775 = vst [vmem:[#allocation4] sm:$0xff] %v6774_v13   ;;  %v6894_v19 = vpack.c.bf16 %v1412_v6, %v1408_v11  ;;  %v1416_v22 = vadd.f32 %v1415_v16, %v8841_v18  ;;  %v7470_v13 = vld [vmem:[#allocation2 + $0x8] sm:$0xff]  }
 0x203   : > { %7073 = vmatprep.subr.bf16.mxu0 %v7457_v47  ;;  %v1417_v21 = vpop.f32.mrf.mxu0 }
 0x204   : > { %6895 = vst [vmem:[#allocation4 + $0x40] sm:$0xff] %v6894_v19   ;;  %v1418_v15 = vadd.f32 %v1417_v21, %v8844_v5 }
 0x205   : > { %v1419_v23 = vpop.f32.mrf.mxu0 }
 0x206   : > { %v1420_v17 = vadd.f32 %v1419_v23, %v8841_v18 }
 0x207   : > { %v1421_v24 = vpop.f32.mrf.mxu0 }
 0x208   : > { %7042 = vmatpush3.bf16.xpose.msra.mxu1 %v7456_v41  ;;  %v6779_v26 = vpack.c.bf16 %v1420_v17, %v1416_v22  ;;  %v1422_v27 = vadd.f32 %v1421_v24, %v8844_v5  ;;  %v7473_v22 = vld [vmem:[#allocation2 + $0x50] sm:$0xff]  }
 0x209   : > { %7043 = vmatprep.subr.bf16.mxu1 %v7458_v1  ;;  %v1425_v29 = vpop.f32.mrf.mxu0 }
 0x20a   : > { %7074 = vmatpush3.bf16.xpose.msra.mxu0 %v7457_v47  ;;  %6945 = vst [vmem:[#allocation4 + $0x8] sm:$0xff] %v6779_v26   ;;  %v6899_v30 = vpack.c.bf16 %v1422_v27, %v1418_v15  ;;  %v1426_v33 = vadd.f32 %v1425_v29, %v8841_v18 }
 0x20b   : > { %7075 = vmatprep.subr.bf16.mxu0 %v7459_v55  ;;  %v1427_v32 = vpop.f32.mrf.mxu0 }
 0x20c   : > { %6966 = vst [vmem:[#allocation4 + $0x48] sm:$0xff] %v6899_v30   ;;  %v1428_v35 = vadd.f32 %v1427_v32, %v8844_v5  ;;  %v7475_v30 = vld [vmem:[#allocation2 + $0x20] sm:$0xff]  }
 0x20d   : > { %v1429_v34 = vpop.f32.mrf.mxu0 }
 0x20e   : > { %v1430_v36 = vadd.f32 %v1429_v34, %v8841_v18 }
 0x20f   : > { %v1431_v37 = vpop.f32.mrf.mxu0 }
 0x210   : > { %7044 = vmatpush3.bf16.xpose.msra.mxu1 %v7458_v1  ;;  %v6784_v38 = vpack.c.bf16 %v1430_v36, %v1426_v33  ;;  %v1432_v39 = vadd.f32 %v1431_v37, %v8844_v5  ;;  %v7476_v33 = vld [vmem:[#allocation2 + $0x58] sm:$0xff]  }
 0x211   : > { %7045 = vmatprep.subr.bf16.mxu1 %v7460_v14  ;;  %v1435_v41 = vpop.f32.mrf.mxu0 }
 0x212   : > { %7076 = vmatpush3.bf16.xpose.msra.mxu0 %v7459_v55  ;;  %6946 = vst [vmem:[#allocation4 + $0x10] sm:$0xff] %v6784_v38   ;;  %v6904_v42 = vpack.c.bf16 %v1432_v39, %v1428_v35  ;;  %v1436_v45 = vadd.f32 %v1435_v41, %v8841_v18  ;;  %v7477_v35 = vld [vmem:[#allocation2 + $0x60] sm:$0xff]  }
 0x213   : > { %7077 = vmatprep.subr.bf16.mxu0 %v7461_v20  ;;  %v1437_v44 = vpop.f32.mrf.mxu0 }
 0x214   : > { %6967 = vst [vmem:[#allocation4 + $0x50] sm:$0xff] %v6904_v42   ;;  %v1438_v48 = vadd.f32 %v1437_v44, %v8844_v5  ;;  %v7478_v42 = vld [vmem:[#allocation2 + $0x28] sm:$0xff]   ;;  %v7479_v44 = vld [vmem:[#allocation2 + $0x30] sm:$0xff]  }
 0x215   : > { %v1439_v47 = vpop.f32.mrf.mxu0 }
 0x216   : > { %v1440_v49 = vadd.f32 %v1439_v47, %v8841_v18 }
 0x217   : > { %v1441_v51 = vpop.f32.mrf.mxu0 }
 0x218   : > { %7046 = vmatpush3.bf16.xpose.msra.mxu1 %v7460_v14  ;;  %v6789_v52 = vpack.c.bf16 %v1440_v49, %v1436_v45  ;;  %v1442_v53 = vadd.f32 %v1441_v51, %v8844_v5  ;;  %v7471_v14 = vld [vmem:[#allocation2 + $0x10] sm:$0xff]  }
 0x219   : > { %7047 = vmatprep.subr.bf16.mxu1 %v7464_v28  ;;  %v1445_v56 = vpop.f32.mrf.mxu0  ;;  %v7481_v49 = vld [vmem:[#allocation2 + $0x70] sm:$0xff]  }
 0x21a   : > { %7078 = vmatpush3.bf16.xpose.msra.mxu0 %v7461_v20  ;;  %6947 = vst [vmem:[#allocation4 + $0x18] sm:$0xff] %v6789_v52   ;;  %v6909_v57 = vpack.c.bf16 %v1442_v53, %v1438_v48  ;;  %v1446_v63 = vadd.f32 %v1445_v56, %v8841_v18  ;;  %v7472_v20 = vld [vmem:[#allocation2 + $0x48] sm:$0xff]   ;;  %v7482_v52 = vld [vmem:[#allocation2 + $0x38] sm:$0xff]  }
 0x21b   : > { %7079 = vmatprep.subr.bf16.mxu0 %v7465_v31  ;;  %v1447_v62 = vpop.f32.mrf.mxu0  ;;  %v7480_v48 = vld [vmem:[#allocation2 + $0x68] sm:$0xff]   ;;  %v7483_v53 = vld [vmem:[#allocation2 + $0x78] sm:$0xff]  }
 0x21c   : > { %6968 = vst [vmem:[#allocation4 + $0x58] sm:$0xff] %v6909_v57   ;;  %v1448_v1 = vadd.f32 %v1447_v62, %v8844_v5  ;;  %v7490_v62 = vld [vmem:[#allocation4 + $0x8] sm:$0xff]  }
 0x21d   : > { %v1449_v0 = vpop.f32.mrf.mxu0 }
 0x21e   : > { %v1450_v2 = vadd.f32 %v1449_v0, %v8841_v18 }
 0x21f   : > { %v1451_v3 = vpop.f32.mrf.mxu0 }
 0x220   : > { %7048 = vmatpush3.bf16.xpose.msra.mxu1 %v7464_v28  ;;  %v6794_v4 = vpack.c.bf16 %v1450_v2, %v1446_v63  ;;  %v1452_v55 = vadd.f32 %v1451_v3, %v8844_v5  ;;  %v7474_v28 = vld [vmem:[#allocation2 + $0x18] sm:$0xff]   ;;  %v7491_v63 = vld [vmem:[#allocation4] sm:$0xff]  }
 0x221   : > { %7049 = vmatprep.subr.bf16.mxu1 %v7466_v40  ;;  %v1455_v8 = vpop.f32.mrf.mxu0  ;;  %v7488_v57 = vld [vmem:[#allocation4 + $0x18] sm:$0xff]   ;;  %v2095_v2 = vld [vmem:[%s8619_s30] sm:$0xff] }
 0x222   : > { %7080 = vmatpush3.bf16.xpose.msra.mxu0 %v7465_v31  ;;  %6948 = vst [vmem:[#allocation4 + $0x20] sm:$0xff] %v6794_v4   ;;  %v6914_v9 = vpack.c.bf16 %v1452_v55, %v1448_v1  ;;  %v1456_v58 = vadd.f32 %v1455_v8, %v8841_v18  ;;  %v2097_v1 = vld [vmem:[%s8619_s30 + $0x10] sm:$0xff]  ;;  %v2098_v3 = vld [vmem:[%s8619_s30 + $0x18] sm:$0xff]  ;;  %vm2111_vm1 = vcmp.eq.f32.partialorder %v2095_v2, 0.0  ;;  %v8333_v4 = vmov 0.0   ;;  %v2096_v8 = vld [vmem:[%s8619_s30 + $0x8] sm:$0xff] }
 0x223   : > { %7081 = vmatprep.subr.bf16.mxu0 %v7467_v43  ;;  %v1457_v10 = vpop.f32.mrf.mxu0  ;;  %vm2113_vm0 = vcmp.eq.f32.partialorder %v2097_v1, 0.0  ;;  %vm2114_vm2 = vcmp.eq.f32.partialorder %v2098_v3, 0.0  ;;  %vm2112_vm3 = vcmp.eq.f32.partialorder %v2096_v8, 0.0  ;;  %v2110_v8 = vld [vmem:[%s8619_s30 + $0x78] sm:$0xff] }
 0x224   : > { %6969 = vst [vmem:[#allocation4 + $0x60] sm:$0xff] %v6914_v9   ;;  %v1458_v12 = vadd.f32 %v1457_v10, %v8844_v5  ;;  %v8885_v55 = vsel %vm2113_vm0, -1e+09, %v8333_v4  ;;  %v8889_v10 = vsel %vm2111_vm1, -1e+09, %v8333_v4  ;;  %vm2126_vm15 = vcmp.eq.f32.partialorder %v2110_v8, 0.0 }
 0x225   : > { %v1459_v11 = vpop.f32.mrf.mxu0 }
 0x226   : > { %v1460_v25 = vadd.f32 %v1459_v11, %v8841_v18 }
 0x227   : > { %v1461_v6 = vpop.f32.mrf.mxu0 }
 0x228   : > { %7050 = vmatpush3.bf16.xpose.msra.mxu1 %v7466_v40  ;;  %v6799_v16 = vpack.c.bf16 %v1460_v25, %v1456_v58  ;;  %v1462_v19 = vadd.f32 %v1461_v6, %v8844_v5  ;;  %v8897_v25 = vsel %vm2114_vm2, -1e+09, %v8333_v4 }
 0x229   : > { %7051 = vmatprep.subr.bf16.mxu1 %v7468_v54  ;;  %v1465_v21 = vpop.f32.mrf.mxu0 }
 0x22a   : > { %7082 = vmatpush3.bf16.xpose.msra.mxu0 %v7467_v43  ;;  %6949 = vst [vmem:[#allocation4 + $0x28] sm:$0xff] %v6799_v16   ;;  %v6919_v23 = vpack.c.bf16 %v1462_v19, %v1458_v12  ;;  %v1466_v17 = vadd.f32 %v1465_v21, %v8841_v18  ;;  %v8907_v19 = vsel %vm2112_vm3, -1e+09, %v8333_v4 }
 0x22b   : > { %7083 = vmatprep.subr.bf16.mxu0 %v7469_v60  ;;  %v1467_v15 = vpop.f32.mrf.mxu0 }
 0x22c   : > { %6970 = vst [vmem:[#allocation4 + $0x68] sm:$0xff] %v6919_v23   ;;  %v1468_v26 = vadd.f32 %v1467_v15, %v8844_v5  ;;  %v2100_v23 = vld [vmem:[%s8619_s30 + $0x28] sm:$0xff] }
 0x22d   : > { %v1469_v24 = vpop.f32.mrf.mxu0  ;;  %vm2116_vm6 = vcmp.eq.f32.partialorder %v2100_v23, 0.0 }
 0x22e   : > { %v1470_v27 = vadd.f32 %v1469_v24, %v8841_v18 }
 0x22f   : > { %v1471_v29 = vpop.f32.mrf.mxu0 }
 0x230   : > { %7052 = vmatpush3.bf16.xpose.msra.mxu1 %v7468_v54  ;;  %v6804_v31 = vpack.c.bf16 %v1470_v27, %v1466_v17  ;;  %v1472_v32 = vadd.f32 %v1471_v29, %v8844_v5  ;;  %v2103_v29 = vld [vmem:[%s8619_s30 + $0x40] sm:$0xff] }
 0x231   : > { %v1475_v34 = vpop.f32.mrf.mxu0  ;;  %v7486_v56 = vld [vmem:[#allocation4 + $0x28] sm:$0xff]   ;;  %vm2119_vm8 = vcmp.eq.f32.partialorder %v2103_v29, 0.0  ;;  %v2142_v29 = vsel %vm2126_vm15, -1e+09, %v8333_v4 }
 0x232   : > { %7084 = vmatpush3.bf16.xpose.msra.mxu0 %v7469_v60  ;;  %6950 = vst [vmem:[#allocation4 + $0x30] sm:$0xff] %v6804_v31   ;;  %v6924_v36 = vpack.c.bf16 %v1472_v32, %v1468_v26  ;;  %v1476_v38 = vadd.f32 %v1475_v34, %v8841_v18  ;;  %v7489_v60 = vld [vmem:[#allocation4 + $0x10] sm:$0xff]   ;;  %v8936_v34 = vsel %vm2116_vm6, -1e+09, %v8333_v4 }
 0x233   : > { %v1477_v37 = vpop.f32.mrf.mxu0 }
 0x234   : > { %6971 = vst [vmem:[#allocation4 + $0x70] sm:$0xff] %v6924_v36   ;;  %v1478_v40 = vadd.f32 %v1477_v37, %v8844_v5  ;;  %v2105_v36 = vld [vmem:[%s8619_s30 + $0x50] sm:$0xff]  ;;  %v2104_v37 = vld [vmem:[%s8619_s30 + $0x48] sm:$0xff] }
 0x235   : > { %v1479_v39 = vpop.f32.mrf.mxu0  ;;  %vm2121_vm9 = vcmp.eq.f32.partialorder %v2105_v36, 0.0  ;;  %vm2120_vm10 = vcmp.eq.f32.partialorder %v2104_v37, 0.0 }
 0x236   : > { %v1480_v41 = vadd.f32 %v1479_v39, %v8841_v18 }
 0x237   : > { %7054 = vmatmul.mubr.bf16.vlgmr.msra.gmra.mxu1 %v7470_v13  ;;  %v1481_v43 = vpop.f32.mrf.mxu0  ;;  %v2099_v13 = vld [vmem:[%s8619_s30 + $0x20] sm:$0xff] }
 0x238   : > { %7057 = vmatprep.mubr.bf16.mxu1 %v7471_v14  ;;  %v6809_v45 = vpack.c.bf16 %v1480_v41, %v1476_v38  ;;  %v1482_v47 = vadd.f32 %v1481_v43, %v8844_v5  ;;  %v7487_v5 = vld [vmem:[#allocation4 + $0x20] sm:$0xff]   ;;  %vm2115_vm4 = vcmp.eq.f32.partialorder %v2099_v13, 0.0  ;;  %v8953_v43 = vsel %vm2119_vm8, -1e+09, %v8333_v4 }
 0x239   : > { %7086 = vmatmul.mubr.bf16.vlgmr.msra.gmra.mxu0 %v7472_v20  ;;  %v7485_v54 = vld [vmem:[#allocation4 + $0x30] sm:$0xff]   ;;  %v8922_v26 = vsel %vm2115_vm4, -1e+09, %v8333_v4 }
 0x23a   : > { %7089 = vmatprep.mubr.bf16.mxu0 %v7473_v22  ;;  %6951 = vst [vmem:[#allocation4 + $0x38] sm:$0xff] %v6809_v45   ;;  %v6929_v51 = vpack.c.bf16 %v1482_v47, %v1478_v40  ;;  %v2101_v22 = vld [vmem:[%s8619_s30 + $0x30] sm:$0xff]  ;;  %v2106_v45 = vld [vmem:[%s8619_s30 + $0x58] sm:$0xff]  ;;  %v2107_v47 = vld [vmem:[%s8619_s30 + $0x60] sm:$0xff] }
 0x23b   : > { %vm2117_vm5 = vcmp.eq.f32.partialorder %v2101_v22, 0.0  ;;  %vm2122_vm11 = vcmp.eq.f32.partialorder %v2106_v45, 0.0  ;;  %vm2123_vm12 = vcmp.eq.f32.partialorder %v2107_v47, 0.0 }
 0x23c   : > { %6972 = vst [vmem:[#allocation4 + $0x78] sm:$0xff] %v6929_v51   ;;  %v8931_v31 = vsel %vm2117_vm5, -1e+09, %v8333_v4  ;;  %v2139_v2 = vsel %vm2123_vm12, -1e+09, %v8333_v4 }
 0x23f   : > { %7058 = vmatmul.mubr.bf16.gmra.mxu1 %v7474_v28  ;;  %v2102_v28 = vld [vmem:[%s8619_s30 + $0x38] sm:$0xff] }
 0x240   : > { %7061 = vmatprep.mubr.bf16.mxu1 %v7475_v30  ;;  %vm2118_vm7 = vcmp.eq.f32.partialorder %v2102_v28, 0.0 }
 0x241   : > { %7090 = vmatmul.mubr.bf16.gmra.mxu0 %v7476_v33  ;;  %v7484_v18 = vld [vmem:[#allocation4 + $0x38] sm:$0xff]   ;;  %v8950_v41 = vsel %vm2118_vm7, -1e+09, %v8333_v4 }
 0x242   : > { %7093 = vmatprep.mubr.bf16.mxu0 %v7477_v35  ;;  %7101 = vmatprep.subr.bf16.mxu1 %v7484_v18 }
 0x243   : > { %7102 = vmatpush3.bf16.msra.mxu1 %v7484_v18  ;;  %v8878_v0 = vld [vmem:[#allocation4 + $0x78] sm:$0xff]  }
 0x244   : > { %7103 = vmatprep.subr.bf16.mxu1 %v7485_v54 }
 0x247   : > { %7062 = vmatmul.mubr.bf16.gmra.mxu1 %v7478_v42 }
 0x248   : > { %7065 = vmatprep.mubr.bf16.mxu1 %v7479_v44  ;;  %7104 = vmatpush3.bf16.msra.mxu1 %v7485_v54  ;;  %v2136_v54 = vsel %vm2120_vm10, -1e+09, %v8333_v4 }
 0x249   : > { %7094 = vmatmul.mubr.bf16.gmra.mxu0 %v7480_v48  ;;  %7105 = vmatprep.subr.bf16.mxu1 %v7486_v56 }
 0x24a   : > { %7097 = vmatprep.mubr.bf16.mxu0 %v7481_v49 }
 0x24c   : > { %7106 = vmatpush3.bf16.msra.mxu1 %v7486_v56  ;;  %v2109_v56 = vld [vmem:[%s8619_s30 + $0x70] sm:$0xff] }
 0x24d   : > { %7107 = vmatprep.subr.bf16.mxu1 %v7487_v5  ;;  %vm2125_vm13 = vcmp.eq.f32.partialorder %v2109_v56, 0.0 }
 0x24f   : > { %7066 = vmatmul.mubr.bf16.gmra.mxu1 %v7482_v52  ;;  %v8966_v52 = vsel %vm2121_vm9, -1e+09, %v8333_v4 }
 0x250   : > { %7108 = vmatpush3.bf16.msra.mxu1 %v7487_v5  ;;  %v2108_v5 = vld [vmem:[%s8619_s30 + $0x68] sm:$0xff] }
 0x251   : > { %7098 = vmatmul.mubr.bf16.gmra.mxu0 %v7483_v53  ;;  %7109 = vmatprep.subr.bf16.mxu1 %v7488_v57  ;;  %vm2124_vm14 = vcmp.eq.f32.partialorder %v2108_v5, 0.0 }
 0x252   : > { %v2140_v22 = vsel %vm2124_vm14, -1e+09, %v8333_v4 }
 0x254   : > { %7110 = vmatpush3.bf16.msra.mxu1 %v7488_v57 }
 0x255   : > { %7111 = vmatprep.subr.bf16.mxu1 %v7489_v60 }
 0x258   : > { %7112 = vmatpush3.bf16.msra.mxu1 %v7489_v60 }
 0x259   : > { %7113 = vmatprep.subr.bf16.mxu1 %v7490_v62 }
 0x25c   : > { %7114 = vmatpush3.bf16.msra.mxu1 %v7490_v62 }
 0x25d   : > { %7115 = vmatprep.subr.bf16.mxu1 %v7491_v63 }
 0x260   : > { %7116 = vmatpush3.bf16.msra.mxu1 %v7491_v63  ;;  %v2138_v63 = vsel %vm2122_vm11, -1e+09, %v8333_v4 }
 0x261   : > { %7133 = vmatprep.subr.bf16.mxu1 %v8878_v0 }
 0x2f7   : > { %v7055_v9 = vpop.f32.mrf.mxu1 }
 0x2f8   : > { %v8892_v58 = vadd.f32 %v7055_v9, %v8885_v55 }
 0x2f9   : > { %v2273_v11 = vpop.f32.mrf.mxu1  ;;  %v8894_v12 = vpop.f32.mrf.mxu0 }
 0x2fa   : > { %v8901_v6 = vadd.f32 %v2273_v11, %v8889_v10  ;;  %2533 = vmax.xlane.f32.xlu1 %v8892_v58  ;;  %v9008_v37 = vadd.f32 %v8894_v12, %v8885_v55 }
 0x2fb   : > { %v7056_v14 = vpop.f32.mrf.mxu1  ;;  %v8904_v16 = vpop.f32.mrf.mxu0 }
 0x2fc   : > { %v8910_v20 = vadd.f32 %v7056_v14, %v8897_v25  ;;  %2529 = vmax.xlane.f32.xlu0 %v8901_v6  ;;  %v2141_v14 = vsel %vm2125_vm13, -1e+09, %v8333_v4 }
 0x2fd   : > { %v2276_v21 = vpop.f32.mrf.mxu1  ;;  %v8919_v17 = vpop.f32.mrf.mxu0 }
 0x2fe   : > { %2535 = vmax.xlane.f32.xlu1 %v8910_v20  ;;  %v8917_v15 = vadd.f32 %v2276_v21, %v8907_v19 }
 0x2ff   : > { %v7059_v24 = vpop.f32.mrf.mxu1  ;;  %v8933_v32 = vpop.f32.mrf.mxu0 }
 0x300   : > { %2531 = vmax.xlane.f32.xlu0 %v8917_v15  ;;  %v8942_v38 = vadd.f32 %v7059_v24, %v8931_v31  ;;  %v9012_v4 = vadd.f32 %v8933_v32, %v8907_v19 }
 0x301   : > { %v2289_v27 = vpop.f32.mrf.mxu1  ;;  %v8947_v40 = vpop.f32.mrf.mxu0 }
 0x302   : > { %v8928_v30 = vadd.f32 %v2289_v27, %v8922_v26  ;;  %v9027_v55 = vadd.f32 %v8947_v40, %v8931_v31 }
 0x303   : > { %v7060_v33 = vpop.f32.mrf.mxu1  ;;  %v2482_v51 = vpop.f32.mrf.mxu0 }
 0x304   : > { %2537 = vmax.xlane.f32.xlu0 %v8928_v30  ;;  %v8960_v48 = vadd.f32 %v7060_v33, %v8950_v41  ;;  %v9000_v33 = vadd.f32 %v8904_v16, %v8889_v10  ;;  %v9018_v10 = vadd.f32 %v8919_v17, %v8897_v25  ;;  %v9021_v16 = vadd.f32 %v2482_v51, %v8922_v26 }
 0x305   : > { %v2292_v35 = vpop.f32.mrf.mxu1  ;;  %v7092_v62 = vpop.f32.mrf.mxu0 }
 0x306   : > { %v8945_v39 = vadd.f32 %v2292_v35, %v8936_v34  ;;  %v9035_v25 = vadd.f32 %v7092_v62, %v8950_v41 }
 0x307   : > { %v7063_v42 = vpop.f32.mrf.mxu1  ;;  %v2485_v13 = vpop.f32.mrf.mxu0 }
 0x308   : > { %2539 = vmax.xlane.f32.xlu1 %v8945_v39  ;;  %2541 = vmax.xlane.f32.xlu0 %v8942_v38  ;;  %v8974_v57 = vadd.f32 %v7063_v42, %v8966_v52  ;;  %v9030_v12 = vadd.f32 %v2485_v13, %v8936_v34 }
 0x309   : > { %v2305_v44 = vpop.f32.mrf.mxu1  ;;  %v7095_v28 = vpop.f32.mrf.mxu0 }
 0x30a   : > { %v8963_v49 = vadd.f32 %v2305_v44, %v8953_v43  ;;  %v9043_v31 = vadd.f32 %v7095_v28, %v8966_v52 }
 0x30b   : > { %v7064_v53 = vpop.f32.mrf.mxu1  ;;  %v2498_v36 = vpop.f32.mrf.mxu0 }
 0x30c   : > { %2543 = vmax.xlane.f32.xlu1 %v8960_v48  ;;  %2545 = vmax.xlane.f32.xlu0 %v8963_v49  ;;  %v8983_v9 = vadd.f32 %v7064_v53, %v2138_v63  ;;  %v9038_v17 = vadd.f32 %v2498_v36, %v8953_v43 }
 0x30d   : > { %v2308_v18 = vpop.f32.mrf.mxu1  ;;  %v7096_v42 = vpop.f32.mrf.mxu0 }
 0x30e   : > { %v8976_v60 = vadd.f32 %v2308_v18, %v2136_v54  ;;  %v9049_v40 = vadd.f32 %v7096_v42, %v2138_v63 }
 0x30f   : > { %v7067_v1 = vpop.f32.mrf.mxu1  ;;  %v2501_v44 = vpop.f32.mrf.mxu0 }
 0x310   : > { %2547 = vmax.xlane.f32.xlu1 %v8976_v60  ;;  %2549 = vmax.xlane.f32.xlu0 %v8974_v57  ;;  %v8991_v24 = vadd.f32 %v7067_v1, %v2141_v14  ;;  %v9045_v32 = vadd.f32 %v2501_v44, %v2136_v54 }
 0x311   : > { %v2321_v3 = vpop.f32.mrf.mxu1  ;;  %v7099_v19 = vpop.f32.mrf.mxu0 }
 0x312   : > { %v8985_v11 = vadd.f32 %v2321_v3, %v2139_v2  ;;  %v9055_v45 = vadd.f32 %v7099_v19, %v2141_v14 }
 0x313   : > { %v7068_v21 = vpop.f32.mrf.mxu1  ;;  %v2514_v26 = vpop.f32.mrf.mxu0 }
 0x314   : > { %2551 = vmax.xlane.f32.xlu1 %v8983_v9  ;;  %2553 = vmax.xlane.f32.xlu0 %v8985_v11  ;;  %v9002_v35 = vadd.f32 %v7068_v21, %v2142_v29  ;;  %v9051_v41 = vadd.f32 %v2514_v26, %v2139_v2 }
 0x315   : > { %v2324_v23 = vpop.f32.mrf.mxu1  ;;  %v7100_v34 = vpop.f32.mrf.mxu0 }
 0x316   : > { %v8993_v27 = vadd.f32 %v2324_v23, %v2140_v22  ;;  %v9061_v51 = vadd.f32 %v7100_v34, %v2142_v29 }
 0x317   : > { %v2517_v43 = vpop.f32.mrf.mxu0 }
 0x318   : > { %2555 = vmax.xlane.f32.xlu1 %v8993_v27  ;;  %2557 = vmax.xlane.f32.xlu0 %v8991_v24  ;;  %v9057_v47 = vadd.f32 %v2517_v43, %v2140_v22 }
 0x31c   : > { %2559 = vmax.xlane.f32.xlu1 %v9002_v35  ;;  %2561 = vmax.xlane.f32.xlu0 %v9000_v33 }
 0x320   : > { %2563 = vmax.xlane.f32.xlu1 %v9012_v4  ;;  %2565 = vmax.xlane.f32.xlu0 %v9008_v37 }
 0x324   : > { %2567 = vmax.xlane.f32.xlu1 %v9018_v10  ;;  %2569 = vmax.xlane.f32.xlu0 %v9021_v16 }
 0x328   : > { %2571 = vmax.xlane.f32.xlu1 %v9030_v12  ;;  %2573 = vmax.xlane.f32.xlu0 %v9027_v55 }
 0x32c   : > { %2575 = vmax.xlane.f32.xlu1 %v9035_v25  ;;  %2577 = vmax.xlane.f32.xlu0 %v9038_v17 }
 0x330   : > { %2579 = vmax.xlane.f32.xlu1 %v9045_v32  ;;  %2581 = vmax.xlane.f32.xlu0 %v9043_v31 }
 0x334   : > { %2583 = vmax.xlane.f32.xlu1 %v9049_v40  ;;  %2585 = vmax.xlane.f32.xlu0 %v9051_v41 }
 0x338   : > { %2587 = vmax.xlane.f32.xlu1 %v9057_v47  ;;  %2589 = vmax.xlane.f32.xlu0 %v9055_v45 }
 0x33c   : > { %2591 = vmax.xlane.f32.xlu1 %v9061_v51 }
 0x383   : > { %v2534_v52 = vpop.xlane.xlu1 %2533 }
 0x384   : > { %v2595_v53 = vsub.f32 %v8892_v58, %v2534_v52 }
 0x385   : > { %v2530_v54 = vpop.xlane.xlu0 %2529 }
 0x386   : > { %v2593_v18 = vsub.f32 %v8901_v6, %v2530_v54  ;;  %v2629_v62 = vmul.f32 1.442695, %v2595_v53 }
 0x387   : > { %v2536_v56 = vpop.xlane.xlu1 %2535 }
 0x388   : > { %v2625_v5 = vmul.f32 1.442695, %v2593_v18  ;;  %v2596_v63 = vsub.f32 %v8910_v20, %v2536_v56 }
 0x389   : > { %v2532_v1 = vpop.xlane.xlu0 %2531 }
 0x38a   : > { %7764 = vpow2.f32 %v2625_v5  ;;  %v2594_v2 = vsub.f32 %v8917_v15, %v2532_v1  ;;  %v2631_v8 = vmul.f32 1.442695, %v2596_v63 }
 0x38b   : > { %7766 = vpow2.f32 %v2629_v62 }
 0x38c   : > { %v2627_v3 = vmul.f32 1.442695, %v2594_v2 }
 0x38d   : > { %v2538_v13 = vpop.xlane.xlu0 %2537 }
 0x38e   : > { %7768 = vpow2.f32 %v2627_v3  ;;  %v2597_v14 = vsub.f32 %v8928_v30, %v2538_v13 }
 0x38f   : > { %7770 = vpow2.f32 %v2631_v8 }
 0x390   : > { %v2633_v58 = vmul.f32 1.442695, %v2597_v14 }
 0x391   : > { %v2540_v21 = vpop.xlane.xlu1 %2539  ;;  %v2542_v6 = vpop.xlane.xlu0 %2541 }
 0x392   : > { %7772 = vpow2.f32 %v2633_v58  ;;  %v2598_v22 = vsub.f32 %v8945_v39, %v2540_v21  ;;  %v2599_v20 = vsub.f32 %v8942_v38, %v2542_v6 }
 0x394   : > { %v2635_v23 = vmul.f32 1.442695, %v2598_v22  ;;  %v2637_v28 = vmul.f32 1.442695, %v2599_v20 }
 0x395   : > { %v2544_v29 = vpop.xlane.xlu1 %2543  ;;  %v2546_v15 = vpop.xlane.xlu0 %2545 }
 0x396   : > { %7774 = vpow2.f32 %v2635_v23  ;;  %v2600_v36 = vsub.f32 %v8960_v48, %v2544_v29  ;;  %v2601_v42 = vsub.f32 %v8963_v49, %v2546_v15 }
 0x397   : > { %v9073_v44 = vpop.eup %7764  ;;  %7776 = vpow2.f32 %v2637_v28 }
 0x398   : > { %v2639_v30 = vmul.f32 1.442695, %v2600_v36  ;;  %v2641_v19 = vmul.f32 1.442695, %v2601_v42  ;;  %2689 = vadd.xlane.f32.xlu0 %v9073_v44  ;;  %v9076_v34 = vpop.eup %7766 }
 0x399   : > { %v2548_v26 = vpop.xlane.xlu1 %2547  ;;  %v2550_v39 = vpop.xlane.xlu0 %2549 }
 0x39a   : > { %7778 = vpow2.f32 %v2639_v30  ;;  %v2602_v38 = vsub.f32 %v8976_v60, %v2548_v26  ;;  %v2603_v43 = vsub.f32 %v8974_v57, %v2550_v39 }
 0x39b   : > { %v9080_v52 = vpop.eup %7768  ;;  %7780 = vpow2.f32 %v2641_v19 }
 0x39c   : > { %v2643_v48 = vmul.f32 1.442695, %v2602_v38  ;;  %v2645_v49 = vmul.f32 1.442695, %v2603_v43  ;;  %2693 = vadd.xlane.f32.xlu0 %v9076_v34  ;;  %2691 = vadd.xlane.f32.xlu1 %v9080_v52  ;;  %v9084_v18 = vpop.eup %7770 }
 0x39d   : > { %v2552_v53 = vpop.xlane.xlu1 %2551  ;;  %v2554_v54 = vpop.xlane.xlu0 %2553 }
 0x39e   : > { %7782 = vpow2.f32 %v2643_v48  ;;  %v2604_v56 = vsub.f32 %v8983_v9, %v2552_v53  ;;  %v2605_v60 = vsub.f32 %v8985_v11, %v2554_v54 }
 0x39f   : > { %v9088_v5 = vpop.eup %7772  ;;  %7784 = vpow2.f32 %v2645_v49 }
 0x3a0   : > { %v2647_v57 = vmul.f32 1.442695, %v2604_v56  ;;  %v2649_v62 = vmul.f32 1.442695, %v2605_v60  ;;  %2695 = vadd.xlane.f32.xlu1 %v9084_v18  ;;  %2697 = vadd.xlane.f32.xlu0 %v9088_v5 }
 0x3a1   : > { %v2556_v63 = vpop.xlane.xlu1 %2555  ;;  %v2558_v1 = vpop.xlane.xlu0 %2557 }
 0x3a2   : > { %7786 = vpow2.f32 %v2647_v57  ;;  %v2606_v2 = vsub.f32 %v8993_v27, %v2556_v63  ;;  %v2607_v3 = vsub.f32 %v8991_v24, %v2558_v1 }
 0x3a3   : > { %v9094_v8 = vpop.eup %7774  ;;  %7788 = vpow2.f32 %v2649_v62 }
 0x3a4   : > { %v9096_v9 = vpop.eup %7776  ;;  %v2651_v11 = vmul.f32 1.442695, %v2606_v2  ;;  %v2653_v13 = vmul.f32 1.442695, %v2607_v3  ;;  %2699 = vadd.xlane.f32.xlu1 %v9094_v8 }
 0x3a5   : > { %2701 = vadd.xlane.f32.xlu0 %v9096_v9  ;;  %v2560_v14 = vpop.xlane.xlu1 %2559  ;;  %v2562_v58 = vpop.xlane.xlu0 %2561 }
 0x3a6   : > { %7790 = vpow2.f32 %v2651_v11  ;;  %v2608_v21 = vsub.f32 %v9002_v35, %v2560_v14  ;;  %v2609_v27 = vsub.f32 %v9000_v33, %v2562_v58 }
 0x3a7   : > { %v9102_v6 = vpop.eup %7778  ;;  %7792 = vpow2.f32 %v2653_v13 }
 0x3a8   : > { %v9104_v24 = vpop.eup %7780  ;;  %v2655_v22 = vmul.f32 1.442695, %v2608_v21  ;;  %v2657_v20 = vmul.f32 1.442695, %v2609_v27  ;;  %2703 = vadd.xlane.f32.xlu1 %v9102_v6 }
 0x3a9   : > { %2705 = vadd.xlane.f32.xlu0 %v9104_v24  ;;  %v2564_v23 = vpop.xlane.xlu1 %2563  ;;  %v2566_v28 = vpop.xlane.xlu0 %2565 }
 0x3aa   : > { %7794 = vpow2.f32 %v2655_v22  ;;  %v2610_v29 = vsub.f32 %v9012_v4, %v2564_v23  ;;  %v2611_v35 = vsub.f32 %v9008_v37, %v2566_v28 }
 0x3ab   : > { %v9110_v15 = vpop.eup %7782  ;;  %7796 = vpow2.f32 %v2657_v20 }
 0x3ac   : > { %v9112_v33 = vpop.eup %7784  ;;  %v2659_v36 = vmul.f32 1.442695, %v2610_v29  ;;  %v2661_v42 = vmul.f32 1.442695, %v2611_v35  ;;  %2707 = vadd.xlane.f32.xlu1 %v9110_v15 }
 0x3ad   : > { %2709 = vadd.xlane.f32.xlu0 %v9112_v33  ;;  %v2568_v30 = vpop.xlane.xlu1 %2567  ;;  %v2570_v19 = vpop.xlane.xlu0 %2569 }
 0x3ae   : > { %7798 = vpow2.f32 %v2659_v36  ;;  %v2612_v26 = vsub.f32 %v9018_v10, %v2568_v30  ;;  %v2613_v4 = vsub.f32 %v9021_v16, %v2570_v19 }
 0x3af   : > { %v9118_v39 = vpop.eup %7786  ;;  %7800 = vpow2.f32 %v2661_v42 }
 0x3b0   : > { %v9120_v37 = vpop.eup %7788  ;;  %v2663_v38 = vmul.f32 1.442695, %v2612_v26  ;;  %v2665_v43 = vmul.f32 1.442695, %v2613_v4  ;;  %2711 = vadd.xlane.f32.xlu1 %v9118_v39 }
 0x3b1   : > { %2713 = vadd.xlane.f32.xlu0 %v9120_v37  ;;  %v2572_v48 = vpop.xlane.xlu1 %2571  ;;  %v2574_v49 = vpop.xlane.xlu0 %2573 }
 0x3b2   : > { %7802 = vpow2.f32 %v2663_v38  ;;  %v2614_v53 = vsub.f32 %v9030_v12, %v2572_v48  ;;  %v2615_v10 = vsub.f32 %v9027_v55, %v2574_v49 }
 0x3b3   : > { %v9126_v54 = vpop.eup %7790  ;;  %7804 = vpow2.f32 %v2665_v43 }
 0x3b4   : > { %v9128_v16 = vpop.eup %7792  ;;  %v2667_v56 = vmul.f32 1.442695, %v2614_v53  ;;  %v2669_v60 = vmul.f32 1.442695, %v2615_v10  ;;  %2715 = vadd.xlane.f32.xlu1 %v9126_v54 }
 0x3b5   : > { %2717 = vadd.xlane.f32.xlu0 %v9128_v16  ;;  %v2576_v57 = vpop.xlane.xlu1 %2575  ;;  %v2578_v62 = vpop.xlane.xlu0 %2577 }
 0x3b6   : > { %7806 = vpow2.f32 %v2667_v56  ;;  %v2616_v63 = vsub.f32 %v9035_v25, %v2576_v57  ;;  %v2617_v12 = vsub.f32 %v9038_v17, %v2578_v62  ;;  %v7500_v62 = vld [vmem:[#allocation14 + $0x70] ss:$8 sps:$4 sm:$0xff]  }
 0x3b7   : > { %v9134_v1 = vpop.eup %7794  ;;  %7808 = vpow2.f32 %v2669_v60 }
 0x3b8   : > { %v9136_v55 = vpop.eup %7796  ;;  %v2671_v2 = vmul.f32 1.442695, %v2616_v63  ;;  %v2673_v3 = vmul.f32 1.442695, %v2617_v12  ;;  %2719 = vadd.xlane.f32.xlu1 %v9134_v1  ;;  %v7502_v63 = vld [vmem:[#allocation14 + $0x74] ss:$8 sps:$4 sm:$0xff]  }
 0x3b9   : > { %2721 = vadd.xlane.f32.xlu0 %v9136_v55  ;;  %v2580_v11 = vpop.xlane.xlu1 %2579  ;;  %v2582_v13 = vpop.xlane.xlu0 %2581  ;;  %v7505_v12 = vld [vmem:[#allocation14 + $0x64] ss:$8 sps:$4 sm:$0xff]   ;;  %3583 = vmatprep.subr.bf16.mxu0 %v7502_v63 }
 0x3ba   : > { %7810 = vpow2.f32 %v2671_v2  ;;  %v2618_v14 = vsub.f32 %v9045_v32, %v2580_v11  ;;  %v2619_v25 = vsub.f32 %v9043_v31, %v2582_v13  ;;  %3584 = vmatpush1.bf16.msra.mxu0 %v7500_v62  ;;  %v7503_v2 = vld [vmem:[#allocation14 + $0x60] ss:$8 sps:$4 sm:$0xff]   ;;  %v7506_v11 = vld [vmem:[#allocation14 + $0x50] ss:$8 sps:$4 sm:$0xff]  }
 0x3bb   : > { %v9142_v58 = vpop.eup %7798  ;;  %7812 = vpow2.f32 %v2673_v3  ;;  %3585 = vmatprep.subr.bf16.mxu0 %v7505_v12  ;;  %v7508_v3 = vld [vmem:[#allocation14 + $0x54] ss:$8 sps:$4 sm:$0xff]  }
 0x3bc   : > { %v9144_v17 = vpop.eup %7800  ;;  %v2675_v21 = vmul.f32 1.442695, %v2618_v14  ;;  %v2677_v27 = vmul.f32 1.442695, %v2619_v25  ;;  %2723 = vadd.xlane.f32.xlu1 %v9142_v58 }
 0x3bd   : > { %2725 = vadd.xlane.f32.xlu0 %v9144_v17  ;;  %v2584_v22 = vpop.xlane.xlu1 %2583  ;;  %v2586_v20 = vpop.xlane.xlu0 %2585 }
 0x3be   : > { %7814 = vpow2.f32 %v2675_v21  ;;  %v2620_v23 = vsub.f32 %v9049_v40, %v2584_v22  ;;  %v2621_v32 = vsub.f32 %v9051_v41, %v2586_v20  ;;  %3586 = vmatpush1.bf16.msra.mxu0 %v7503_v2 }
 0x3bf   : > { %v9150_v28 = vpop.eup %7802  ;;  %7816 = vpow2.f32 %v2677_v27  ;;  %3587 = vmatprep.subr.bf16.mxu0 %v7508_v3 }
 0x3c0   : > { %v9152_v31 = vpop.eup %7804  ;;  %v2679_v29 = vmul.f32 1.442695, %v2620_v23  ;;  %v2681_v35 = vmul.f32 1.442695, %v2621_v32  ;;  %2727 = vadd.xlane.f32.xlu1 %v9150_v28 }
 0x3c1   : > { %2729 = vadd.xlane.f32.xlu0 %v9152_v31  ;;  %v2588_v36 = vpop.xlane.xlu1 %2587  ;;  %v2590_v42 = vpop.xlane.xlu0 %2589 }
 0x3c2   : > { %7818 = vpow2.f32 %v2679_v29  ;;  %v2622_v30 = vsub.f32 %v9057_v47, %v2588_v36  ;;  %v2623_v40 = vsub.f32 %v9055_v45, %v2590_v42  ;;  %3588 = vmatpush1.bf16.msra.mxu0 %v7506_v11 }
 0x3c3   : > { %v9158_v19 = vpop.eup %7806  ;;  %7820 = vpow2.f32 %v2681_v35 }
 0x3c4   : > { %v9160_v41 = vpop.eup %7808  ;;  %v2683_v26 = vmul.f32 1.442695, %v2622_v30  ;;  %v2685_v4 = vmul.f32 1.442695, %v2623_v40  ;;  %2731 = vadd.xlane.f32.xlu1 %v9158_v19 }
 0x3c5   : > { %2733 = vadd.xlane.f32.xlu0 %v9160_v41  ;;  %v2592_v38 = vpop.xlane.xlu1 %2591 }
 0x3c6   : > { %7822 = vpow2.f32 %v2683_v26  ;;  %v2624_v43 = vsub.f32 %v9061_v51, %v2592_v38 }
 0x3c7   : > { %v9165_v48 = vpop.eup %7810  ;;  %7824 = vpow2.f32 %v2685_v4 }
 0x3c8   : > { %v9167_v47 = vpop.eup %7812  ;;  %v2687_v45 = vmul.f32 1.442695, %v2624_v43  ;;  %2735 = vadd.xlane.f32.xlu1 %v9165_v48 }
 0x3c9   : > { %2737 = vadd.xlane.f32.xlu0 %v9167_v47 }
 0x3ca   : > { %7826 = vpow2.f32 %v2687_v45 }
 0x3cb   : > { %v9171_v49 = vpop.eup %7814 }
 0x3cc   : > { %v9173_v53 = vpop.eup %7816  ;;  %2739 = vadd.xlane.f32.xlu1 %v9171_v49 }
 0x3cd   : > { %2741 = vadd.xlane.f32.xlu0 %v9173_v53 }
 0x3cf   : > { %v9177_v51 = vpop.eup %7818 }
 0x3d0   : > { %v9179_v10 = vpop.eup %7820  ;;  %2743 = vadd.xlane.f32.xlu1 %v9177_v51 }
 0x3d1   : > { %2745 = vadd.xlane.f32.xlu0 %v9179_v10 }
 0x3d3   : > { %v9183_v56 = vpop.eup %7822 }
 0x3d4   : > { %v9185_v60 = vpop.eup %7824  ;;  %2747 = vadd.xlane.f32.xlu1 %v9183_v56 }
 0x3d5   : > { %2749 = vadd.xlane.f32.xlu0 %v9185_v60 }
 0x3d7   : > { %v9189_v57 = vpop.eup %7826 }
 0x3d8   : > { %2751 = vadd.xlane.f32.xlu1 %v9189_v57 }
 0x421   : > { %v2690_v13 = vpop.xlane.xlu0 %2689 }
 0x422   : > { %7828 = vrcp.f32 %v2690_v13 }
 0x425   : > { %v2692_v14 = vpop.xlane.xlu1 %2691  ;;  %v2694_v25 = vpop.xlane.xlu0 %2693 }
 0x426   : > { %7830 = vrcp.f32 %v2692_v14 }
 0x427   : > { %7832 = vrcp.f32 %v2694_v25 }
 0x429   : > { %v2696_v21 = vpop.xlane.xlu1 %2695  ;;  %v2698_v27 = vpop.xlane.xlu0 %2697 }
 0x42a   : > { %7834 = vrcp.f32 %v2696_v21  ;;  %v7494_v21 = vld [vmem:[#allocation4 + $0x68] sm:$0xff]  }
 0x42b   : > { %7836 = vrcp.f32 %v2698_v27 }
 0x42d   : > { %v2700_v22 = vpop.xlane.xlu1 %2699 }
 0x42e   : > { %7838 = vrcp.f32 %v2700_v22  ;;  %v2702_v20 = vpop.xlane.xlu0 %2701 }
 0x42f   : > { %7840 = vrcp.f32 %v2702_v20  ;;  %v7829_v23 = vpop.eup %7828 }
 0x430   : > { %v2785_v36 = vmul.f32 %v7829_v23, %v9073_v44 }
 0x431   : > { %v2704_v32 = vpop.xlane.xlu1 %2703 }
 0x432   : > { %7842 = vrcp.f32 %v2704_v32  ;;  %v2706_v29 = vpop.xlane.xlu0 %2705  ;;  %v7495_v32 = vld [vmem:[#allocation4 + $0x60] sm:$0xff]  }
 0x433   : > { %v7831_v35 = vpop.eup %7830  ;;  %7844 = vrcp.f32 %v2706_v29 }
 0x434   : > { %v2786_v42 = vmul.f32 %v7831_v35, %v9080_v52  ;;  %v7833_v30 = vpop.eup %7832  ;;  %v7493_v52 = vld [vmem:[#allocation4 + $0x70] sm:$0xff]  }
 0x435   : > { %v2708_v40 = vpop.xlane.xlu1 %2707  ;;  %v2787_v43 = vmul.f32 %v7833_v30, %v9076_v34 }
 0x436   : > { %7846 = vrcp.f32 %v2708_v40  ;;  %v2710_v26 = vpop.xlane.xlu0 %2709  ;;  %v2817_v4 = vpack.c.bf16 %v2786_v42, %v2785_v36  ;;  %v7496_v40 = vld [vmem:[#allocation4 + $0x58] sm:$0xff]  }
 0x437   : > { %v7835_v38 = vpop.eup %7834  ;;  %7848 = vrcp.f32 %v2710_v26 }
 0x438   : > { %7117 = vmatprep.mubr.bf16.mxu1 %v2817_v4  ;;  %v2788_v45 = vmul.f32 %v7835_v38, %v9084_v18  ;;  %v7837_v62 = vpop.eup %7836 }
 0x439   : > { %v2712_v63 = vpop.xlane.xlu1 %2711  ;;  %v2789_v3 = vmul.f32 %v7837_v62, %v9088_v5  ;;  %v7497_v62 = vld [vmem:[#allocation4 + $0x50] sm:$0xff]  }
 0x43a   : > { %7850 = vrcp.f32 %v2712_v63  ;;  %v2714_v12 = vpop.xlane.xlu0 %2713  ;;  %v2818_v2 = vpack.c.bf16 %v2788_v45, %v2787_v43 }
 0x43b   : > { %v7839_v44 = vpop.eup %7838  ;;  %7852 = vrcp.f32 %v2714_v12 }
 0x43c   : > { %7118 = vmatmul.mubr.bf16.vlgmr.msra.gmra.mxu1 %v2818_v2  ;;  %v2790_v11 = vmul.f32 %v7839_v44, %v9094_v8  ;;  %v7841_v13 = vpop.eup %7840 }
 0x43d   : > { %7134 = vmatpush3.bf16.msra.mxu1 %v8878_v0  ;;  %v2716_v14 = vpop.xlane.xlu1 %2715  ;;  %v2791_v27 = vmul.f32 %v7841_v13, %v9096_v9 }
 0x43e   : > { %7854 = vrcp.f32 %v2716_v14  ;;  %7135 = vmatprep.subr.bf16.mxu1 %v7493_v52  ;;  %v2718_v34 = vpop.xlane.xlu0 %2717  ;;  %v2819_v18 = vpack.c.bf16 %v2790_v11, %v2789_v3  ;;  %v7498_v3 = vld [vmem:[#allocation4 + $0x48] sm:$0xff]  }
 0x43f   : > { %v7843_v25 = vpop.eup %7842  ;;  %7856 = vrcp.f32 %v2718_v34 }
 0x440   : > { %7121 = vmatprep.mubr.bf16.mxu1 %v2819_v18  ;;  %v2792_v22 = vmul.f32 %v7843_v25, %v9102_v6  ;;  %v7845_v20 = vpop.eup %7844  ;;  %v7499_v25 = vld [vmem:[#allocation4 + $0x40] sm:$0xff]  }
 0x441   : > { %7136 = vmatpush3.bf16.msra.mxu1 %v7493_v52  ;;  %v2720_v5 = vpop.xlane.xlu1 %2719  ;;  %v2793_v29 = vmul.f32 %v7845_v20, %v9104_v24 }
 0x442   : > { %7858 = vrcp.f32 %v2720_v5  ;;  %7137 = vmatprep.subr.bf16.mxu1 %v7494_v21  ;;  %v2722_v8 = vpop.xlane.xlu0 %2721  ;;  %v2820_v0 = vpack.c.bf16 %v2792_v22, %v2791_v27 }
 0x443   : > { %v7847_v23 = vpop.eup %7846  ;;  %7860 = vrcp.f32 %v2722_v8 }
 0x444   : > { %7122 = vmatmul.mubr.bf16.gmra.mxu1 %v2820_v0  ;;  %v2794_v35 = vmul.f32 %v7847_v23, %v9110_v15  ;;  %v7849_v36 = vpop.eup %7848 }
 0x445   : > { %7138 = vmatpush3.bf16.msra.mxu1 %v7494_v21  ;;  %v2724_v9 = vpop.xlane.xlu1 %2723  ;;  %v2795_v26 = vmul.f32 %v7849_v36, %v9112_v33 }
 0x446   : > { %7862 = vrcp.f32 %v2724_v9  ;;  %7139 = vmatprep.subr.bf16.mxu1 %v7495_v32  ;;  %v2726_v6 = vpop.xlane.xlu0 %2725  ;;  %v2821_v42 = vpack.c.bf16 %v2794_v35, %v2793_v29 }
 0x447   : > { %v7851_v30 = vpop.eup %7850  ;;  %7864 = vrcp.f32 %v2726_v6 }
 0x448   : > { %7125 = vmatprep.mubr.bf16.mxu1 %v2821_v42  ;;  %v2796_v4 = vmul.f32 %v7851_v30, %v9118_v39  ;;  %v7853_v38 = vpop.eup %7852 }
 0x449   : > { %7140 = vmatpush3.bf16.msra.mxu1 %v7495_v32  ;;  %v2728_v24 = vpop.xlane.xlu1 %2727  ;;  %v2797_v63 = vmul.f32 %v7853_v38, %v9120_v37 }
 0x44a   : > { %7866 = vrcp.f32 %v2728_v24  ;;  %7141 = vmatprep.subr.bf16.mxu1 %v7496_v40  ;;  %v2730_v15 = vpop.xlane.xlu0 %2729  ;;  %v2822_v43 = vpack.c.bf16 %v2796_v4, %v2795_v26 }
 0x44b   : > { %v7855_v45 = vpop.eup %7854  ;;  %7868 = vrcp.f32 %v2730_v15 }
 0x44c   : > { %7126 = vmatmul.mubr.bf16.gmra.mxu1 %v2822_v43  ;;  %v2798_v12 = vmul.f32 %v7855_v45, %v9126_v54  ;;  %v7857_v2 = vpop.eup %7856 }
 0x44d   : > { %7142 = vmatpush3.bf16.msra.mxu1 %v7496_v40  ;;  %v2732_v33 = vpop.xlane.xlu1 %2731  ;;  %v2799_v11 = vmul.f32 %v7857_v2, %v9128_v16 }
 0x44e   : > { %7870 = vrcp.f32 %v2732_v33  ;;  %7143 = vmatprep.subr.bf16.mxu1 %v7497_v62  ;;  %v2734_v39 = vpop.xlane.xlu0 %2733  ;;  %v2823_v44 = vpack.c.bf16 %v2798_v12, %v2797_v63 }
 0x44f   : > { %v7859_v52 = vpop.eup %7858  ;;  %7872 = vrcp.f32 %v2734_v39 }
 0x450   : > { %7129 = vmatprep.mubr.bf16.mxu1 %v2823_v44  ;;  %v2800_v13 = vmul.f32 %v7859_v52, %v9134_v1  ;;  %v7861_v14 = vpop.eup %7860 }
 0x451   : > { %7144 = vmatpush3.bf16.msra.mxu1 %v7497_v62  ;;  %v2736_v37 = vpop.xlane.xlu1 %2735  ;;  %v2801_v21 = vmul.f32 %v7861_v14, %v9136_v55  ;;  %v7520_v14 = vld [vmem:[#allocation14 + $0x14] ss:$8 sps:$4 sm:$0xff]  }
 0x452   : > { %7874 = vrcp.f32 %v2736_v37  ;;  %7145 = vmatprep.subr.bf16.mxu1 %v7498_v3  ;;  %v2738_v54 = vpop.xlane.xlu0 %2737  ;;  %v2824_v34 = vpack.c.bf16 %v2800_v13, %v2799_v11  ;;  %v7514_v11 = vld [vmem:[#allocation14 + $0x34] ss:$8 sps:$4 sm:$0xff]   ;;  %v7512_v13 = vld [vmem:[#allocation14 + $0x30] ss:$8 sps:$4 sm:$0xff]  }
 0x453   : > { %v7863_v18 = vpop.eup %7862  ;;  %7876 = vrcp.f32 %v2738_v54  ;;  %v7518_v37 = vld [vmem:[#allocation14 + $0x10] ss:$8 sps:$4 sm:$0xff]   ;;  %v7526_v54 = vld [vmem:[#allocation14 + $0xf4] ss:$8 sps:$4 sm:$0xff]  }
 0x454   : > { %7130 = vmatmul.mubr.bf16.gmra.mxu1 %v2824_v34  ;;  %v2802_v27 = vmul.f32 %v7863_v18, %v9142_v58  ;;  %v7865_v22 = vpop.eup %7864  ;;  %v7524_v34 = vld [vmem:[#allocation14 + $0xf0] ss:$8 sps:$4 sm:$0xff]   ;;  %v7529_v18 = vld [vmem:[#allocation14 + $0xe4] ss:$8 sps:$4 sm:$0xff]  }
 0x455   : > { %7146 = vmatpush3.bf16.msra.mxu1 %v7498_v3  ;;  %v2740_v16 = vpop.xlane.xlu1 %2739  ;;  %v2803_v8 = vmul.f32 %v7865_v22, %v9144_v17  ;;  %v7535_v22 = vld [vmem:[#allocation14 + $0xc4] ss:$8 sps:$4 sm:$0xff]  }
 0x456   : > { %7878 = vrcp.f32 %v2740_v16  ;;  %7147 = vmatprep.subr.bf16.mxu1 %v7499_v25  ;;  %v2742_v1 = vpop.xlane.xlu0 %2741  ;;  %v2825_v20 = vpack.c.bf16 %v2802_v27, %v2801_v21  ;;  %v7532_v21 = vld [vmem:[#allocation14 + $0xd4] ss:$8 sps:$4 sm:$0xff]   ;;  %v7530_v27 = vld [vmem:[#allocation14 + $0xd0] ss:$8 sps:$4 sm:$0xff]   ;;  %v7533_v16 = vld [vmem:[#allocation14 + $0xc0] ss:$8 sps:$4 sm:$0xff]  }
 0x457   : > { %v7867_v5 = vpop.eup %7866  ;;  %7880 = vrcp.f32 %v2742_v1  ;;  %v7538_v1 = vld [vmem:[#allocation14 + $0xb4] ss:$8 sps:$4 sm:$0xff]  }
 0x458   : > { %7149 = vmatprep.mubr.bf16.mxu1 %v2825_v20  ;;  %v2804_v0 = vmul.f32 %v7867_v5, %v9150_v28  ;;  %v7869_v23 = vpop.eup %7868  ;;  %v7536_v20 = vld [vmem:[#allocation14 + $0xb0] ss:$8 sps:$4 sm:$0xff]   ;;  %v7541_v5 = vld [vmem:[#allocation14 + $0xa4] ss:$8 sps:$4 sm:$0xff]  }
 0x459   : > { %7148 = vmatpush3.bf16.msra.mxu1 %v7499_v25  ;;  %v2744_v32 = vpop.xlane.xlu1 %2743  ;;  %v2805_v35 = vmul.f32 %v7869_v23, %v9152_v31  ;;  %v7527_v25 = vld [vmem:[#allocation14 + $0xe0] ss:$8 sps:$4 sm:$0xff]   ;;  %v7542_v23 = vld [vmem:[#allocation14 + $0x90] ss:$8 sps:$4 sm:$0xff]  }
 0x45a   : > { %7882 = vrcp.f32 %v2744_v32  ;;  %v2746_v55 = vpop.xlane.xlu0 %2745  ;;  %v2826_v58 = vpack.c.bf16 %v2804_v0, %v2803_v8  ;;  %v7539_v8 = vld [vmem:[#allocation14 + $0xa0] ss:$8 sps:$4 sm:$0xff]   ;;  %v7544_v0 = vld [vmem:[#allocation14 + $0x94] ss:$8 sps:$4 sm:$0xff]   ;;  %v7547_v32 = vld [vmem:[#allocation14 + $0x84] ss:$8 sps:$4 sm:$0xff]  }
 0x45b   : > { %v7871_v29 = vpop.eup %7870  ;;  %7884 = vrcp.f32 %v2746_v55  ;;  %v7545_v55 = vld [vmem:[#allocation14 + $0x80] ss:$8 sps:$4 sm:$0xff]  }
 0x45c   : > { %7150 = vmatmul.mubr.bf16.vlgmr.msra.gmra.mxu1 %v2826_v58  ;;  %v2806_v36 = vmul.f32 %v7871_v29, %v9158_v19  ;;  %v7873_v9 = vpop.eup %7872 }
 0x45d   : > { %v2748_v6 = vpop.xlane.xlu1 %2747  ;;  %v2807_v28 = vmul.f32 %v7873_v9, %v9160_v41 }
 0x45e   : > { %7886 = vrcp.f32 %v2748_v6  ;;  %v2750_v42 = vpop.xlane.xlu0 %2749  ;;  %v2827_v17 = vpack.c.bf16 %v2806_v36, %v2805_v35 }
 0x45f   : > { %v7875_v30 = vpop.eup %7874  ;;  %7888 = vrcp.f32 %v2750_v42 }
 0x460   : > { %7153 = vmatprep.mubr.bf16.mxu1 %v2827_v17  ;;  %v2808_v40 = vmul.f32 %v7875_v30, %v9165_v48  ;;  %v7877_v26 = vpop.eup %7876 }
 0x461   : > { %v2752_v4 = vpop.xlane.xlu1 %2751  ;;  %v2809_v31 = vmul.f32 %v7877_v26, %v9167_v47 }
 0x462   : > { %7890 = vrcp.f32 %v2752_v4  ;;  %v2828_v38 = vpack.c.bf16 %v2808_v40, %v2807_v28 }
 0x463   : > { %v7879_v24 = vpop.eup %7878 }
 0x464   : > { %7154 = vmatmul.mubr.bf16.gmra.mxu1 %v2828_v38  ;;  %v2810_v19 = vmul.f32 %v7879_v24, %v9171_v49  ;;  %v7881_v15 = vpop.eup %7880 }
 0x465   : > { %v2811_v62 = vmul.f32 %v7881_v15, %v9173_v53  ;;  %v7511_v53 = vld [vmem:[#allocation14 + $0x44] ss:$8 sps:$4 sm:$0xff]  }
 0x466   : > { %v2829_v43 = vpack.c.bf16 %v2810_v19, %v2809_v31  ;;  %3589 = vmatprep.subr.bf16.mxu0 %v7511_v53 }
 0x467   : > { %v7883_v45 = vpop.eup %7882 }
 0x468   : > { %7157 = vmatprep.mubr.bf16.mxu1 %v2829_v43  ;;  %v2812_v41 = vmul.f32 %v7883_v45, %v9177_v51  ;;  %v7885_v63 = vpop.eup %7884  ;;  %v7509_v51 = vld [vmem:[#allocation14 + $0x40] ss:$8 sps:$4 sm:$0xff]  }
 0x469   : > { %v2813_v2 = vmul.f32 %v7885_v63, %v9179_v10  ;;  %3590 = vmatpush1.bf16.msra.mxu0 %v7509_v51  ;;  %v7517_v10 = vld [vmem:[#allocation14 + $0x24] ss:$8 sps:$4 sm:$0xff]  }
 0x46a   : > { %v2830_v48 = vpack.c.bf16 %v2812_v41, %v2811_v62  ;;  %3591 = vmatprep.subr.bf16.mxu0 %v7514_v11 }
 0x46b   : > { %v7887_v12 = vpop.eup %7886 }
 0x46c   : > { %7158 = vmatmul.mubr.bf16.gmra.mxu1 %v2830_v48  ;;  %v2814_v33 = vmul.f32 %v7887_v12, %v9183_v56  ;;  %v7889_v39 = vpop.eup %7888  ;;  %v7515_v56 = vld [vmem:[#allocation14 + $0x20] ss:$8 sps:$4 sm:$0xff]  }
 0x46d   : > { %v2815_v49 = vmul.f32 %v7889_v39, %v9185_v60  ;;  %3592 = vmatpush1.bf16.msra.mxu0 %v7512_v13  ;;  %v7523_v60 = vld [vmem:[#allocation14 + $0x4] ss:$8 sps:$4 sm:$0xff]  }
 0x46e   : > { %v2831_v47 = vpack.c.bf16 %v2814_v33, %v2813_v2  ;;  %3593 = vmatprep.subr.bf16.mxu0 %v7517_v10 }
 0x46f   : > { %v7891_v44 = vpop.eup %7890 }
 0x470   : > { %7161 = vmatprep.mubr.bf16.mxu1 %v2831_v47  ;;  %v2816_v52 = vmul.f32 %v7891_v44, %v9189_v57  ;;  %v7521_v57 = vld [vmem:[#allocation14] ss:$8 sps:$4 sm:$0xff]  }
 0x471   : > { %3594 = vmatpush1.bf16.msra.mxu0 %v7515_v56 }
 0x472   : > { %v2832_v3 = vpack.c.bf16 %v2816_v52, %v2815_v49  ;;  %3595 = vmatprep.subr.bf16.mxu0 %v7520_v14 }
 0x474   : > { %7162 = vmatmul.mubr.bf16.gmra.mxu1 %v2832_v3 }
 0x475   : > { %3596 = vmatpush1.bf16.msra.mxu0 %v7518_v37 }
 0x476   : > { %3597 = vmatprep.subr.bf16.mxu0 %v7523_v60 }
 0x479   : > { %3598 = vmatpush1.bf16.msra.mxu0 %v7521_v57 }
 0x47a   : > { %3599 = vmatprep.subr.bf16.mxu0 %v7526_v54 }
 0x47d   : > { %3600 = vmatpush2.bf16.msra.mxu0 %v7524_v34 }
 0x47e   : > { %3601 = vmatprep.subr.bf16.mxu0 %v7529_v18 }
 0x481   : > { %3602 = vmatpush2.bf16.msra.mxu0 %v7527_v25 }
 0x482   : > { %3603 = vmatprep.subr.bf16.mxu0 %v7532_v21 }
 0x485   : > { %3604 = vmatpush2.bf16.msra.mxu0 %v7530_v27 }
 0x486   : > { %3605 = vmatprep.subr.bf16.mxu0 %v7535_v22 }
 0x489   : > { %3606 = vmatpush2.bf16.msra.mxu0 %v7533_v16 }
 0x48a   : > { %3607 = vmatprep.subr.bf16.mxu0 %v7538_v1 }
 0x48d   : > { %3608 = vmatpush2.bf16.msra.mxu0 %v7536_v20 }
 0x48e   : > { %3609 = vmatprep.subr.bf16.mxu0 %v7541_v5 }
 0x491   : > { %3610 = vmatpush2.bf16.msra.mxu0 %v7539_v8 }
 0x492   : > { %3611 = vmatprep.subr.bf16.mxu0 %v7544_v0 }
 0x495   : > { %3612 = vmatpush2.bf16.msra.mxu0 %v7542_v23 }
 0x496   : > { %3613 = vmatprep.subr.bf16.mxu0 %v7547_v32 }
 0x499   : > { %3614 = vmatpush2.bf16.msra.mxu0 %v7545_v55 }
 0x4fc   : > { %v7119_v58 = vpop.f32.mrf.mxu1 }
 0x4fd   : > { %v6660_v29 = vpack.c.bf16 %v7119_v58, %v7119_v58 }
 0x4fe   : > { %v2915_v35 = vpop.f32.mrf.mxu1 }
 0x4ff   : > { %3189 = vst [vmem:[#allocation5 + $0x10] sm:$0xf] %v6660_v29  ;;  %v6658_v36 = vpack.c.bf16 %v2915_v35, %v2915_v35 }
 0x500   : > { %v7120_v9 = vpop.f32.mrf.mxu1 }
 0x501   : > { %3187 = vst [vmem:[#allocation5] sm:$0xf] %v6658_v36  ;;  %v6661_v6 = vpack.c.bf16 %v7120_v9, %v7120_v9 }
 0x502   : > { %v2918_v42 = vpop.f32.mrf.mxu1 }
 0x503   : > { %3190 = vst [vmem:[#allocation5 + $0x18] sm:$0xf] %v6661_v6  ;;  %v6659_v17 = vpack.c.bf16 %v2918_v42, %v2918_v42 }
 0x504   : > { %v7123_v30 = vpop.f32.mrf.mxu1 }
 0x505   : > { %3188 = vst [vmem:[#allocation5 + $0x8] sm:$0xf] %v6659_v17  ;;  %v6664_v28 = vpack.c.bf16 %v7123_v30, %v7123_v30 }
 0x506   : > { %v2931_v40 = vpop.f32.mrf.mxu1 }
 0x507   : > { %3193 = vst [vmem:[#allocation5 + $0x30] sm:$0xf] %v6664_v28  ;;  %v6662_v26 = vpack.c.bf16 %v2931_v40, %v2931_v40 }
 0x508   : > { %v7124_v4 = vpop.f32.mrf.mxu1 }
 0x509   : > { %3191 = vst [vmem:[#allocation5 + $0x20] sm:$0xf] %v6662_v26  ;;  %v6665_v38 = vpack.c.bf16 %v7124_v4, %v7124_v4 }
 0x50a   : > { %v2934_v24 = vpop.f32.mrf.mxu1  ;;  %v7553_v35 = vld [vmem:[#allocation5 + $0x10] ss:$8 sps:$4 sm:$0xff]  }
 0x50b   : > { %3194 = vst [vmem:[#allocation5 + $0x38] sm:$0xf] %v6665_v38  ;;  %v6663_v31 = vpack.c.bf16 %v2934_v24, %v2934_v24 }
 0x50c   : > { %v7127_v19 = vpop.f32.mrf.mxu1  ;;  %v7548_v22 = vld [vmem:[#allocation5] ss:$8 sps:$4 sm:$0xff]  }
 0x50d   : > { %3192 = vst [vmem:[#allocation5 + $0x28] sm:$0xf] %v6663_v31  ;;  %v6668_v15 = vpack.c.bf16 %v7127_v19, %v7127_v19 }
 0x50e   : > { %v2947_v43 = vpop.f32.mrf.mxu1 }
 0x50f   : > { %3197 = vst [vmem:[#allocation5 + $0x50] sm:$0xf] %v6668_v15  ;;  %v6666_v45 = vpack.c.bf16 %v2947_v43, %v2947_v43 }
 0x510   : > { %v7128_v62 = vpop.f32.mrf.mxu1 }
 0x511   : > { %3195 = vst [vmem:[#allocation5 + $0x40] sm:$0xf] %v6666_v45  ;;  %v6669_v41 = vpack.c.bf16 %v7128_v62, %v7128_v62 }
 0x512   : > { %v2950_v63 = vpop.f32.mrf.mxu1  ;;  %v7559_v4 = vld [vmem:[#allocation5 + $0x30] ss:$8 sps:$4 sm:$0xff]  }
 0x513   : > { %3198 = vst [vmem:[#allocation5 + $0x58] sm:$0xf] %v6669_v41  ;;  %v6667_v48 = vpack.c.bf16 %v2950_v63, %v2950_v63  ;;  %v3331_v41 = vld [vmem:[%s10481_s5] sm:$0x3] }
 0x514   : > { %v7131_v12 = vpop.f32.mrf.mxu1  ;;  %v7556_v40 = vld [vmem:[#allocation5 + $0x20] ss:$8 sps:$4 sm:$0xff]   ;;  %v9229_v63 = vrot.slane %v3331_v41, %v8769_v46 }
 0x515   : > { %3196 = vst [vmem:[#allocation5 + $0x48] sm:$0xf] %v6667_v48  ;;  %v6672_v2 = vpack.c.bf16 %v7131_v12, %v7131_v12  ;;  %v9232_v48 = vrot.slane %v3331_v41, %v8774_v50 }
 0x516   : > { %v2963_v33 = vpop.f32.mrf.mxu1 }
 0x517   : > { %3201 = vst [vmem:[#allocation5 + $0x70] sm:$0xf] %v6672_v2  ;;  %v6670_v39 = vpack.c.bf16 %v2963_v33, %v2963_v33 }
 0x518   : > { %v7132_v47 = vpop.f32.mrf.mxu1 }
 0x519   : > { %3199 = vst [vmem:[#allocation5 + $0x60] sm:$0xf] %v6670_v39  ;;  %v6673_v44 = vpack.c.bf16 %v7132_v47, %v7132_v47 }
 0x51a   : > { %v2966_v49 = vpop.f32.mrf.mxu1  ;;  %v7565_v19 = vld [vmem:[#allocation5 + $0x50] ss:$8 sps:$4 sm:$0xff]  }
 0x51b   : > { %3202 = vst [vmem:[#allocation5 + $0x78] sm:$0xf] %v6673_v44  ;;  %v6671_v52 = vpack.c.bf16 %v2966_v49, %v2966_v49  ;;  %v8020_v44 = vld [vmem:[%s8611_s27] sm:$0xff] }
 0x51c   : > { %v7151_v3 = vpop.f32.mrf.mxu1  ;;  %v7562_v24 = vld [vmem:[#allocation5 + $0x40] ss:$8 sps:$4 sm:$0xff]  }
 0x51d   : > { %3200 = vst [vmem:[#allocation5 + $0x68] sm:$0xf] %v6671_v52  ;;  %v6676_v53 = vpack.c.bf16 %v7151_v3, %v7151_v3  ;;  %v8021_v52 = vld [vmem:[%s8611_s27 + $0x8] sm:$0xff] }
 0x51e   : > { %v3060_v51 = vpop.f32.mrf.mxu1 }
 0x51f   : > { %3269 = vst [vmem:[#allocation5 + $0x14] sm:$0xf] %v6676_v53  ;;  %v6674_v11 = vpack.c.bf16 %v3060_v51, %v3060_v51 }
 0x520   : > { %v7152_v13 = vpop.f32.mrf.mxu1 }
 0x521   : > { %3267 = vst [vmem:[#allocation5 + $0x4] sm:$0xf] %v6674_v11  ;;  %v6677_v10 = vpack.c.bf16 %v7152_v13, %v7152_v13 }
 0x522   : > { %v3063_v56 = vpop.f32.mrf.mxu1  ;;  %v7571_v62 = vld [vmem:[#allocation5 + $0x70] ss:$8 sps:$4 sm:$0xff]  }
 0x523   : > { %3270 = vst [vmem:[#allocation5 + $0x1c] sm:$0xf] %v6677_v10  ;;  %v6675_v14 = vpack.c.bf16 %v3063_v56, %v3063_v56  ;;  %v8022_v56 = vld [vmem:[%s8611_s27 + $0x10] sm:$0xff] }
 0x524   : > { %v7155_v37 = vpop.f32.mrf.mxu1  ;;  %v7568_v43 = vld [vmem:[#allocation5 + $0x60] ss:$8 sps:$4 sm:$0xff]  }
 0x525   : > { %3268 = vst [vmem:[#allocation5 + $0xc] sm:$0xf] %v6675_v14  ;;  %v6680_v60 = vpack.c.bf16 %v7155_v37, %v7155_v37  ;;  %v8023_v37 = vld [vmem:[%s8611_s27 + $0x18] sm:$0xff] }
 0x526   : > { %v3076_v57 = vpop.f32.mrf.mxu1 }
 0x527   : > { %3273 = vst [vmem:[#allocation5 + $0x34] sm:$0xf] %v6680_v60  ;;  %v6678_v54 = vpack.c.bf16 %v3076_v57, %v3076_v57 }
 0x528   : > { %v7156_v34 = vpop.f32.mrf.mxu1 }
 0x529   : > { %3271 = vst [vmem:[#allocation5 + $0x24] sm:$0xf] %v6678_v54  ;;  %v6681_v18 = vpack.c.bf16 %v7156_v34, %v7156_v34 }
 0x52a   : > { %v3079_v25 = vpop.f32.mrf.mxu1  ;;  %v7551_v5 = vld [vmem:[#allocation5 + $0x14] ss:$8 sps:$4 sm:$0xff]  }
 0x52b   : > { %3274 = vst [vmem:[#allocation5 + $0x3c] sm:$0xf] %v6681_v18  ;;  %v6679_v21 = vpack.c.bf16 %v3079_v25, %v3079_v25 }
 0x52c   : > { %v7159_v27 = vpop.f32.mrf.mxu1  ;;  %v7550_v16 = vld [vmem:[#allocation5 + $0x4] ss:$8 sps:$4 sm:$0xff]  }
 0x52d   : > { %3272 = vst [vmem:[#allocation5 + $0x2c] sm:$0xf] %v6679_v21  ;;  %v6684_v1 = vpack.c.bf16 %v7159_v27, %v7159_v27  ;;  %3615 = vmatprep.mubr.bf16.mxu0 %v7550_v16  ;;  %v8024_v21 = vld [vmem:[%s8611_s27 + $0x20] sm:$0xff] }
 0x52e   : > { %v3092_v20 = vpop.f32.mrf.mxu1  ;;  %3616 = vmatmul.mubr.bf16.vlgmr.msra.gmra.mxu0 %v7548_v22  ;;  %v8025_v22 = vld [vmem:[%s8611_s27 + $0x28] sm:$0xff] }
 0x52f   : > { %3277 = vst [vmem:[#allocation5 + $0x54] sm:$0xf] %v6684_v1  ;;  %v6682_v8 = vpack.c.bf16 %v3092_v20, %v3092_v20  ;;  %3625 = vmatprep.mubr.bf16.mxu0 %v7551_v5 }
 0x530   : > { %v7160_v0 = vpop.f32.mrf.mxu1 }
 0x531   : > { %3275 = vst [vmem:[#allocation5 + $0x44] sm:$0xf] %v6682_v8  ;;  %v6685_v23 = vpack.c.bf16 %v7160_v0, %v7160_v0 }
 0x532   : > { %v3095_v32 = vpop.f32.mrf.mxu1  ;;  %v7557_v26 = vld [vmem:[#allocation5 + $0x34] ss:$8 sps:$4 sm:$0xff]  }
 0x533   : > { %3278 = vst [vmem:[#allocation5 + $0x5c] sm:$0xf] %v6685_v23  ;;  %v6683_v55 = vpack.c.bf16 %v3095_v32, %v3095_v32  ;;  %v8026_v23 = vld [vmem:[%s8611_s27 + $0x30] sm:$0xff] }
 0x534   : > { %v7163_v58 = vpop.f32.mrf.mxu1  ;;  %v7554_v9 = vld [vmem:[#allocation5 + $0x24] ss:$8 sps:$4 sm:$0xff]  }
 0x535   : > { %3276 = vst [vmem:[#allocation5 + $0x4c] sm:$0xf] %v6683_v55  ;;  %v6688_v29 = vpack.c.bf16 %v7163_v58, %v7163_v58  ;;  %v8027_v55 = vld [vmem:[%s8611_s27 + $0x38] sm:$0xff] }
 0x536   : > { %v3108_v36 = vpop.f32.mrf.mxu1  ;;  %3626 = vmatmul.mubr.bf16.gmra.mxu0 %v7553_v35 }
 0x537   : > { %3281 = vst [vmem:[#allocation5 + $0x74] sm:$0xf] %v6688_v29  ;;  %v6686_v6 = vpack.c.bf16 %v3108_v36, %v3108_v36  ;;  %3635 = vmatprep.mubr.bf16.mxu0 %v7554_v9 }
 0x538   : > { %v7164_v42 = vpop.f32.mrf.mxu1 }
 0x539   : > { %3279 = vst [vmem:[#allocation5 + $0x64] sm:$0xf] %v6686_v6  ;;  %v6689_v17 = vpack.c.bf16 %v7164_v42, %v7164_v42  ;;  %v8028_v42 = vld [vmem:[%s8611_s27 + $0x40] sm:$0xff] }
 0x53a   : > { %v3111_v30 = vpop.f32.mrf.mxu1  ;;  %v7563_v31 = vld [vmem:[#allocation5 + $0x54] ss:$8 sps:$4 sm:$0xff]  }
 0x53b   : > { %3282 = vst [vmem:[#allocation5 + $0x7c] sm:$0xf] %v6689_v17  ;;  %v6687_v28 = vpack.c.bf16 %v3111_v30, %v3111_v30  ;;  %v8029_v30 = vld [vmem:[%s8611_s27 + $0x48] sm:$0xff] }
 0x53c   : > { %v7560_v38 = vld [vmem:[#allocation5 + $0x44] ss:$8 sps:$4 sm:$0xff]  }
 0x53d   : > { %3280 = vst [vmem:[#allocation5 + $0x6c] sm:$0xf] %v6687_v28 }
 0x53e   : > { %3636 = vmatmul.mubr.bf16.gmra.mxu0 %v7556_v40 }
 0x53f   : > { %3645 = vmatprep.mubr.bf16.mxu0 %v7557_v26 }
 0x542   : > { %v7569_v45 = vld [vmem:[#allocation5 + $0x74] ss:$8 sps:$4 sm:$0xff]  }
 0x544   : > { %v7566_v15 = vld [vmem:[#allocation5 + $0x64] ss:$8 sps:$4 sm:$0xff]  }
 0x546   : > { %3646 = vmatmul.mubr.bf16.gmra.mxu0 %v7559_v4 }
 0x547   : > { %3655 = vmatprep.mubr.bf16.mxu0 %v7560_v38 }
 0x54e   : > { %3656 = vmatmul.mubr.bf16.gmra.mxu0 %v7562_v24 }
 0x54f   : > { %3665 = vmatprep.mubr.bf16.mxu0 %v7563_v31  ;;  %v8030_v31 = vld [vmem:[%s8611_s27 + $0x50] sm:$0xff] }
 0x556   : > { %3666 = vmatmul.mubr.bf16.gmra.mxu0 %v7565_v19 }
 0x557   : > { %3675 = vmatprep.mubr.bf16.mxu0 %v7566_v15  ;;  %v8031_v15 = vld [vmem:[%s8611_s27 + $0x58] sm:$0xff] }
 0x55e   : > { %3676 = vmatmul.mubr.bf16.gmra.mxu0 %v7568_v43 }
 0x55f   : > { %3685 = vmatprep.mubr.bf16.mxu0 %v7569_v45 }
 0x566   : > { %3686 = vmatmul.mubr.bf16.gmra.mxu0 %v7571_v62 }
 0x5ee   : > { %v3617_v12 = vpop.f32.mrf.mxu0 }
 0x5ef   : > { %v3618_v2 = vadd.f32 %v3617_v12, %v9229_v63 }
 0x5f0   : > { %v3619_v33 = vpop.f32.mrf.mxu0 }
 0x5f1   : > { %v3620_v39 = vadd.f32 %v3619_v33, %v9232_v48  ;;  %v9237_v49 = vadd.f32 %v8020_v44, %v3618_v2  ;;  %v8032_v33 = vld [vmem:[%s8611_s27 + $0x60] sm:$0xff] }
 0x5f2   : > { %v3621_v47 = vpop.f32.mrf.mxu0 }
 0x5f3   : > { %v9240_v3 = vadd.f32 %v8021_v52, %v3620_v39  ;;  %v3622_v53 = vadd.f32 %v3621_v47, %v9229_v63  ;;  %v8033_v47 = vld [vmem:[%s8611_s27 + $0x68] sm:$0xff] }
 0x5f4   : > { %v3623_v51 = vpop.f32.mrf.mxu0 }
 0x5f5   : > { %v3624_v11 = vadd.f32 %v3623_v51, %v9232_v48  ;;  %v3728_v13 = vadd.f32 %v9240_v3, %v9237_v49  ;;  %v9247_v14 = vadd.f32 %v8022_v56, %v3622_v53 }
 0x5f6   : > { %v3627_v10 = vpop.f32.mrf.mxu0 }
 0x5f7   : > { %v9250_v60 = vadd.f32 %v8023_v37, %v3624_v11  ;;  %v3628_v57 = vadd.f32 %v3627_v10, %v9229_v63  ;;  %3729 = vadd.xlane.f32.xlu0 %v3728_v13  ;;  %v8034_v10 = vld [vmem:[%s8611_s27 + $0x70] sm:$0xff]  ;;  %v8035_v37 = vld [vmem:[%s8611_s27 + $0x78] sm:$0xff] }
 0x5f8   : > { %v3629_v54 = vpop.f32.mrf.mxu0 }
 0x5f9   : > { %v3630_v34 = vadd.f32 %v3629_v54, %v9232_v48  ;;  %v3731_v18 = vadd.f32 %v9250_v60, %v9247_v14  ;;  %v9257_v27 = vadd.f32 %v8024_v21, %v3628_v57 }
 0x5fa   : > { %v3631_v25 = vpop.f32.mrf.mxu0 }
 0x5fb   : > { %v9260_v16 = vadd.f32 %v8025_v22, %v3630_v34  ;;  %v3632_v1 = vadd.f32 %v3631_v25, %v9229_v63  ;;  %3732 = vadd.xlane.f32.xlu1 %v3731_v18  ;;  %v8036_v22 = vld [vmem:[%s8611_s27 + $0x80] sm:$0xff] }
 0x5fc   : > { %v3633_v20 = vpop.f32.mrf.mxu0 }
 0x5fd   : > { %v3634_v5 = vadd.f32 %v3633_v20, %v9232_v48  ;;  %v3734_v8 = vadd.f32 %v9260_v16, %v9257_v27  ;;  %v9267_v32 = vadd.f32 %v8026_v23, %v3632_v1  ;;  %v8037_v20 = vld [vmem:[%s8611_s27 + $0x88] sm:$0xff] }
 0x5fe   : > { %v3637_v0 = vpop.f32.mrf.mxu0 }
 0x5ff   : > { %v9270_v58 = vadd.f32 %v8027_v55, %v3634_v5  ;;  %v3638_v29 = vadd.f32 %v3637_v0, %v9229_v63  ;;  %3735 = vadd.xlane.f32.xlu0 %v3734_v8 }
 0x600   : > { %v3639_v35 = vpop.f32.mrf.mxu0 }
 0x601   : > { %v3640_v36 = vadd.f32 %v3639_v35, %v9232_v48  ;;  %v3737_v9 = vadd.f32 %v9270_v58, %v9267_v32  ;;  %v9277_v17 = vadd.f32 %v8028_v42, %v3638_v29  ;;  %v8038_v35 = vld [vmem:[%s8611_s27 + $0x90] sm:$0xff] }
 0x602   : > { %v3641_v6 = vpop.f32.mrf.mxu0 }
 0x603   : > { %v9280_v28 = vadd.f32 %v8029_v30, %v3640_v36  ;;  %v3642_v40 = vadd.f32 %v3641_v6, %v9229_v63  ;;  %3738 = vadd.xlane.f32.xlu1 %v3737_v9  ;;  %v8039_v9 = vld [vmem:[%s8611_s27 + $0x98] sm:$0xff] }
 0x604   : > { %v3643_v26 = vpop.f32.mrf.mxu0 }
 0x605   : > { %v3644_v4 = vadd.f32 %v3643_v26, %v9232_v48  ;;  %v3740_v38 = vadd.f32 %v9280_v28, %v9277_v17  ;;  %v9287_v19 = vadd.f32 %v8030_v31, %v3642_v40  ;;  %v8041_v31 = vld [vmem:[%s8611_s27 + $0xa8] sm:$0xff] }
 0x606   : > { %v3647_v24 = vpop.f32.mrf.mxu0 }
 0x607   : > { %v9290_v43 = vadd.f32 %v8031_v15, %v3644_v4  ;;  %v3648_v45 = vadd.f32 %v3647_v24, %v9229_v63  ;;  %3741 = vadd.xlane.f32.xlu0 %v3740_v38  ;;  %v8040_v38 = vld [vmem:[%s8611_s27 + $0xa0] sm:$0xff] }
 0x608   : > { %v3649_v62 = vpop.f32.mrf.mxu0 }
 0x609   : > { %v3650_v41 = vadd.f32 %v3649_v62, %v9232_v48  ;;  %v3743_v12 = vadd.f32 %v9290_v43, %v9287_v19  ;;  %v9297_v39 = vadd.f32 %v8032_v33, %v3648_v45  ;;  %v8042_v33 = vld [vmem:[%s8611_s27 + $0xb0] sm:$0xff] }
 0x60a   : > { %v3651_v2 = vpop.f32.mrf.mxu0 }
 0x60b   : > { %v9300_v44 = vadd.f32 %v8033_v47, %v3650_v41  ;;  %v3652_v52 = vadd.f32 %v3651_v2, %v9229_v63  ;;  %3744 = vadd.xlane.f32.xlu1 %v3743_v12 }
 0x60c   : > { %v3653_v53 = vpop.f32.mrf.mxu0 }
 0x60d   : > { %v3654_v51 = vadd.f32 %v3653_v53, %v9232_v48  ;;  %v3746_v11 = vadd.f32 %v9300_v44, %v9297_v39  ;;  %v9307_v56 = vadd.f32 %v8034_v10, %v3652_v52  ;;  %v8043_v52 = vld [vmem:[%s8611_s27 + $0xb8] sm:$0xff] }
 0x60e   : > { %v3657_v13 = vpop.f32.mrf.mxu0 }
 0x60f   : > { %v9310_v57 = vadd.f32 %v8035_v37, %v3654_v51  ;;  %v3658_v54 = vadd.f32 %v3657_v13, %v9229_v63  ;;  %3747 = vadd.xlane.f32.xlu0 %v3746_v11 }
 0x610   : > { %v3659_v34 = vpop.f32.mrf.mxu0 }
 0x611   : > { %v3660_v18 = vadd.f32 %v3659_v34, %v9232_v48  ;;  %v3749_v25 = vadd.f32 %v9310_v57, %v9307_v56  ;;  %v9317_v1 = vadd.f32 %v8036_v22, %v3658_v54  ;;  %v8044_v54 = vld [vmem:[%s8611_s27 + $0xc0] sm:$0xff] }
 0x612   : > { %v3661_v21 = vpop.f32.mrf.mxu0 }
 0x613   : > { %v9320_v5 = vadd.f32 %v8037_v20, %v3660_v18  ;;  %v3662_v8 = vadd.f32 %v3661_v21, %v9229_v63  ;;  %3750 = vadd.xlane.f32.xlu1 %v3749_v25  ;;  %v8045_v18 = vld [vmem:[%s8611_s27 + $0xc8] sm:$0xff] }
 0x614   : > { %v3663_v0 = vpop.f32.mrf.mxu0 }
 0x615   : > { %v3664_v23 = vadd.f32 %v3663_v0, %v9232_v48  ;;  %v3752_v55 = vadd.f32 %v9320_v5, %v9317_v1  ;;  %v9327_v36 = vadd.f32 %v8038_v35, %v3662_v8 }
 0x616   : > { %v3667_v29 = vpop.f32.mrf.mxu0 }
 0x617   : > { %v9330_v6 = vadd.f32 %v8039_v9, %v3664_v23  ;;  %v3668_v42 = vadd.f32 %v3667_v29, %v9229_v63  ;;  %3753 = vadd.xlane.f32.xlu0 %v3752_v55  ;;  %v8046_v23 = vld [vmem:[%s8611_s27 + $0xd0] sm:$0xff]  ;;  %v8047_v29 = vld [vmem:[%s8611_s27 + $0xd8] sm:$0xff] }
 0x618   : > { %v3669_v30 = vpop.f32.mrf.mxu0 }
 0x619   : > { %v3670_v40 = vadd.f32 %v3669_v30, %v9232_v48  ;;  %v3755_v26 = vadd.f32 %v9330_v6, %v9327_v36  ;;  %v9337_v24 = vadd.f32 %v8040_v38, %v3668_v42 }
 0x61a   : > { %v3671_v4 = vpop.f32.mrf.mxu0 }
 0x61b   : > { %v9340_v15 = vadd.f32 %v8041_v31, %v3670_v40  ;;  %v3672_v45 = vadd.f32 %v3671_v4, %v9229_v63  ;;  %3756 = vadd.xlane.f32.xlu1 %v3755_v26  ;;  %v8048_v4 = vld [vmem:[%s8611_s27 + $0xe0] sm:$0xff]  ;;  %v8049_v31 = vld [vmem:[%s8611_s27 + $0xe8] sm:$0xff] }
 0x61c   : > { %v3673_v62 = vpop.f32.mrf.mxu0 }
 0x61d   : > { %v3674_v41 = vadd.f32 %v3673_v62, %v9232_v48  ;;  %v3758_v12 = vadd.f32 %v9340_v15, %v9337_v24  ;;  %v9347_v47 = vadd.f32 %v8042_v33, %v3672_v45  ;;  %v8050_v33 = vld [vmem:[%s8611_s27 + $0xf0] sm:$0xff] }
 0x61e   : > { %v3677_v2 = vpop.f32.mrf.mxu0 }
 0x61f   : > { %v9350_v53 = vadd.f32 %v8043_v52, %v3674_v41  ;;  %v3678_v51 = vadd.f32 %v3677_v2, %v9229_v63  ;;  %3759 = vadd.xlane.f32.xlu0 %v3758_v12 }
 0x620   : > { %v3679_v11 = vpop.f32.mrf.mxu0 }
 0x621   : > { %v3680_v13 = vadd.f32 %v3679_v11, %v9232_v48  ;;  %v3761_v10 = vadd.f32 %v9350_v53, %v9347_v47  ;;  %v9357_v34 = vadd.f32 %v8044_v54, %v3678_v51  ;;  %v8051_v51 = vld [vmem:[%s8611_s27 + $0xf8] sm:$0xff]  ;;  %v7577_v54 = vld [vmem:[#allocation15 + $0xec] ss:$16 sps:$4 sm:$0xff]   ;;  %s8334_s27 = smov [#allocation18]  }
 0x622   : > { %v3681_v37 = vpop.f32.mrf.mxu0  ;;  %4648 = vmatprep.subr.bf16.mxu0 %v7577_v54  ;;  %s8242_s6 = sshll.u32 %s8334_s27, 4  ;;  %s8243_s6 = int_to_ptr.vmem [resolvable:$false] %s8242_s6 }
 0x623   : > { %v9360_v25 = vadd.f32 %v8045_v18, %v3680_v13  ;;  %v3682_v21 = vadd.f32 %v3681_v37, %v9229_v63  ;;  %3762 = vadd.xlane.f32.xlu1 %v3761_v10  ;;  %v7572_v10 = vld [vmem:[#allocation15 + $0xe0] ss:$16 sps:$4 sm:$0xff]   ;;  %v7575_v37 = vld [vmem:[#allocation15 + $0xe8] ss:$16 sps:$4 sm:$0xff]   ;;  %v7580_v18 = vld [vmem:[#allocation15 + $0xc4] ss:$16 sps:$4 sm:$0xff]   ;;  %p8245_p1 = scmp.lt.s32.totalorder %s10429_s23, %s8243_s6 }
 0x624   : > { %v3683_v22 = vpop.f32.mrf.mxu0  ;;  %4649 = vmatpush1.bf16.msra.mxu0 %v7575_v37  ;;  %s8244_s20 = scalar_lea.vmem %s8243_s6, 8192 }
 0x625   : > { %v3684_v20 = vadd.f32 %v3683_v22, %v9232_v48  ;;  %v3764_v8 = vadd.f32 %v9360_v25, %v9357_v34  ;;  %v9367_v55 = vadd.f32 %v8046_v23, %v3682_v21  ;;  %v7578_v21 = vld [vmem:[#allocation15 + $0xc0] ss:$16 sps:$4 sm:$0xff]   ;;  %v7581_v22 = vld [vmem:[#allocation15 + $0xc8] ss:$16 sps:$4 sm:$0xff]   ;;  %p8246_p6 = scmp.lt.s32.totalorder %s8244_s20, %s8238_s24 }
 0x626   : > { %v3687_v0 = vpop.f32.mrf.mxu0  ;;  %v7587_v23 = vld [vmem:[#allocation15 + $0xa8] ss:$16 sps:$4 sm:$0xff]  }
 0x627   : > { %v9370_v35 = vadd.f32 %v8047_v29, %v3684_v20  ;;  %v3688_v9 = vadd.f32 %v3687_v0, %v9229_v63  ;;  %3765 = vadd.xlane.f32.xlu0 %v3764_v8  ;;  %v7586_v20 = vld [vmem:[#allocation15 + $0xa4] ss:$16 sps:$4 sm:$0xff]   ;;  %v7589_v8 = vld [vmem:[#allocation15 + $0xac] ss:$16 sps:$4 sm:$0xff]   ;;  %v7584_v0 = vld [vmem:[#allocation15 + $0xa0] ss:$16 sps:$4 sm:$0xff]   ;;  %p8247_p12 = por %p8246_p6, %p8245_p1 }
 0x628   : > { %v3689_v42 = vpop.f32.mrf.mxu0  ;;  %v7592_v29 = vld [vmem:[#allocation15 + $0x84] ss:$16 sps:$4 sm:$0xff]  }
 0x629   : > { %v3690_v30 = vadd.f32 %v3689_v42, %v9232_v48  ;;  %v3767_v40 = vadd.f32 %v9370_v35, %v9367_v55  ;;  %v9377_v38 = vadd.f32 %v8048_v4, %v3688_v9  ;;  %v7595_v9 = vld [vmem:[#allocation15 + $0x8c] ss:$16 sps:$4 sm:$0xff]   ;;  %v7590_v42 = vld [vmem:[#allocation15 + $0x80] ss:$16 sps:$4 sm:$0xff]   ;;  %p8248_p11 = pnand %p8247_p12, %p8241_p13 }
 0x62a   : > { %v3691_v26 = vpop.f32.mrf.mxu0  ;;  %v7596_v4 = vld [vmem:[#allocation15 + $0x60] ss:$16 sps:$4 sm:$0xff]  }
 0x62b   : > { %v9380_v45 = vadd.f32 %v8049_v31, %v3690_v30  ;;  %v3692_v62 = vadd.f32 %v3691_v26, %v9229_v63  ;;  %3768 = vadd.xlane.f32.xlu1 %v3767_v40  ;;  %v7574_v63 = vld [vmem:[#allocation15 + $0xe4] ss:$16 sps:$4 sm:$0xff]   ;;  %v7593_v30 = vld [vmem:[#allocation15 + $0x88] ss:$16 sps:$4 sm:$0xff]   ;;  %v7601_v26 = vld [vmem:[#allocation15 + $0x6c] ss:$16 sps:$4 sm:$0xff]  }
 0x62c   : > { %v3693_v41 = vpop.f32.mrf.mxu0  ;;  %4535 = vmatprep.subr.bf16.mxu1 %v7574_v63  ;;  %v7598_v40 = vld [vmem:[#allocation15 + $0x64] ss:$16 sps:$4 sm:$0xff]   ;;  %v7599_v31 = vld [vmem:[#allocation15 + $0x68] ss:$16 sps:$4 sm:$0xff]  }
 0x62d   : > { %v3694_v12 = vadd.f32 %v3693_v41, %v9232_v48  ;;  %v3770_v2 = vadd.f32 %v9380_v45, %v9377_v38  ;;  %v9387_v52 = vadd.f32 %v8050_v33, %v3692_v62  ;;  %v7583_v48 = vld [vmem:[#allocation15 + $0xcc] ss:$16 sps:$4 sm:$0xff]   ;;  %4536 = vmatpush1.bf16.msra.mxu1 %v7572_v10 }
 0x62e   : > { %4537 = vmatprep.subr.bf16.mxu1 %v7580_v18  ;;  %4650 = vmatprep.subr.bf16.mxu0 %v7583_v48 }
 0x62f   : > { %v9390_v11 = vadd.f32 %v8051_v51, %v3694_v12  ;;  %3771 = vadd.xlane.f32.xlu0 %v3770_v2  ;;  %4651 = vmatpush1.bf16.msra.mxu0 %v7581_v22 }
 0x630   : > { %4652 = vmatprep.subr.bf16.mxu0 %v7589_v8 }
 0x631   : > { %v3773_v13 = vadd.f32 %v9390_v11, %v9387_v52  ;;  %4538 = vmatpush1.bf16.msra.mxu1 %v7578_v21 }
 0x632   : > { %4539 = vmatprep.subr.bf16.mxu1 %v7586_v20 }
 0x633   : > { %3774 = vadd.xlane.f32.xlu1 %v3773_v13  ;;  %4653 = vmatpush1.bf16.msra.mxu0 %v7587_v23 }
 0x634   : > { %4654 = vmatprep.subr.bf16.mxu0 %v7595_v9 }
 0x635   : > { %4540 = vmatpush1.bf16.msra.mxu1 %v7584_v0 }
 0x636   : > { %4541 = vmatprep.subr.bf16.mxu1 %v7592_v29 }
 0x637   : > { %4655 = vmatpush1.bf16.msra.mxu0 %v7593_v30 }
 0x638   : > { %4656 = vmatprep.subr.bf16.mxu0 %v7601_v26 }
 0x639   : > { %4542 = vmatpush1.bf16.msra.mxu1 %v7590_v42 }
 0x63a   : > { %4543 = vmatprep.subr.bf16.mxu1 %v7598_v40 }
 0x63b   : > { %4657 = vmatpush1.bf16.msra.mxu0 %v7599_v31 }
 0x63d   : > { %4544 = vmatpush1.bf16.msra.mxu1 %v7596_v4  ;;  %v7604_v4 = vld [vmem:[#allocation15 + $0x44] ss:$16 sps:$4 sm:$0xff]  }
 0x63e   : > { %4545 = vmatprep.subr.bf16.mxu1 %v7604_v4 }
 0x680   : > { %v3730_v62 = vpop.xlane.xlu0 %3729 }
 0x681   : > { %v3777_v41 = vmul.f32 0.00390625, %v3730_v62  ;;  %v7602_v62 = vld [vmem:[#allocation15 + $0x40] ss:$16 sps:$4 sm:$0xff]  }
 0x682   : > { %4546 = vmatpush1.bf16.msra.mxu1 %v7602_v62  ;;  %v7625_v62 = vld [vmem:[#allocation15 + $0x1ec] ss:$16 sps:$4 sm:$0xff]  }
 0x683   : > { %v9395_v12 = vsub.f32 %v9237_v49, %v3777_v41  ;;  %v9398_v2 = vsub.f32 %v9240_v3, %v3777_v41  ;;  %v7605_v41 = vld [vmem:[#allocation15 + $0x48] ss:$16 sps:$4 sm:$0xff]  }
 0x684   : > { %v3733_v33 = vpop.xlane.xlu1 %3732 }
 0x685   : > { %v3778_v51 = vmul.f32 0.00390625, %v3733_v33  ;;  %v3825_v13 = vmul.f32 %v9395_v12, %v9395_v12  ;;  %v3826_v10 = vmul.f32 %v9398_v2, %v9398_v2 }
 0x687   : > { %v9405_v63 = vsub.f32 %v9247_v14, %v3778_v51  ;;  %v9408_v37 = vsub.f32 %v9250_v60, %v3778_v51  ;;  %v3857_v54 = vadd.f32 %v3826_v10, %v3825_v13 }
 0x688   : > { %v3736_v49 = vpop.xlane.xlu0 %3735 }
 0x689   : > { %v3779_v18 = vmul.f32 0.00390625, %v3736_v49  ;;  %3858 = vadd.xlane.f32.xlu0 %v3857_v54  ;;  %v3827_v3 = vmul.f32 %v9405_v63, %v9405_v63  ;;  %v3828_v48 = vmul.f32 %v9408_v37, %v9408_v37  ;;  %v7610_v54 = vld [vmem:[#allocation15 + $0x24] ss:$16 sps:$4 sm:$0xff]   ;;  %v7613_v49 = vld [vmem:[#allocation15 + $0x2c] ss:$16 sps:$4 sm:$0xff]  }
 0x68a   : > { %4547 = vmatprep.subr.bf16.mxu1 %v7610_v54 }
 0x68b   : > { %v9415_v21 = vsub.f32 %v9257_v27, %v3779_v18  ;;  %v9418_v22 = vsub.f32 %v9260_v16, %v3779_v18  ;;  %v3860_v14 = vadd.f32 %v3828_v48, %v3827_v3  ;;  %v7608_v3 = vld [vmem:[#allocation15 + $0x20] ss:$16 sps:$4 sm:$0xff]   ;;  %v7611_v48 = vld [vmem:[#allocation15 + $0x28] ss:$16 sps:$4 sm:$0xff]  }
 0x68c   : > { %v3739_v20 = vpop.xlane.xlu1 %3738  ;;  %4548 = vmatpush1.bf16.msra.mxu1 %v7608_v3  ;;  %v7631_v3 = vld [vmem:[#allocation15 + $0x1cc] ss:$16 sps:$4 sm:$0xff]  }
 0x68d   : > { %v3780_v60 = vmul.f32 0.00390625, %v3739_v20  ;;  %3861 = vadd.xlane.f32.xlu1 %v3860_v14  ;;  %v3829_v8 = vmul.f32 %v9415_v21, %v9415_v21  ;;  %v3830_v0 = vmul.f32 %v9418_v22, %v9418_v22 }
 0x68f   : > { %v9425_v23 = vsub.f32 %v9267_v32, %v3780_v60  ;;  %v9428_v29 = vsub.f32 %v9270_v58, %v3780_v60  ;;  %v3863_v27 = vadd.f32 %v3830_v0, %v3829_v8  ;;  %v7607_v58 = vld [vmem:[#allocation15 + $0x4c] ss:$16 sps:$4 sm:$0xff]   ;;  %v7616_v0 = vld [vmem:[#allocation15 + $0x4] ss:$16 sps:$4 sm:$0xff]  }
 0x690   : > { %v3742_v9 = vpop.xlane.xlu0 %3741  ;;  %4658 = vmatprep.subr.bf16.mxu0 %v7607_v58  ;;  %4549 = vmatprep.subr.bf16.mxu1 %v7616_v0 }
 0x691   : > { %v3781_v16 = vmul.f32 0.00390625, %v3742_v9  ;;  %3864 = vadd.xlane.f32.xlu0 %v3863_v27  ;;  %v3831_v42 = vmul.f32 %v9425_v23, %v9425_v23  ;;  %v3832_v30 = vmul.f32 %v9428_v29, %v9428_v29  ;;  %4659 = vmatpush1.bf16.msra.mxu0 %v7605_v41  ;;  %v7619_v27 = vld [vmem:[#allocation15 + $0xc] ss:$16 sps:$4 sm:$0xff]  }
 0x692   : > { %4660 = vmatprep.subr.bf16.mxu0 %v7613_v49 }
 0x693   : > { %v9435_v40 = vsub.f32 %v9277_v17, %v3781_v16  ;;  %v9438_v26 = vsub.f32 %v9280_v28, %v3781_v16  ;;  %v3866_v32 = vadd.f32 %v3832_v30, %v3831_v42  ;;  %v7614_v16 = vld [vmem:[#allocation15] ss:$16 sps:$4 sm:$0xff]   ;;  %v7617_v42 = vld [vmem:[#allocation15 + $0x8] ss:$16 sps:$4 sm:$0xff]  }
 0x694   : > { %v3745_v31 = vpop.xlane.xlu1 %3744  ;;  %4550 = vmatpush1.bf16.msra.mxu1 %v7614_v16  ;;  %v7637_v16 = vld [vmem:[#allocation15 + $0x1ac] ss:$16 sps:$4 sm:$0xff]  }
 0x695   : > { %v3782_v33 = vmul.f32 0.00390625, %v3745_v31  ;;  %3867 = vadd.xlane.f32.xlu1 %v3866_v32  ;;  %v3833_v51 = vmul.f32 %v9435_v40, %v9435_v40  ;;  %v3834_v13 = vmul.f32 %v9438_v26, %v9438_v26  ;;  %4661 = vmatpush1.bf16.msra.mxu0 %v7611_v48  ;;  %v7622_v31 = vld [vmem:[#allocation15 + $0x1e4] ss:$16 sps:$4 sm:$0xff]  }
 0x696   : > { %4662 = vmatprep.subr.bf16.mxu0 %v7619_v27  ;;  %4551 = vmatprep.subr.bf16.mxu1 %v7622_v31 }
 0x697   : > { %v9445_v17 = vsub.f32 %v9287_v19, %v3782_v33  ;;  %v9448_v28 = vsub.f32 %v9290_v43, %v3782_v33  ;;  %v3869_v10 = vadd.f32 %v3834_v13, %v3833_v51  ;;  %v7620_v33 = vld [vmem:[#allocation15 + $0x1e0] ss:$16 sps:$4 sm:$0xff]   ;;  %v7623_v51 = vld [vmem:[#allocation15 + $0x1e8] ss:$16 sps:$4 sm:$0xff]  }
 0x698   : > { %v3748_v18 = vpop.xlane.xlu0 %3747  ;;  %4552 = vmatpush2.bf16.msra.mxu1 %v7620_v33  ;;  %v7643_v33 = vld [vmem:[#allocation15 + $0x18c] ss:$16 sps:$4 sm:$0xff]  }
 0x699   : > { %v3783_v14 = vmul.f32 0.00390625, %v3748_v18  ;;  %3870 = vadd.xlane.f32.xlu0 %v3869_v10  ;;  %v3835_v20 = vmul.f32 %v9445_v17, %v9445_v17  ;;  %v3836_v60 = vmul.f32 %v9448_v28, %v9448_v28  ;;  %4663 = vmatpush1.bf16.msra.mxu0 %v7617_v42  ;;  %v7628_v18 = vld [vmem:[#allocation15 + $0x1c4] ss:$16 sps:$4 sm:$0xff]  }
 0x69a   : > { %4664 = vmatprep.subr.bf16.mxu0 %v7625_v62  ;;  %4553 = vmatprep.subr.bf16.mxu1 %v7628_v18 }
 0x69b   : > { %v9455_v19 = vsub.f32 %v9297_v39, %v3783_v14  ;;  %v9458_v43 = vsub.f32 %v9300_v44, %v3783_v14  ;;  %v3872_v8 = vadd.f32 %v3836_v60, %v3835_v20  ;;  %v7626_v14 = vld [vmem:[#allocation15 + $0x1c0] ss:$16 sps:$4 sm:$0xff]   ;;  %v7629_v20 = vld [vmem:[#allocation15 + $0x1c8] ss:$16 sps:$4 sm:$0xff]  }
 0x69c   : > { %v3751_v9 = vpop.xlane.xlu1 %3750  ;;  %4554 = vmatpush2.bf16.msra.mxu1 %v7626_v14  ;;  %v7649_v14 = vld [vmem:[#allocation15 + $0x16c] ss:$16 sps:$4 sm:$0xff]  }
 0x69d   : > { %v3784_v30 = vmul.f32 0.00390625, %v3751_v9  ;;  %3873 = vadd.xlane.f32.xlu1 %v3872_v8  ;;  %v3837_v32 = vmul.f32 %v9455_v19, %v9455_v19  ;;  %v3838_v4 = vmul.f32 %v9458_v43, %v9458_v43  ;;  %4665 = vmatpush2.bf16.msra.mxu0 %v7623_v51  ;;  %v7634_v9 = vld [vmem:[#allocation15 + $0x1a4] ss:$16 sps:$4 sm:$0xff]  }
 0x69e   : > { %4666 = vmatprep.subr.bf16.mxu0 %v7631_v3  ;;  %4555 = vmatprep.subr.bf16.mxu1 %v7634_v9 }
 0x69f   : > { %v9465_v39 = vsub.f32 %v9307_v56, %v3784_v30  ;;  %v9468_v44 = vsub.f32 %v9310_v57, %v3784_v30  ;;  %v3875_v58 = vadd.f32 %v3838_v4, %v3837_v32  ;;  %v7632_v30 = vld [vmem:[#allocation15 + $0x1a0] ss:$16 sps:$4 sm:$0xff]   ;;  %v7635_v32 = vld [vmem:[#allocation15 + $0x1a8] ss:$16 sps:$4 sm:$0xff]  }
 0x6a0   : > { %v3754_v41 = vpop.xlane.xlu0 %3753  ;;  %4556 = vmatpush2.bf16.msra.mxu1 %v7632_v30  ;;  %v7655_v30 = vld [vmem:[#allocation15 + $0x14c] ss:$16 sps:$4 sm:$0xff]  }
 0x6a1   : > { %v3785_v13 = vmul.f32 0.00390625, %v3754_v41  ;;  %3876 = vadd.xlane.f32.xlu0 %v3875_v58  ;;  %v3839_v10 = vmul.f32 %v9465_v39, %v9465_v39  ;;  %v3840_v54 = vmul.f32 %v9468_v44, %v9468_v44  ;;  %4667 = vmatpush2.bf16.msra.mxu0 %v7629_v20  ;;  %v7640_v41 = vld [vmem:[#allocation15 + $0x184] ss:$16 sps:$4 sm:$0xff]  }
 0x6a2   : > { %4668 = vmatprep.subr.bf16.mxu0 %v7637_v16  ;;  %4557 = vmatprep.subr.bf16.mxu1 %v7640_v41 }
 0x6a3   : > { %v9475_v56 = vsub.f32 %v9317_v1, %v3785_v13  ;;  %v9478_v57 = vsub.f32 %v9320_v5, %v3785_v13  ;;  %v3878_v49 = vadd.f32 %v3840_v54, %v3839_v10  ;;  %v7638_v13 = vld [vmem:[#allocation15 + $0x180] ss:$16 sps:$4 sm:$0xff]   ;;  %v7641_v10 = vld [vmem:[#allocation15 + $0x188] ss:$16 sps:$4 sm:$0xff]  }
 0x6a4   : > { %v3757_v48 = vpop.xlane.xlu1 %3756  ;;  %4558 = vmatpush2.bf16.msra.mxu1 %v7638_v13  ;;  %v7661_v13 = vld [vmem:[#allocation15 + $0x12c] ss:$16 sps:$4 sm:$0xff]  }
 0x6a5   : > { %v3786_v60 = vmul.f32 0.00390625, %v3757_v48  ;;  %3879 = vadd.xlane.f32.xlu1 %v3878_v49  ;;  %v3841_v8 = vmul.f32 %v9475_v56, %v9475_v56  ;;  %v3842_v0 = vmul.f32 %v9478_v57, %v9478_v57  ;;  %4669 = vmatpush2.bf16.msra.mxu0 %v7635_v32  ;;  %v7646_v48 = vld [vmem:[#allocation15 + $0x164] ss:$16 sps:$4 sm:$0xff]  }
 0x6a6   : > { %4670 = vmatprep.subr.bf16.mxu0 %v7643_v33  ;;  %4559 = vmatprep.subr.bf16.mxu1 %v7646_v48 }
 0x6a7   : > { %v9485_v1 = vsub.f32 %v9327_v36, %v3786_v60  ;;  %v9488_v5 = vsub.f32 %v9330_v6, %v3786_v60  ;;  %v3881_v27 = vadd.f32 %v3842_v0, %v3841_v8  ;;  %v7644_v60 = vld [vmem:[#allocation15 + $0x160] ss:$16 sps:$4 sm:$0xff]   ;;  %v7647_v8 = vld [vmem:[#allocation15 + $0x168] ss:$16 sps:$4 sm:$0xff]  }
 0x6a8   : > { %v3760_v42 = vpop.xlane.xlu0 %3759  ;;  %4560 = vmatpush2.bf16.msra.mxu1 %v7644_v60  ;;  %v7667_v60 = vld [vmem:[#allocation15 + $0x10c] ss:$16 sps:$4 sm:$0xff]  }
 0x6a9   : > { %v3787_v4 = vmul.f32 0.00390625, %v3760_v42  ;;  %3882 = vadd.xlane.f32.xlu0 %v3881_v27  ;;  %v3843_v58 = vmul.f32 %v9485_v1, %v9485_v1  ;;  %v3844_v31 = vmul.f32 %v9488_v5, %v9488_v5  ;;  %4671 = vmatpush2.bf16.msra.mxu0 %v7641_v10  ;;  %v7652_v42 = vld [vmem:[#allocation15 + $0x144] ss:$16 sps:$4 sm:$0xff]  }
 0x6aa   : > { %4672 = vmatprep.subr.bf16.mxu0 %v7649_v14  ;;  %4561 = vmatprep.subr.bf16.mxu1 %v7652_v42 }
 0x6ab   : > { %v9495_v36 = vsub.f32 %v9337_v24, %v3787_v4  ;;  %v9498_v6 = vsub.f32 %v9340_v15, %v3787_v4  ;;  %v3884_v62 = vadd.f32 %v3844_v31, %v3843_v58  ;;  %v7650_v4 = vld [vmem:[#allocation15 + $0x140] ss:$16 sps:$4 sm:$0xff]   ;;  %v7653_v58 = vld [vmem:[#allocation15 + $0x148] ss:$16 sps:$4 sm:$0xff]  }
 0x6ac   : > { %v3763_v51 = vpop.xlane.xlu1 %3762  ;;  %4562 = vmatpush2.bf16.msra.mxu1 %v7650_v4 }
 0x6ad   : > { %v3788_v54 = vmul.f32 0.00390625, %v3763_v51  ;;  %3885 = vadd.xlane.f32.xlu1 %v3884_v62  ;;  %v3845_v49 = vmul.f32 %v9495_v36, %v9495_v36  ;;  %v3846_v18 = vmul.f32 %v9498_v6, %v9498_v6  ;;  %4673 = vmatpush2.bf16.msra.mxu0 %v7647_v8  ;;  %v7658_v51 = vld [vmem:[#allocation15 + $0x124] ss:$16 sps:$4 sm:$0xff]  }
 0x6ae   : > { %4674 = vmatprep.subr.bf16.mxu0 %v7655_v30  ;;  %4563 = vmatprep.subr.bf16.mxu1 %v7658_v51 }
 0x6af   : > { %v9505_v24 = vsub.f32 %v9347_v47, %v3788_v54  ;;  %v9508_v15 = vsub.f32 %v9350_v53, %v3788_v54  ;;  %v3887_v3 = vadd.f32 %v3846_v18, %v3845_v49  ;;  %v7656_v54 = vld [vmem:[#allocation15 + $0x120] ss:$16 sps:$4 sm:$0xff]   ;;  %v7659_v49 = vld [vmem:[#allocation15 + $0x128] ss:$16 sps:$4 sm:$0xff]  }
 0x6b0   : > { %v3766_v20 = vpop.xlane.xlu0 %3765  ;;  %4564 = vmatpush2.bf16.msra.mxu1 %v7656_v54 }
 0x6b1   : > { %v3789_v0 = vmul.f32 0.00390625, %v3766_v20  ;;  %3888 = vadd.xlane.f32.xlu0 %v3887_v3  ;;  %v3847_v27 = vmul.f32 %v9505_v24, %v9505_v24  ;;  %v3848_v9 = vmul.f32 %v9508_v15, %v9508_v15  ;;  %4675 = vmatpush2.bf16.msra.mxu0 %v7653_v58  ;;  %v7664_v20 = vld [vmem:[#allocation15 + $0x104] ss:$16 sps:$4 sm:$0xff]  }
 0x6b2   : > { %4676 = vmatprep.subr.bf16.mxu0 %v7661_v13  ;;  %4565 = vmatprep.subr.bf16.mxu1 %v7664_v20 }
 0x6b3   : > { %v9515_v47 = vsub.f32 %v9357_v34, %v3789_v0  ;;  %v9518_v53 = vsub.f32 %v9360_v25, %v3789_v0  ;;  %v3890_v16 = vadd.f32 %v3848_v9, %v3847_v27  ;;  %v7662_v0 = vld [vmem:[#allocation15 + $0x100] ss:$16 sps:$4 sm:$0xff]   ;;  %v7665_v27 = vld [vmem:[#allocation15 + $0x108] ss:$16 sps:$4 sm:$0xff]  }
 0x6b4   : > { %v3769_v32 = vpop.xlane.xlu1 %3768  ;;  %4566 = vmatpush2.bf16.msra.mxu1 %v7662_v0 }
 0x6b5   : > { %v3790_v31 = vmul.f32 0.00390625, %v3769_v32  ;;  %3891 = vadd.xlane.f32.xlu1 %v3890_v16  ;;  %v3849_v62 = vmul.f32 %v9515_v47, %v9515_v47  ;;  %v3850_v41 = vmul.f32 %v9518_v53, %v9518_v53  ;;  %4677 = vmatpush2.bf16.msra.mxu0 %v7659_v49 }
 0x6b6   : > { %4678 = vmatprep.subr.bf16.mxu0 %v7667_v60 }
 0x6b7   : > { %v9525_v34 = vsub.f32 %v9367_v55, %v3790_v31  ;;  %v9528_v25 = vsub.f32 %v9370_v35, %v3790_v31  ;;  %v3893_v33 = vadd.f32 %v3850_v41, %v3849_v62  ;;  %v7670_v31 = vld [vmem:[#allocation17 + $0x74] ss:$8 sps:$4 sm:$0xff]  }
 0x6b8   : > { %v3772_v10 = vpop.xlane.xlu0 %3771  ;;  %v9554_v62 = vld [vmem:[#allocation17 + $0x174] ss:$8 sps:$4 sm:$0xff]   ;;  %5253 = vmatprep.subr.bf16.mxu1 %v7670_v31 }
 0x6b9   : > { %v3791_v18 = vmul.f32 0.00390625, %v3772_v10  ;;  %3894 = vadd.xlane.f32.xlu0 %v3893_v33  ;;  %v3851_v3 = vmul.f32 %v9525_v34, %v9525_v34  ;;  %v3852_v48 = vmul.f32 %v9528_v25, %v9528_v25  ;;  %4679 = vmatpush2.bf16.msra.mxu0 %v7665_v27 }
 0x6ba   : > { %5366 = vmatprep.subr.bf16.mxu0 %v9554_v62 }
 0x6bb   : > { %v9535_v55 = vsub.f32 %v9377_v38, %v3791_v18  ;;  %v9538_v35 = vsub.f32 %v9380_v45, %v3791_v18  ;;  %v3896_v14 = vadd.f32 %v3852_v48, %v3851_v3 }
 0x6bc   : > { %v3775_v8 = vpop.xlane.xlu1 %3774 }
 0x6bd   : > { %v3792_v9 = vmul.f32 0.00390625, %v3775_v8  ;;  %3897 = vadd.xlane.f32.xlu1 %v3896_v14  ;;  %v3853_v16 = vmul.f32 %v9535_v55, %v9535_v55  ;;  %v3854_v42 = vmul.f32 %v9538_v35, %v9538_v35 }
 0x6bf   : > { %v9545_v38 = vsub.f32 %v9387_v52, %v3792_v9  ;;  %v9548_v45 = vsub.f32 %v9390_v11, %v3792_v9  ;;  %v3899_v30 = vadd.f32 %v3854_v42, %v3853_v16 }
 0x6c1   : > { %3900 = vadd.xlane.f32.xlu0 %v3899_v30  ;;  %v3855_v32 = vmul.f32 %v9545_v38, %v9545_v38  ;;  %v3856_v4 = vmul.f32 %v9548_v45, %v9548_v45 }
 0x6c3   : > { %v3902_v58 = vadd.f32 %v3856_v4, %v3855_v32 }
 0x6c5   : > { %3903 = vadd.xlane.f32.xlu1 %v3902_v58 }
 0x712   : > { %v3859_v52 = vpop.xlane.xlu0 %3858 }
 0x713   : > { %v3905_v11 = vmul.f32 0.003921569, %v3859_v52 }
 0x715   : > { %7892 = vrsqrt.f32 %v3905_v11  ;;  %vm3923_vm0 = vcmp.eq.f32.partialorder %v3905_v11, inf  ;;  %v3926_v14 = vand.u32 2147483648, %v3905_v11  ;;  %vm3925_vm1 = vcmp.eq.f32.partialorder %v3905_v11, 0.0 }
 0x716   : > { %v3862_v41 = vpop.xlane.xlu1 %3861 }
 0x717   : > { %v3906_v33 = vmul.f32 0.003921569, %v3862_v41 }
 0x719   : > { %7894 = vrsqrt.f32 %v3906_v33  ;;  %vm3930_vm2 = vcmp.eq.f32.partialorder %v3906_v33, inf  ;;  %v3933_v16 = vand.u32 2147483648, %v3906_v33  ;;  %vm3932_vm3 = vcmp.eq.f32.partialorder %v3906_v33, 0.0 }
 0x71a   : > { %v3865_v51 = vpop.xlane.xlu0 %3864 }
 0x71b   : > { %v3907_v13 = vmul.f32 0.003921569, %v3865_v51 }
 0x71d   : > { %7896 = vrsqrt.f32 %v3907_v13  ;;  %vm3937_vm4 = vcmp.eq.f32.partialorder %v3907_v13, inf  ;;  %vm3939_vm5 = vcmp.eq.f32.partialorder %v3907_v13, 0.0 }
 0x71e   : > { %v3868_v10 = vpop.xlane.xlu1 %3867 }
 0x71f   : > { %v3908_v54 = vmul.f32 0.003921569, %v3868_v10 }
 0x721   : > { %7898 = vrsqrt.f32 %v3908_v54  ;;  %vm3944_vm6 = vcmp.eq.f32.partialorder %v3908_v54, inf  ;;  %vm3946_vm7 = vcmp.eq.f32.partialorder %v3908_v54, 0.0 }
 0x722   : > { %v7893_v49 = vpop.eup %7892  ;;  %v3871_v18 = vpop.xlane.xlu0 %3870 }
 0x723   : > { %v3922_v3 = vmul.f32 %v7893_v49, %v3905_v11  ;;  %v3909_v48 = vmul.f32 0.003921569, %v3871_v18 }
 0x725   : > { %v3924_v20 = vsel %vm3923_vm0, %v3905_v11, %v3922_v3  ;;  %7900 = vrsqrt.f32 %v3909_v48  ;;  %v3940_v11 = vand.u32 2147483648, %v3907_v13  ;;  %vm3951_vm8 = vcmp.eq.f32.partialorder %v3909_v48, inf }
 0x726   : > { %v7895_v60 = vpop.eup %7894  ;;  %v3874_v8 = vpop.xlane.xlu1 %3873  ;;  %v3927_v0 = vsel %vm3925_vm1, %v3926_v14, %v3924_v20  ;;  %v3947_v20 = vand.u32 2147483648, %v3908_v54  ;;  %vm3953_vm9 = vcmp.eq.f32.partialorder %v3909_v48, 0.0 }
 0x727   : > { %v3929_v27 = vmul.f32 %v7895_v60, %v3906_v33  ;;  %v3910_v9 = vmul.f32 0.003921569, %v3874_v8  ;;  %v4033_v42 = vadd.f32 1e-06, %v3927_v0 }
 0x729   : > { %v3931_v30 = vsel %vm3930_vm2, %v3906_v33, %v3929_v27  ;;  %7902 = vrsqrt.f32 %v3910_v9  ;;  %vm3958_vm10 = vcmp.eq.f32.partialorder %v3910_v9, inf  ;;  %vm3960_vm11 = vcmp.eq.f32.partialorder %v3910_v9, 0.0 }
 0x72a   : > { %v7897_v32 = vpop.eup %7896  ;;  %v3877_v4 = vpop.xlane.xlu0 %3876  ;;  %v3934_v58 = vsel %vm3932_vm3, %v3933_v16, %v3931_v30  ;;  %7904 = vrcp.f32 %v4033_v42  ;;  %v3954_v30 = vand.u32 2147483648, %v3909_v48 }
 0x72b   : > { %v3936_v31 = vmul.f32 %v7897_v32, %v3907_v13  ;;  %v9557_v52 = vmul.f32 0.003921569, %v3877_v4  ;;  %v4034_v41 = vadd.f32 1e-06, %v3934_v58 }
 0x72d   : > { %v3938_v51 = vsel %vm3937_vm4, %v3907_v13, %v3936_v31  ;;  %7906 = vrsqrt.f32 %v9557_v52  ;;  %vm3965_vm12 = vcmp.eq.f32.partialorder %v9557_v52, inf  ;;  %vm3967_vm13 = vcmp.eq.f32.partialorder %v9557_v52, 0.0 }
 0x72e   : > { %v7899_v10 = vpop.eup %7898  ;;  %v3880_v49 = vpop.xlane.xlu1 %3879  ;;  %7908 = vrcp.f32 %v4034_v41  ;;  %v3941_v18 = vsel %vm3939_vm5, %v3940_v11, %v3938_v51  ;;  %v3961_v51 = vand.u32 2147483648, %v3910_v9 }
 0x72f   : > { %v3943_v33 = vmul.f32 %v7899_v10, %v3908_v54  ;;  %v9560_v3 = vmul.f32 0.003921569, %v3880_v49  ;;  %v4035_v14 = vadd.f32 1e-06, %v3941_v18 }
 0x731   : > { %v3945_v60 = vsel %vm3944_vm6, %v3908_v54, %v3943_v33  ;;  %7910 = vrsqrt.f32 %v9560_v3  ;;  %vm3972_vm14 = vcmp.eq.f32.partialorder %v9560_v3, inf  ;;  %vm3974_vm15 = vcmp.eq.f32.partialorder %v9560_v3, 0.0 }
 0x732   : > { %v7901_v8 = vpop.eup %7900  ;;  %v3883_v0 = vpop.xlane.xlu0 %3882  ;;  %v3948_v27 = vsel %vm3946_vm7, %v3947_v20, %v3945_v60  ;;  %7912 = vrcp.f32 %v4035_v14 }
 0x733   : > { %v3950_v13 = vmul.f32 %v7901_v8, %v3909_v48  ;;  %v9563_v16 = vmul.f32 0.003921569, %v3883_v0  ;;  %v4036_v42 = vadd.f32 1e-06, %v3948_v27 }
 0x735   : > { %v3952_v32 = vsel %vm3951_vm8, %v3909_v48, %v3950_v13  ;;  %7914 = vrsqrt.f32 %v9563_v16  ;;  %vm3979_vm0 = vcmp.eq.f32.partialorder %v9563_v16, inf  ;;  %vm3981_vm1 = vcmp.eq.f32.partialorder %v9563_v16, 0.0 }
 0x736   : > { %v7903_v4 = vpop.eup %7902  ;;  %v3886_v58 = vpop.xlane.xlu1 %3885  ;;  %7916 = vrcp.f32 %v4036_v42  ;;  %v3955_v54 = vsel %vm3953_vm9, %v3954_v30, %v3952_v32  ;;  %v3968_v30 = vand.u32 2147483648, %v9557_v52 }
 0x737   : > { %v3957_v31 = vmul.f32 %v7903_v4, %v3910_v9  ;;  %v9566_v41 = vmul.f32 0.003921569, %v3886_v58  ;;  %v4037_v11 = vadd.f32 1e-06, %v3955_v54  ;;  %v7905_v10 = vpop.eup %7904  ;;  %v7668_v4 = vld [vmem:[#allocation17 + $0x70] ss:$8 sps:$4 sm:$0xff]  }
 0x738   : > { %v9574_v0 = vmul.f32 %v7905_v10, %v9398_v2 }
 0x739   : > { %v3959_v49 = vsel %vm3958_vm10, %v3910_v9, %v3957_v31  ;;  %7918 = vrsqrt.f32 %v9566_v41  ;;  %v9580_v9 = vmul.f32 %v7905_v10, %v9395_v12  ;;  %v3975_v10 = vand.u32 2147483648, %v9560_v3 }
 0x73a   : > { %v7907_v18 = vpop.eup %7906  ;;  %v3889_v48 = vpop.xlane.xlu0 %3888  ;;  %v3962_v33 = vsel %vm3960_vm11, %v3961_v51, %v3959_v49  ;;  %7920 = vrcp.f32 %v4037_v11  ;;  %10564 = vst [vmem:[#allocation27_spill] sm:$0xff] %v9574_v0  ;;  %v7676_v11 = vld [vmem:[#allocation17 + $0x64] ss:$8 sps:$4 sm:$0xff]   ;;  %vm3986_vm2 = vcmp.eq.f32.partialorder %v9566_v41, inf  ;;  %vm3988_vm3 = vcmp.eq.f32.partialorder %v9566_v41, 0.0 }
 0x73b   : > { %v7909_v14 = vpop.eup %7908  ;;  %v3964_v20 = vmul.f32 %v7907_v18, %v9557_v52  ;;  %v9571_v60 = vmul.f32 0.003921569, %v3889_v48  ;;  %v4038_v8 = vadd.f32 1e-06, %v3962_v33  ;;  %10566 = vst [vmem:[#allocation29_spill] sm:$0xff] %v9580_v9 }
 0x73c   : > { %v9577_v27 = vmul.f32 %v7909_v14, %v9408_v37  ;;  %v9583_v13 = vmul.f32 %v7909_v14, %v9405_v63  ;;  %v9593_v63 = vld [vmem:[#allocation17 + $0x170] ss:$8 sps:$4 sm:$0xff]   ;;  %v9598_v51 = vld [vmem:[#allocation17 + $0x164] ss:$8 sps:$4 sm:$0xff]   ;;  %v7674_v48 = vld [vmem:[#allocation17 + $0x60] ss:$8 sps:$4 sm:$0xff]  }
 0x73d   : > { %v3966_v42 = vsel %vm3965_vm12, %v9557_v52, %v3964_v20  ;;  %7922 = vrsqrt.f32 %v9571_v60  ;;  %vm3993_vm4 = vcmp.eq.f32.partialorder %v9571_v60, inf  ;;  %vm3995_vm5 = vcmp.eq.f32.partialorder %v9571_v60, 0.0 }
 0x73e   : > { %10565 = vst [vmem:[#allocation28_spill] sm:$0xff] %v9577_v27  ;;  %10567 = vst [vmem:[#allocation30_spill] sm:$0xff] %v9583_v13  ;;  %v7911_v32 = vpop.eup %7910  ;;  %v3892_v2 = vpop.xlane.xlu1 %3891  ;;  %v4114_v37 = vpack.c.bf16 %v9577_v27, %v9574_v0  ;;  %v4113_v12 = vpack.c.bf16 %v9583_v13, %v9580_v9  ;;  %7924 = vrcp.f32 %v4038_v8  ;;  %v3969_v31 = vsel %vm3967_vm13, %v3968_v30, %v3966_v42  ;;  %v9607_v8 = vld [vmem:[#allocation17 + $0x160] ss:$8 sps:$4 sm:$0xff]   ;;  %v7682_v42 = vld [vmem:[#allocation17 + $0x54] ss:$8 sps:$4 sm:$0xff]  }
 0x73f   : > { %v3971_v58 = vmul.f32 %v7911_v32, %v9560_v3  ;;  %v9596_v54 = vmul.f32 0.003921569, %v3892_v2  ;;  %v7913_v52 = vpop.eup %7912  ;;  %v4039_v49 = vadd.f32 1e-06, %v3969_v31 }
 0x740   : > { %4567 = vmatprep.mubr.bf16.mxu1 %v4114_v37  ;;  %4680 = vmatprep.mubr.bf16.mxu0 %v4114_v37  ;;  %v9613_v2 = vmul.f32 %v7913_v52, %v9418_v22 }
 0x741   : > { %v3973_v18 = vsel %vm3972_vm14, %v9560_v3, %v3971_v58  ;;  %7926 = vrsqrt.f32 %v9596_v54  ;;  %4568 = vmatmul.mubr.bf16.vlgmr.msra.gmra.mxu1 %v4113_v12  ;;  %4681 = vmatmul.mubr.bf16.vlgmr.msra.gmra.mxu0 %v4113_v12  ;;  %v9616_v12 = vld [vmem:[#allocation17 + $0x154] ss:$8 sps:$4 sm:$0xff]   ;;  %v9622_v58 = vmul.f32 %v7913_v52, %v9415_v21  ;;  %v7680_v52 = vld [vmem:[#allocation17 + $0x50] ss:$8 sps:$4 sm:$0xff]   ;;  %vm4000_vm6 = vcmp.eq.f32.partialorder %v9596_v54, inf }
 0x742   : > { %v7915_v33 = vpop.eup %7914  ;;  %v3895_v14 = vpop.xlane.xlu0 %3894  ;;  %v3976_v20 = vsel %vm3974_vm15, %v3975_v10, %v3973_v18  ;;  %5254 = vmatpush1.bf16.msra.mxu1 %v7668_v4  ;;  %5367 = vmatpush1.bf16.msra.mxu0 %v9593_v63  ;;  %10568 = vst [vmem:[#allocation31_spill] sm:$0xff] %v9613_v2  ;;  %7928 = vrcp.f32 %v4039_v49  ;;  %v9638_v49 = vld [vmem:[#allocation17 + $0x150] ss:$8 sps:$4 sm:$0xff]   ;;  %vm4002_vm7 = vcmp.eq.f32.partialorder %v9596_v54, 0.0 }
 0x743   : > { %v7917_v30 = vpop.eup %7916  ;;  %v3978_v32 = vmul.f32 %v7915_v33, %v9563_v16  ;;  %v9610_v3 = vmul.f32 0.003921569, %v3895_v14  ;;  %v4040_v37 = vadd.f32 1e-06, %v3976_v20  ;;  %5255 = vmatprep.subr.bf16.mxu1 %v7676_v11  ;;  %5368 = vmatprep.subr.bf16.mxu0 %v9598_v51  ;;  %10570 = vst [vmem:[#allocation33_spill] sm:$0xff] %v9622_v58  ;;  %v3982_v11 = vand.u32 2147483648, %v9563_v16 }
 0x744   : > { %v9619_v4 = vmul.f32 %v7917_v30, %v9428_v29  ;;  %v9625_v31 = vmul.f32 %v7917_v30, %v9425_v23  ;;  %v9644_v20 = vld [vmem:[#allocation17 + $0x144] ss:$8 sps:$4 sm:$0xff]  }
 0x745   : > { %v3980_v22 = vsel %vm3979_vm0, %v9563_v16, %v3978_v32  ;;  %7930 = vrsqrt.f32 %v9610_v3  ;;  %v7688_v16 = vld [vmem:[#allocation17 + $0x44] ss:$8 sps:$4 sm:$0xff]   ;;  %vm4007_vm8 = vcmp.eq.f32.partialorder %v9610_v3, inf  ;;  %vm4009_vm9 = vcmp.eq.f32.partialorder %v9610_v3, 0.0 }
 0x746   : > { %10569 = vst [vmem:[#allocation32_spill] sm:$0xff] %v9619_v4  ;;  %10571 = vst [vmem:[#allocation34_spill] sm:$0xff] %v9625_v31  ;;  %v7919_v10 = vpop.eup %7918  ;;  %v3898_v29 = vpop.xlane.xlu1 %3897  ;;  %v4116_v21 = vpack.c.bf16 %v9619_v4, %v9613_v2  ;;  %v4115_v23 = vpack.c.bf16 %v9625_v31, %v9622_v58  ;;  %7932 = vrcp.f32 %v4040_v37  ;;  %5256 = vmatpush1.bf16.msra.mxu1 %v7674_v48  ;;  %5369 = vmatpush1.bf16.msra.mxu0 %v9607_v8 }
 0x747   : > { %v3985_v18 = vmul.f32 %v7919_v10, %v9566_v41  ;;  %v9641_v33 = vmul.f32 0.003921569, %v3898_v29  ;;  %v3983_v14 = vsel %vm3981_vm1, %v3982_v11, %v3980_v22  ;;  %5257 = vmatprep.subr.bf16.mxu1 %v7682_v42  ;;  %5370 = vmatprep.subr.bf16.mxu0 %v9616_v12  ;;  %v7921_v30 = vpop.eup %7920  ;;  %v3989_v48 = vand.u32 2147483648, %v9566_v41  ;;  %v7686_v42 = vld [vmem:[#allocation17 + $0x40] ss:$8 sps:$4 sm:$0xff]  }
 0x748   : > { %4577 = vmatprep.mubr.bf16.mxu1 %v4116_v21  ;;  %4690 = vmatprep.mubr.bf16.mxu0 %v4116_v21  ;;  %v4041_v32 = vadd.f32 1e-06, %v3983_v14  ;;  %v9653_v29 = vld [vmem:[#allocation17 + $0x140] ss:$8 sps:$4 sm:$0xff]   ;;  %v7694_v21 = vld [vmem:[#allocation17 + $0x34] ss:$8 sps:$4 sm:$0xff]   ;;  %v9659_v61 = vmul.f32 %v7921_v30, %v9438_v26 }
 0x749   : > { %v3987_v37 = vsel %vm3986_vm2, %v9566_v41, %v3985_v18  ;;  %7934 = vrsqrt.f32 %v9641_v33  ;;  %4578 = vmatmul.mubr.bf16.gmra.mxu1 %v4115_v23  ;;  %4691 = vmatmul.mubr.bf16.gmra.mxu0 %v4115_v23  ;;  %vm4014_vm10 = vcmp.eq.f32.partialorder %v9641_v33, inf  ;;  %vm4016_vm11 = vcmp.eq.f32.partialorder %v9641_v33, 0.0 }
 0x74a   : > { %v7923_v22 = vpop.eup %7922  ;;  %v3901_v11 = vpop.xlane.xlu0 %3900  ;;  %v3990_v10 = vsel %vm3988_vm3, %v3989_v48, %v3987_v37  ;;  %5258 = vmatpush1.bf16.msra.mxu1 %v7680_v52  ;;  %5371 = vmatpush1.bf16.msra.mxu0 %v9638_v49  ;;  %10572 = vst [vmem:[#allocation35_spill] sm:$0xff] %v9659_v61  ;;  %v9668_v48 = vmul.f32 %v7921_v30, %v9435_v40  ;;  %7936 = vrcp.f32 %v4041_v32  ;;  %v7692_v30 = vld [vmem:[#allocation17 + $0x30] ss:$8 sps:$4 sm:$0xff]  }
 0x74b   : > { %v7925_v14 = vpop.eup %7924  ;;  %v3992_v18 = vmul.f32 %v7923_v22, %v9571_v60  ;;  %v9656_v41 = vmul.f32 0.003921569, %v3901_v11  ;;  %v4042_v23 = vadd.f32 1e-06, %v3990_v10  ;;  %5259 = vmatprep.subr.bf16.mxu1 %v7688_v16  ;;  %5372 = vmatprep.subr.bf16.mxu0 %v9644_v20  ;;  %v3996_v16 = vand.u32 2147483648, %v9571_v60 }
 0x74c   : > { %v9665_v52 = vmul.f32 %v7925_v14, %v9448_v28  ;;  %10574 = vst [vmem:[#allocation37_spill] sm:$0xff] %v9668_v48  ;;  %v9671_v37 = vmul.f32 %v7925_v14, %v9445_v17  ;;  %v9684_v32 = vld [vmem:[#allocation17 + $0x130] ss:$8 sps:$4 sm:$0xff]  }
 0x74d   : > { %v3994_v26 = vsel %vm3993_vm4, %v9571_v60, %v3992_v18  ;;  %7938 = vrsqrt.f32 %v9656_v41  ;;  %v7700_v60 = vld [vmem:[#allocation17 + $0x24] ss:$8 sps:$4 sm:$0xff]   ;;  %vm4021_vm12 = vcmp.eq.f32.partialorder %v9656_v41, inf  ;;  %vm4023_vm13 = vcmp.eq.f32.partialorder %v9656_v41, 0.0 }
 0x74e   : > { %10573 = vst [vmem:[#allocation36_spill] sm:$0xff] %v9665_v52  ;;  %10575 = vst [vmem:[#allocation38_spill] sm:$0xff] %v9671_v37  ;;  %v7927_v22 = vpop.eup %7926  ;;  %v3904_v28 = vpop.xlane.xlu1 %3903  ;;  %v4118_v40 = vpack.c.bf16 %v9665_v52, %v9659_v61  ;;  %v4117_v17 = vpack.c.bf16 %v9671_v37, %v9668_v48  ;;  %7940 = vrcp.f32 %v4042_v23  ;;  %5260 = vmatpush1.bf16.msra.mxu1 %v7686_v42  ;;  %5373 = vmatpush1.bf16.msra.mxu0 %v9653_v29  ;;  %v9690_v18 = vld [vmem:[#allocation17 + $0x124] ss:$8 sps:$4 sm:$0xff]  }
 0x74f   : > { %v3999_v11 = vmul.f32 %v7927_v22, %v9596_v54  ;;  %v9687_v10 = vmul.f32 0.003921569, %v3904_v28  ;;  %v3997_v14 = vsel %vm3995_vm5, %v3996_v16, %v3994_v26  ;;  %5261 = vmatprep.subr.bf16.mxu1 %v7694_v21  ;;  %5374 = vmatprep.subr.bf16.mxu0 %v9662_v7  ;;  %v4003_v42 = vand.u32 2147483648, %v9596_v54  ;;  %v7929_v52 = vpop.eup %7928  ;;  %v7698_v16 = vld [vmem:[#allocation17 + $0x20] ss:$8 sps:$4 sm:$0xff]  }
 0x750   : > { %4587 = vmatprep.mubr.bf16.mxu1 %v4118_v40  ;;  %4700 = vmatprep.mubr.bf16.mxu0 %v4118_v40  ;;  %v4043_v23 = vadd.f32 1e-06, %v3997_v14  ;;  %v9698_v22 = vld [vmem:[#allocation17 + $0x120] ss:$8 sps:$4 sm:$0xff]   ;;  %v7706_v28 = vld [vmem:[#allocation17 + $0x14] ss:$8 sps:$4 sm:$0xff]  }
 0x751   : > { %v4001_v37 = vsel %vm4000_vm6, %v9596_v54, %v3999_v11  ;;  %7942 = vrsqrt.f32 %v9687_v10  ;;  %4588 = vmatmul.mubr.bf16.gmra.mxu1 %v4117_v17  ;;  %4701 = vmatmul.mubr.bf16.gmra.mxu0 %v4117_v17  ;;  %v4010_v54 = vand.u32 2147483648, %v9610_v3  ;;  %v9707_v17 = vmul.f32 %v7929_v52, %v9458_v43 }
 0x752   : > { %v7931_v21 = vpop.eup %7930  ;;  %v4004_v26 = vsel %vm4002_vm7, %v4003_v42, %v4001_v37  ;;  %7944 = vrcp.f32 %v4043_v23  ;;  %5262 = vmatpush1.bf16.msra.mxu1 %v7692_v30  ;;  %5375 = vmatpush1.bf16.msra.mxu0 %v9684_v32  ;;  %v9704_v37 = vld [vmem:[#allocation17 + $0x114] ss:$8 sps:$4 sm:$0xff]   ;;  %v9713_v42 = vmul.f32 %v7929_v52, %v9455_v19  ;;  %v7704_v19 = vld [vmem:[#allocation17 + $0x10] ss:$8 sps:$4 sm:$0xff]   ;;  %vm4028_vm14 = vcmp.eq.f32.partialorder %v9687_v10, inf }
 0x753   : > { %v7933_v40 = vpop.eup %7932  ;;  %v4006_v14 = vmul.f32 %v7931_v21, %v9610_v3  ;;  %v4044_v11 = vadd.f32 1e-06, %v4004_v26  ;;  %5263 = vmatprep.subr.bf16.mxu1 %v7700_v60  ;;  %5376 = vmatprep.subr.bf16.mxu0 %v9690_v18  ;;  %10576 = vst [vmem:[#allocation39_spill] sm:$0xff] %v9707_v17  ;;  %v9725_v52 = vld [vmem:[#allocation17 + $0x110] ss:$8 sps:$4 sm:$0xff]   ;;  %vm4030_vm15 = vcmp.eq.f32.partialorder %v9687_v10, 0.0 }
 0x754   : > { %v9710_v30 = vmul.f32 %v7933_v40, %v9468_v44  ;;  %10578 = vst [vmem:[#allocation41_spill] sm:$0xff] %v9713_v42  ;;  %v9716_v23 = vmul.f32 %v7933_v40, %v9465_v39 }
 0x755   : > { %v4008_v21 = vsel %vm4007_vm8, %v9610_v3, %v4006_v14  ;;  %7946 = vrcp.f32 %v4044_v11  ;;  %v7712_v3 = vld [vmem:[#allocation17 + $0x4] ss:$8 sps:$4 sm:$0xff]   ;;  %v4017_v11 = vand.u32 2147483648, %v9641_v33 }
 0x756   : > { %10577 = vst [vmem:[#allocation40_spill] sm:$0xff] %v9710_v30  ;;  %10579 = vst [vmem:[#allocation42_spill] sm:$0xff] %v9716_v23  ;;  %v7935_v60 = vpop.eup %7934  ;;  %v4120_v26 = vpack.c.bf16 %v9710_v30, %v9707_v17  ;;  %v4119_v43 = vpack.c.bf16 %v9716_v23, %v9713_v42  ;;  %v4011_v44 = vsel %vm4009_vm9, %v4010_v54, %v4008_v21  ;;  %5264 = vmatpush1.bf16.msra.mxu1 %v7698_v16  ;;  %v9729_v14 = vld [vmem:[#allocation17 + $0x104] ss:$8 sps:$4 sm:$0xff]   ;;  %v7718_v30 = vld [vmem:[#allocation17 + $0xf4] ss:$8 sps:$4 sm:$0xff]  }
 0x757   : > { %5377 = vmatpush1.bf16.msra.mxu0 %v9698_v22  ;;  %v4013_v39 = vmul.f32 %v7935_v60, %v9641_v33  ;;  %v4045_v40 = vadd.f32 1e-06, %v4011_v44  ;;  %5265 = vmatprep.subr.bf16.mxu1 %v7706_v28  ;;  %v7937_v16 = vpop.eup %7936  ;;  %v7710_v60 = vld [vmem:[#allocation17] ss:$8 sps:$4 sm:$0xff]  }
 0x758   : > { %5378 = vmatprep.subr.bf16.mxu0 %v9704_v37  ;;  %4597 = vmatprep.mubr.bf16.mxu1 %v4120_v26  ;;  %v9736_v44 = vld [vmem:[#allocation17 + $0x100] ss:$8 sps:$4 sm:$0xff]  }
 0x759   : > { %4710 = vmatprep.mubr.bf16.mxu0 %v4120_v26  ;;  %v4015_v54 = vsel %vm4014_vm10, %v9641_v33, %v4013_v39  ;;  %4598 = vmatmul.mubr.bf16.gmra.mxu1 %v4119_v43  ;;  %7948 = vrcp.f32 %v4045_v40  ;;  %v4024_v39 = vand.u32 2147483648, %v9656_v41 }
 0x75a   : > { %4711 = vmatmul.mubr.bf16.gmra.mxu0 %v4119_v43  ;;  %v7939_v21 = vpop.eup %7938  ;;  %v4018_v28 = vsel %vm4016_vm11, %v4017_v11, %v4015_v54  ;;  %5266 = vmatpush1.bf16.msra.mxu1 %v7704_v19  ;;  %v9742_v43 = vld [vmem:[#allocation17 + $0x1f4] ss:$8 sps:$4 sm:$0xff]   ;;  %v9745_v19 = vmul.f32 %v7937_v16, %v9478_v57  ;;  %v9751_v11 = vmul.f32 %v7937_v16, %v9475_v56  ;;  %v7716_v56 = vld [vmem:[#allocation17 + $0xf0] ss:$8 sps:$4 sm:$0xff]  }
 0x75b   : > { %5379 = vmatpush1.bf16.msra.mxu0 %v9725_v52  ;;  %v7941_v23 = vpop.eup %7940  ;;  %v4020_v26 = vmul.f32 %v7939_v21, %v9656_v41  ;;  %v4046_v33 = vadd.f32 1e-06, %v4018_v28  ;;  %5267 = vmatprep.subr.bf16.mxu1 %v7712_v3  ;;  %v9763_v16 = vld [vmem:[#allocation17 + $0x1f0] ss:$8 sps:$4 sm:$0xff]  }
 0x75c   : > { %5380 = vmatprep.subr.bf16.mxu0 %v9729_v14  ;;  %10580 = vst [vmem:[#allocation43_spill] sm:$0xff] %v9745_v19  ;;  %v9748_v40 = vmul.f32 %v7941_v23, %v9488_v5  ;;  %10582 = vst [vmem:[#allocation45_spill] sm:$0xff] %v9751_v11  ;;  %v9754_v54 = vmul.f32 %v7941_v23, %v9485_v1 }
 0x75d   : > { %v4022_v21 = vsel %vm4021_vm12, %v9656_v41, %v4020_v26  ;;  %7950 = vrcp.f32 %v4046_v33  ;;  %v7724_v41 = vld [vmem:[#allocation17 + $0xe4] ss:$8 sps:$4 sm:$0xff]  }
 0x75e   : > { %10581 = vst [vmem:[#allocation44_spill] sm:$0xff] %v9748_v40  ;;  %10583 = vst [vmem:[#allocation46_spill] sm:$0xff] %v9754_v54  ;;  %v7943_v3 = vpop.eup %7942  ;;  %v4122_v28 = vpack.c.bf16 %v9748_v40, %v9745_v19  ;;  %v4121_v57 = vpack.c.bf16 %v9754_v54, %v9751_v11  ;;  %v4025_v5 = vsel %vm4023_vm13, %v4024_v39, %v4022_v21  ;;  %5268 = vmatpush1.bf16.msra.mxu1 %v7710_v60  ;;  %v9767_v33 = vld [vmem:[#allocation17 + $0x1e4] ss:$8 sps:$4 sm:$0xff]   ;;  %v7722_v40 = vld [vmem:[#allocation17 + $0xe0] ss:$8 sps:$4 sm:$0xff]  }
 0x75f   : > { %5381 = vmatpush1.bf16.msra.mxu0 %v9736_v44  ;;  %v7945_v1 = vpop.eup %7944  ;;  %v4027_v23 = vmul.f32 %v7943_v3, %v9687_v10  ;;  %v4047_v26 = vadd.f32 1e-06, %v4025_v5  ;;  %5269 = vmatprep.subr.bf16.mxu1 %v7718_v30  ;;  %v4031_v39 = vand.u32 2147483648, %v9687_v10  ;;  %v9780_v54 = vld [vmem:[#allocation17 + $0x1e0] ss:$8 sps:$4 sm:$0xff]  }
 0x760   : > { %5382 = vmatprep.subr.bf16.mxu0 %v9742_v43  ;;  %4607 = vmatprep.mubr.bf16.mxu1 %v4122_v28  ;;  %v9774_v30 = vmul.f32 %v7945_v1, %v9498_v6  ;;  %v9777_v3 = vmul.f32 %v7945_v1, %v9495_v36  ;;  %v7730_v36 = vld [vmem:[#allocation17 + $0xd4] ss:$8 sps:$4 sm:$0xff]  }
 0x761   : > { %4720 = vmatprep.mubr.bf16.mxu0 %v4122_v28  ;;  %v4029_v60 = vsel %vm4028_vm14, %v9687_v10, %v4027_v23  ;;  %4608 = vmatmul.mubr.bf16.gmra.mxu1 %v4121_v57  ;;  %7952 = vrcp.f32 %v4047_v26  ;;  %v9789_v6 = vld [vmem:[#allocation17 + $0x1d4] ss:$8 sps:$4 sm:$0xff]   ;;  %v7736_v26 = vld [vmem:[#allocation17 + $0xc4] ss:$8 sps:$4 sm:$0xff]  }
 0x762   : > { %4721 = vmatmul.mubr.bf16.gmra.mxu0 %v4121_v57  ;;  %v7947_v21 = vpop.eup %7946  ;;  %10584 = vst [vmem:[#allocation47_spill] sm:$0xff] %v9774_v30  ;;  %10585 = vst [vmem:[#allocation48_spill] sm:$0xff] %v9777_v3  ;;  %v4032_v5 = vsel %vm4030_vm15, %v4031_v39, %v4029_v60  ;;  %5270 = vmatpush2.bf16.msra.mxu1 %v7716_v56 }
 0x763   : > { %5383 = vmatpush2.bf16.msra.mxu0 %v9763_v16  ;;  %v9783_v28 = vmul.f32 %v7947_v21, %v9508_v15  ;;  %v9786_v10 = vmul.f32 %v7947_v21, %v9505_v24  ;;  %v4048_v57 = vadd.f32 1e-06, %v4032_v5  ;;  %5271 = vmatprep.subr.bf16.mxu1 %v7724_v41  ;;  %v7728_v24 = vld [vmem:[#allocation17 + $0xd0] ss:$8 sps:$4 sm:$0xff]   ;;  %v9798_v41 = vld [vmem:[#allocation17 + $0x1c4] ss:$8 sps:$4 sm:$0xff]  }
 0x764   : > { %5384 = vmatprep.subr.bf16.mxu0 %v9767_v33  ;;  %v9796_v15 = vld [vmem:[#allocation17 + $0x1d0] ss:$8 sps:$4 sm:$0xff]   ;;  %v9805_v21 = vld [vmem:[#allocation17 + $0x1c0] ss:$8 sps:$4 sm:$0xff]  }
 0x765   : > { %10586 = vst [vmem:[#allocation49_spill] sm:$0xff] %v9783_v28  ;;  %10587 = vst [vmem:[#allocation50_spill] sm:$0xff] %v9786_v10  ;;  %v4124_v56 = vpack.c.bf16 %v9783_v28, %v9774_v30  ;;  %v4123_v1 = vpack.c.bf16 %v9786_v10, %v9777_v3  ;;  %7954 = vrcp.f32 %v4048_v57 }
 0x766   : > { %5272 = vmatpush2.bf16.msra.mxu1 %v7722_v40  ;;  %v7949_v23 = vpop.eup %7948  ;;  %v7734_v40 = vld [vmem:[#allocation17 + $0xc0] ss:$8 sps:$4 sm:$0xff]  }
 0x767   : > { %5385 = vmatpush2.bf16.msra.mxu0 %v9780_v54  ;;  %4617 = vmatprep.mubr.bf16.mxu1 %v4124_v56  ;;  %v9802_v60 = vmul.f32 %v7949_v23, %v9518_v53  ;;  %v9811_v57 = vmul.f32 %v7949_v23, %v9515_v47  ;;  %v7742_v53 = vld [vmem:[#allocation17 + $0xb4] ss:$8 sps:$4 sm:$0xff]   ;;  %v7740_v47 = vld [vmem:[#allocation17 + $0xb0] ss:$8 sps:$4 sm:$0xff]  }
 0x768   : > { %4730 = vmatprep.mubr.bf16.mxu0 %v4124_v56  ;;  %5273 = vmatprep.subr.bf16.mxu1 %v7730_v36  ;;  %v9817_v56 = vld [vmem:[#allocation17 + $0x1b4] ss:$8 sps:$4 sm:$0xff]  }
 0x769   : > { %5386 = vmatprep.subr.bf16.mxu0 %v9789_v6  ;;  %4618 = vmatmul.mubr.bf16.gmra.mxu1 %v4123_v1  ;;  %10588 = vst [vmem:[#allocation51_spill] sm:$0xff] %v9802_v60  ;;  %10590 = vst [vmem:[#allocation53_spill] sm:$0xff] %v9811_v57 }
 0x76a   : > { %4731 = vmatmul.mubr.bf16.gmra.mxu0 %v4123_v1  ;;  %v7951_v39 = vpop.eup %7950  ;;  %5274 = vmatpush2.bf16.msra.mxu1 %v7728_v24 }
 0x76b   : > { %5387 = vmatpush2.bf16.msra.mxu0 %v9796_v15  ;;  %v9808_v5 = vmul.f32 %v7951_v39, %v9528_v25  ;;  %v9814_v36 = vmul.f32 %v7951_v39, %v9525_v34  ;;  %5275 = vmatprep.subr.bf16.mxu1 %v7736_v26  ;;  %v9824_v25 = vld [vmem:[#allocation17 + $0x1b0] ss:$8 sps:$4 sm:$0xff]  }
 0x76c   : > { %5388 = vmatprep.subr.bf16.mxu0 %v9798_v41 }
 0x76d   : > { %10589 = vst [vmem:[#allocation52_spill] sm:$0xff] %v9808_v5  ;;  %10591 = vst [vmem:[#allocation54_spill] sm:$0xff] %v9814_v36  ;;  %v4126_v1 = vpack.c.bf16 %v9808_v5, %v9802_v60  ;;  %v4125_v24 = vpack.c.bf16 %v9814_v36, %v9811_v57  ;;  %v9846_v5 = vld [vmem:[#allocation17 + $0x1a0] ss:$8 sps:$4 sm:$0xff]  }
 0x76e   : > { %5276 = vmatpush2.bf16.msra.mxu1 %v7734_v40  ;;  %v7953_v34 = vpop.eup %7952 }
 0x76f   : > { %5389 = vmatpush2.bf16.msra.mxu0 %v9805_v21  ;;  %4627 = vmatprep.mubr.bf16.mxu1 %v4126_v1  ;;  %v9829_v26 = vmul.f32 %v7953_v34, %v9538_v35  ;;  %v9835_v40 = vmul.f32 %v7953_v34, %v9535_v55  ;;  %v7748_v35 = vld [vmem:[#allocation17 + $0xa4] ss:$8 sps:$4 sm:$0xff]   ;;  %v7754_v55 = vld [vmem:[#allocation17 + $0x94] ss:$8 sps:$4 sm:$0xff]   ;;  %v7752_v34 = vld [vmem:[#allocation17 + $0x90] ss:$8 sps:$4 sm:$0xff]  }
 0x770   : > { %4740 = vmatprep.mubr.bf16.mxu0 %v4126_v1  ;;  %5277 = vmatprep.subr.bf16.mxu1 %v7742_v53 }
 0x771   : > { %5390 = vmatprep.subr.bf16.mxu0 %v9817_v56  ;;  %4628 = vmatmul.mubr.bf16.gmra.mxu1 %v4125_v24  ;;  %10592 = vst [vmem:[#allocation55_spill] sm:$0xff] %v9829_v26  ;;  %10594 = vst [vmem:[#allocation57_spill] sm:$0xff] %v9835_v40 }
 0x772   : > { %4741 = vmatmul.mubr.bf16.gmra.mxu0 %v4125_v24  ;;  %v7955_v23 = vpop.eup %7954  ;;  %5278 = vmatpush2.bf16.msra.mxu1 %v7740_v47  ;;  %v9844_v47 = vld [vmem:[#allocation17 + $0x1a4] ss:$8 sps:$4 sm:$0xff]  }
 0x773   : > { %5391 = vmatpush2.bf16.msra.mxu0 %v9824_v25  ;;  %v9832_v39 = vmul.f32 %v7955_v23, %v9548_v45  ;;  %v9838_v1 = vmul.f32 %v7955_v23, %v9545_v38  ;;  %v7746_v45 = vld [vmem:[#allocation17 + $0xa0] ss:$8 sps:$4 sm:$0xff]   ;;  %5279 = vmatprep.subr.bf16.mxu1 %v7748_v35  ;;  %v9850_v38 = vld [vmem:[#allocation17 + $0x194] ss:$8 sps:$4 sm:$0xff]   ;;  %v9852_v23 = vld [vmem:[#allocation17 + $0x190] ss:$8 sps:$4 sm:$0xff]  }
 0x774   : > { %5392 = vmatprep.subr.bf16.mxu0 %v9844_v47  ;;  %v7758_v35 = vld [vmem:[#allocation17 + $0x80] ss:$8 sps:$4 sm:$0xff]  }
 0x775   : > { %10593 = vst [vmem:[#allocation56_spill] sm:$0xff] %v9832_v39  ;;  %10595 = vst [vmem:[#allocation58_spill] sm:$0xff] %v9838_v1  ;;  %v4128_v53 = vpack.c.bf16 %v9832_v39, %v9829_v26  ;;  %v4127_v24 = vpack.c.bf16 %v9838_v1, %v9835_v40  ;;  %v9858_v39 = vld [vmem:[#allocation17 + $0x180] ss:$8 sps:$4 sm:$0xff]   ;;  %v10596_v26 = vsub.s32 3, %v8744_v59 }
 0x776   : > { %5280 = vmatpush2.bf16.msra.mxu1 %v7746_v45  ;;  %v4193_v45 = vld [vmem:[%s10483_s7] sm:$0xf] }
 0x777   : > { %4637 = vmatprep.mubr.bf16.mxu1 %v4128_v53  ;;  %4750 = vmatprep.mubr.bf16.mxu0 %v4128_v53  ;;  %v7760_v53 = vld [vmem:[#allocation17 + $0x84] ss:$8 sps:$4 sm:$0xff]   ;;  %v9867_v1 = vrot.slane %v4193_v45, %v8774_v50  ;;  %v9871_v40 = vrot.slane %v4193_v45, %v10596_v26 }
 0x778   : > { %5393 = vmatpush2.bf16.msra.mxu0 %v9846_v5  ;;  %5281 = vmatprep.subr.bf16.mxu1 %v7754_v55 }
 0x779   : > { %4638 = vmatmul.mubr.bf16.gmra.mxu1 %v4127_v24  ;;  %5394 = vmatprep.subr.bf16.mxu0 %v9850_v38 }
 0x77a   : > { %4751 = vmatmul.mubr.bf16.gmra.mxu0 %v4127_v24  ;;  %5282 = vmatpush2.bf16.msra.mxu1 %v7752_v34  ;;  %v9856_v24 = vld [vmem:[#allocation17 + $0x184] ss:$8 sps:$4 sm:$0xff]  }
 0x77b   : > { %5283 = vmatprep.subr.bf16.mxu1 %v7760_v53  ;;  %v9874_v53 = vrot.slane %v4193_v45, %v8769_v46 }
 0x77c   : > { %5395 = vmatpush2.bf16.msra.mxu0 %v9852_v23 }
 0x77d   : > { %5396 = vmatprep.subr.bf16.mxu0 %v9856_v24 }
 0x77e   : > { %5284 = vmatpush2.bf16.msra.mxu1 %v7758_v35  ;;  %v10597_v35 = vsub.s32 2, %v8744_v59 }
 0x77f   : > { %7165 = vmatprep.subr.bf16.mxu1 %v9554_v62 }
 0x780   : > { %5397 = vmatpush2.bf16.msra.mxu0 %v9858_v39  ;;  %v9878_v36 = vrot.slane %v4193_v45, %v10597_v35 }
 0x801   : > { %v4569_v55 = vpop.f32.mrf.mxu1  ;;  %v4682_v34 = vpop.f32.mrf.mxu0 }
 0x802   : > { %v4570_v19 = vadd.f32 %v4569_v55, %v9874_v53  ;;  %v4683_v11 = vadd.f32 %v4682_v34, %v9878_v36 }
 0x803   : > { %v4571_v62 = vpop.f32.mrf.mxu1  ;;  %v4684_v60 = vpop.f32.mrf.mxu0 }
 0x804   : > { %v4572_v10 = vadd.f32 %v4571_v62, %v9867_v1  ;;  %v4685_v30 = vadd.f32 %v4684_v60, %v9871_v40  ;;  %v4761_v2 = vmax.f32 %v4570_v19, 0.0 }
 0x805   : > { %v4573_v57 = vpop.f32.mrf.mxu1  ;;  %v4686_v28 = vpop.f32.mrf.mxu0 }
 0x806   : > { %v4574_v3 = vadd.f32 %v4573_v57, %v9874_v53  ;;  %v4687_v26 = vadd.f32 %v4686_v28, %v9878_v36  ;;  %v4762_v4 = vmax.f32 %v4572_v10, 0.0  ;;  %v4764_v60 = vmax.f32 %v4685_v30, 0.0 }
 0x807   : > { %v4575_v17 = vpop.f32.mrf.mxu1  ;;  %v4688_v59 = vpop.f32.mrf.mxu0  ;;  %v4763_v28 = vmax.f32 %v4683_v11, 0.0 }
 0x808   : > { %v4576_v45 = vadd.f32 %v4575_v17, %v9867_v1  ;;  %v4689_v35 = vadd.f32 %v4688_v59, %v9871_v40  ;;  %v4765_v42 = vmax.f32 %v4574_v3, 0.0  ;;  %v4767_v61 = vmax.f32 %v4687_v26, 0.0 }
 0x809   : > { %v4579_v48 = vpop.f32.mrf.mxu1  ;;  %v4692_v62 = vpop.f32.mrf.mxu0 }
 0x80a   : > { %v4766_v31 = vmax.f32 %v4576_v45, 0.0  ;;  %v4768_v57 = vmax.f32 %v4689_v35, 0.0  ;;  %v4825_v13 = vpack.c.bf16 %v4765_v42, %v4761_v2  ;;  %v4827_v0 = vpack.c.bf16 %v4767_v61, %v4763_v28 }
 0x80b   : > { %v4581_v58 = vpop.f32.mrf.mxu1  ;;  %v4694_v55 = vpop.f32.mrf.mxu0  ;;  %v4580_v19 = vadd.f32 %v4579_v48, %v9874_v53  ;;  %v4693_v11 = vadd.f32 %v4692_v62, %v9878_v36 }
 0x80c   : > { %v4826_v27 = vpack.c.bf16 %v4766_v31, %v4762_v4  ;;  %v4828_v34 = vpack.c.bf16 %v4768_v57, %v4764_v60  ;;  %v4582_v17 = vadd.f32 %v4581_v58, %v9867_v1  ;;  %v4695_v3 = vadd.f32 %v4694_v55, %v9871_v40 }
 0x80d   : > { %v4583_v9 = vpop.f32.mrf.mxu1  ;;  %v4696_v59 = vpop.f32.mrf.mxu0  ;;  %v4769_v62 = vmax.f32 %v4580_v19, 0.0  ;;  %v4771_v60 = vmax.f32 %v4693_v11, 0.0 }
 0x80e   : > { %v4584_v26 = vadd.f32 %v4583_v9, %v9874_v53  ;;  %v4697_v30 = vadd.f32 %v4696_v59, %v9878_v36  ;;  %5285 = vmatprep.mubr.bf16.mxu1 %v4826_v27  ;;  %5398 = vmatprep.mubr.bf16.mxu0 %v4828_v34  ;;  %v4770_v27 = vmax.f32 %v4582_v17, 0.0  ;;  %v4772_v48 = vmax.f32 %v4695_v3, 0.0 }
 0x80f   : > { %v4585_v4 = vpop.f32.mrf.mxu1  ;;  %v4698_v31 = vpop.f32.mrf.mxu0  ;;  %5286 = vmatmul.mubr.bf16.vlgmr.msra.gmra.mxu1 %v4825_v13  ;;  %5399 = vmatmul.mubr.bf16.vlgmr.msra.gmra.mxu0 %v4827_v0 }
 0x810   : > { %v4586_v61 = vadd.f32 %v4585_v4, %v9867_v1  ;;  %v4699_v2 = vadd.f32 %v4698_v31, %v9871_v40  ;;  %7181 = vmatpush1.bf16.msra.mxu1 %v9593_v63  ;;  %v4773_v58 = vmax.f32 %v4584_v26, 0.0  ;;  %v4775_v9 = vmax.f32 %v4697_v30, 0.0 }
 0x811   : > { %v4589_v42 = vpop.f32.mrf.mxu1  ;;  %v4702_v10 = vpop.f32.mrf.mxu0  ;;  %7166 = vmatprep.subr.bf16.mxu1 %v9598_v51 }
 0x812   : > { %v4774_v45 = vmax.f32 %v4586_v61, 0.0  ;;  %v4776_v35 = vmax.f32 %v4699_v2, 0.0  ;;  %v4829_v55 = vpack.c.bf16 %v4773_v58, %v4769_v62  ;;  %v4831_v63 = vpack.c.bf16 %v4775_v9, %v4771_v60 }
 0x813   : > { %v4591_v13 = vpop.f32.mrf.mxu1  ;;  %v4704_v0 = vpop.f32.mrf.mxu0  ;;  %v4590_v30 = vadd.f32 %v4589_v42, %v9874_v53 }
 0x814   : > { %v4830_v57 = vpack.c.bf16 %v4774_v45, %v4770_v27  ;;  %v4832_v28 = vpack.c.bf16 %v4776_v35, %v4772_v48  ;;  %7182 = vmatpush1.bf16.msra.mxu1 %v9607_v8  ;;  %v4592_v34 = vadd.f32 %v4591_v13, %v9867_v1  ;;  %v4705_v51 = vadd.f32 %v4704_v0, %v9871_v40 }
 0x815   : > { %v4593_v59 = vpop.f32.mrf.mxu1  ;;  %v4706_v26 = vpop.f32.mrf.mxu0  ;;  %7167 = vmatprep.subr.bf16.mxu1 %v9616_v12  ;;  %v4703_v8 = vadd.f32 %v4702_v10, %v9878_v36  ;;  %v4777_v48 = vmax.f32 %v4590_v30, 0.0 }
 0x816   : > { %v4594_v17 = vadd.f32 %v4593_v59, %v9874_v53  ;;  %v4707_v3 = vadd.f32 %v4706_v26, %v9878_v36  ;;  %5295 = vmatprep.mubr.bf16.mxu1 %v4830_v57  ;;  %5408 = vmatprep.mubr.bf16.mxu0 %v4832_v28  ;;  %v4778_v9 = vmax.f32 %v4592_v34, 0.0  ;;  %v4780_v42 = vmax.f32 %v4705_v51, 0.0 }
 0x817   : > { %v4595_v19 = vpop.f32.mrf.mxu1  ;;  %v4708_v11 = vpop.f32.mrf.mxu0  ;;  %5296 = vmatmul.mubr.bf16.gmra.mxu1 %v4829_v55  ;;  %5409 = vmatmul.mubr.bf16.gmra.mxu0 %v4831_v63  ;;  %v4779_v45 = vmax.f32 %v4703_v8, 0.0 }
 0x818   : > { %v4596_v4 = vadd.f32 %v4595_v19, %v9867_v1  ;;  %v4709_v12 = vadd.f32 %v4708_v11, %v9871_v40  ;;  %7183 = vmatpush1.bf16.msra.mxu1 %v9638_v49  ;;  %v4781_v31 = vmax.f32 %v4594_v17, 0.0  ;;  %v4783_v61 = vmax.f32 %v4707_v3, 0.0 }
 0x819   : > { %v4599_v2 = vpop.f32.mrf.mxu1  ;;  %7168 = vmatprep.subr.bf16.mxu1 %v9644_v20 }
 0x81a   : > { %v4712_v58 = vpop.f32.mrf.mxu0  ;;  %v4782_v27 = vmax.f32 %v4596_v4, 0.0  ;;  %v4784_v10 = vmax.f32 %v4709_v12, 0.0  ;;  %v4833_v0 = vpack.c.bf16 %v4781_v31, %v4777_v48  ;;  %v4835_v49 = vpack.c.bf16 %v4783_v61, %v4779_v45 }
 0x81b   : > { %v4601_v35 = vpop.f32.mrf.mxu1  ;;  %v4600_v59 = vadd.f32 %v4599_v2, %v9874_v53 }
 0x81c   : > { %v4714_v62 = vpop.f32.mrf.mxu0  ;;  %v4834_v60 = vpack.c.bf16 %v4782_v27, %v4778_v9  ;;  %v4836_v13 = vpack.c.bf16 %v4784_v10, %v4780_v42  ;;  %7184 = vmatpush1.bf16.msra.mxu1 %v9653_v29  ;;  %v4602_v57 = vadd.f32 %v4601_v35, %v9867_v1  ;;  %v4713_v29 = vadd.f32 %v4712_v58, %v9878_v36 }
 0x81d   : > { %v4603_v28 = vpop.f32.mrf.mxu1  ;;  %7169 = vmatprep.subr.bf16.mxu1 %v9662_v7  ;;  %v4715_v20 = vadd.f32 %v4714_v62, %v9871_v40  ;;  %v4785_v61 = vmax.f32 %v4600_v59, 0.0 }
 0x81e   : > { %v4716_v55 = vpop.f32.mrf.mxu0  ;;  %v4604_v63 = vadd.f32 %v4603_v28, %v9874_v53  ;;  %5305 = vmatprep.mubr.bf16.mxu1 %v4834_v60  ;;  %5418 = vmatprep.mubr.bf16.mxu0 %v4836_v13  ;;  %v4786_v11 = vmax.f32 %v4602_v57, 0.0  ;;  %v4787_v2 = vmax.f32 %v4713_v29, 0.0 }
 0x81f   : > { %v4717_v34 = vadd.f32 %v4716_v55, %v9878_v36  ;;  %v4605_v26 = vpop.f32.mrf.mxu1  ;;  %5306 = vmatmul.mubr.bf16.gmra.mxu1 %v4833_v0  ;;  %5419 = vmatmul.mubr.bf16.gmra.mxu0 %v4835_v49  ;;  %v4788_v4 = vmax.f32 %v4715_v20, 0.0 }
 0x820   : > { %v4718_v51 = vpop.f32.mrf.mxu0  ;;  %v4606_v17 = vadd.f32 %v4605_v26, %v9867_v1  ;;  %7185 = vmatpush1.bf16.msra.mxu1 %v9684_v32  ;;  %v4789_v3 = vmax.f32 %v4604_v63, 0.0 }
 0x821   : > { %v4719_v7 = vadd.f32 %v4718_v51, %v9871_v40  ;;  %v4791_v30 = vmax.f32 %v4717_v34, 0.0  ;;  %v4609_v8 = vpop.f32.mrf.mxu1  ;;  %7170 = vmatprep.subr.bf16.mxu1 %v9690_v18 }
 0x822   : > { %v9921_v19 = vpop.f32.mrf.mxu0  ;;  %v4790_v12 = vmax.f32 %v4606_v17, 0.0  ;;  %v4837_v32 = vpack.c.bf16 %v4789_v3, %v4785_v61  ;;  %v4610_v62 = vadd.f32 %v4609_v8, %v9874_v53 }
 0x823   : > { %v4792_v31 = vmax.f32 %v4719_v7, 0.0  ;;  %v4611_v58 = vpop.f32.mrf.mxu1  ;;  %v4839_v10 = vpack.c.bf16 %v4791_v30, %v4787_v2 }
 0x824   : > { %v9924_v9 = vpop.f32.mrf.mxu0  ;;  %v4838_v42 = vpack.c.bf16 %v4790_v12, %v4786_v11  ;;  %7186 = vmatpush1.bf16.msra.mxu1 %v9698_v22  ;;  %v4612_v18 = vadd.f32 %v4611_v58, %v9867_v1  ;;  %v4793_v55 = vmax.f32 %v4610_v62, 0.0 }
 0x825   : > { %v4840_v27 = vpack.c.bf16 %v4792_v31, %v4788_v4  ;;  %v4613_v48 = vpop.f32.mrf.mxu1  ;;  %7171 = vmatprep.subr.bf16.mxu1 %v9704_v37 }
 0x826   : > { %v9927_v45 = vpop.f32.mrf.mxu0  ;;  %v4614_v35 = vadd.f32 %v4613_v48, %v9874_v53  ;;  %5315 = vmatprep.mubr.bf16.mxu1 %v4838_v42  ;;  %v4794_v57 = vmax.f32 %v4612_v18, 0.0 }
 0x827   : > { %5428 = vmatprep.mubr.bf16.mxu0 %v4840_v27  ;;  %v4615_v60 = vpop.f32.mrf.mxu1  ;;  %5316 = vmatmul.mubr.bf16.gmra.mxu1 %v4837_v32 }
 0x828   : > { %v9933_v13 = vpop.f32.mrf.mxu0  ;;  %5429 = vmatmul.mubr.bf16.gmra.mxu0 %v4839_v10  ;;  %v4616_v22 = vadd.f32 %v4615_v60, %v9867_v1  ;;  %7187 = vmatpush1.bf16.msra.mxu1 %v9725_v52  ;;  %v4797_v0 = vmax.f32 %v4614_v35, 0.0 }
 0x829   : > { %v4619_v49 = vpop.f32.mrf.mxu1  ;;  %7172 = vmatprep.subr.bf16.mxu1 %v9729_v14 }
 0x82a   : > { %v9937_v37 = vpop.f32.mrf.mxu0  ;;  %v4798_v28 = vmax.f32 %v4616_v22, 0.0  ;;  %v4841_v59 = vpack.c.bf16 %v4797_v0, %v4793_v55  ;;  %v4620_v14 = vadd.f32 %v4619_v49, %v9874_v53  ;;  %v4729_v0 = vadd.f32 %v9933_v13, %v9871_v40 }
 0x82b   : > { %v4621_v20 = vpop.f32.mrf.mxu1 }
 0x82c   : > { %v9940_v63 = vpop.f32.mrf.mxu0  ;;  %v4842_v34 = vpack.c.bf16 %v4798_v28, %v4794_v57  ;;  %7188 = vmatpush1.bf16.msra.mxu1 %v9736_v44  ;;  %v4622_v52 = vadd.f32 %v4621_v20, %v9867_v1  ;;  %v4801_v8 = vmax.f32 %v4620_v14, 0.0  ;;  %v4800_v13 = vmax.f32 %v4729_v0, 0.0 }
 0x82d   : > { %v4623_v29 = vpop.f32.mrf.mxu1  ;;  %7173 = vmatprep.subr.bf16.mxu1 %v9742_v43 }
 0x82e   : > { %v4624_v26 = vadd.f32 %v4623_v29, %v9874_v53  ;;  %5325 = vmatprep.mubr.bf16.mxu1 %v4842_v34  ;;  %v9947_v51 = vpop.f32.mrf.mxu0  ;;  %v4802_v43 = vmax.f32 %v4622_v52, 0.0 }
 0x82f   : > { %v4625_v17 = vpop.f32.mrf.mxu1  ;;  %5326 = vmatmul.mubr.bf16.gmra.mxu1 %v4841_v59 }
 0x830   : > { %v4626_v7 = vadd.f32 %v4625_v17, %v9867_v1  ;;  %7189 = vmatpush2.bf16.msra.mxu1 %v9763_v16  ;;  %v4805_v44 = vmax.f32 %v4624_v26, 0.0  ;;  %v4738_v11 = vpop.f32.mrf.mxu0  ;;  %v4735_v17 = vadd.f32 %v9940_v63, %v9871_v40 }
 0x831   : > { %v4629_v3 = vpop.f32.mrf.mxu1  ;;  %7174 = vmatprep.subr.bf16.mxu1 %v9767_v33 }
 0x832   : > { %v4806_v30 = vmax.f32 %v4626_v7, 0.0  ;;  %v4845_v31 = vpack.c.bf16 %v4805_v44, %v4801_v8  ;;  %v4630_v58 = vadd.f32 %v4629_v3, %v9874_v53  ;;  %v9957_v33 = vpop.f32.mrf.mxu0  ;;  %v4804_v44 = vmax.f32 %v4735_v17, 0.0  ;;  %v10600_v17 = vld [vmem:[#allocation30_spill] sm:$0xff] }
 0x833   : > { %v4631_v4 = vpop.f32.mrf.mxu1 }
 0x834   : > { %v4846_v12 = vpack.c.bf16 %v4806_v30, %v4802_v43  ;;  %7190 = vmatpush2.bf16.msra.mxu1 %v9780_v54  ;;  %v4632_v2 = vadd.f32 %v4631_v4, %v9867_v1  ;;  %v4809_v48 = vmax.f32 %v4630_v58, 0.0  ;;  %v4744_v18 = vpop.f32.mrf.mxu0 }
 0x835   : > { %v4633_v61 = vpop.f32.mrf.mxu1  ;;  %7175 = vmatprep.subr.bf16.mxu1 %v9789_v6 }
 0x836   : > { %v4634_v16 = vadd.f32 %v4633_v61, %v9874_v53  ;;  %5335 = vmatprep.mubr.bf16.mxu1 %v4846_v12  ;;  %v4810_v6 = vmax.f32 %v4632_v2, 0.0 }
 0x837   : > { %v4635_v42 = vpop.f32.mrf.mxu1  ;;  %5336 = vmatmul.mubr.bf16.gmra.mxu1 %v4845_v31 }
 0x838   : > { %v4636_v27 = vadd.f32 %v4635_v42, %v9867_v1  ;;  %7191 = vmatpush2.bf16.msra.mxu1 %v9796_v15  ;;  %v4813_v54 = vmax.f32 %v4634_v16, 0.0  ;;  %v4743_v16 = vadd.f32 %v9957_v33, %v9878_v36 }
 0x839   : > { %v4639_v32 = vpop.f32.mrf.mxu1  ;;  %7176 = vmatprep.subr.bf16.mxu1 %v9798_v41  ;;  %v4746_v41 = vpop.f32.mrf.mxu0 }
 0x83a   : > { %v4814_v10 = vmax.f32 %v4636_v27, 0.0  ;;  %v4849_v60 = vpack.c.bf16 %v4813_v54, %v4809_v48  ;;  %v4640_v57 = vadd.f32 %v4639_v32, %v9874_v53  ;;  %v4747_v61 = vadd.f32 %v4746_v41, %v9878_v36 }
 0x83b   : > { %v4641_v35 = vpop.f32.mrf.mxu1  ;;  %v4748_v59 = vpop.f32.mrf.mxu0  ;;  %v4811_v27 = vmax.f32 %v4743_v16, 0.0 }
 0x83c   : > { %v4850_v62 = vpack.c.bf16 %v4814_v10, %v4810_v6  ;;  %7192 = vmatpush2.bf16.msra.mxu1 %v9805_v21  ;;  %v4642_v15 = vadd.f32 %v4641_v35, %v9867_v1  ;;  %v4725_v21 = vadd.f32 %v9924_v9, %v9871_v40  ;;  %v4817_v29 = vmax.f32 %v4640_v57, 0.0 }
 0x83d   : > { %v4643_v22 = vpop.f32.mrf.mxu1  ;;  %7177 = vmatprep.subr.bf16.mxu1 %v9817_v56  ;;  %v4752_v14 = vpop.f32.mrf.mxu0  ;;  %v4749_v30 = vadd.f32 %v4748_v59, %v9871_v40  ;;  %v4815_v58 = vmax.f32 %v4747_v61, 0.0 }
 0x83e   : > { %v4644_v49 = vadd.f32 %v4643_v22, %v9874_v53  ;;  %5345 = vmatprep.mubr.bf16.mxu1 %v4850_v62  ;;  %v4818_v20 = vmax.f32 %v4642_v15, 0.0  ;;  %v4796_v52 = vmax.f32 %v4725_v21, 0.0  ;;  %v4727_v53 = vadd.f32 %v9927_v45, %v9878_v36 }
 0x83f   : > { %v4645_v28 = vpop.f32.mrf.mxu1  ;;  %5346 = vmatmul.mubr.bf16.gmra.mxu1 %v4849_v60  ;;  %v4754_v7 = vpop.f32.mrf.mxu0  ;;  %v4851_v32 = vpack.c.bf16 %v4815_v58, %v4811_v27  ;;  %v4753_v48 = vadd.f32 %v4752_v14, %v9878_v36  ;;  %v10604_v27 = vld [vmem:[#allocation34_spill] sm:$0xff] }
 0x840   : > { %v4646_v55 = vadd.f32 %v4645_v28, %v9867_v1  ;;  %7193 = vmatpush2.bf16.msra.mxu1 %v9824_v25  ;;  %v4821_v56 = vmax.f32 %v4644_v49, 0.0  ;;  %v4844_v1 = vpack.c.bf16 %v4800_v13, %v4796_v52  ;;  %v4739_v25 = vadd.f32 %v4738_v11, %v9871_v40 }
 0x841   : > { %7178 = vmatprep.subr.bf16.mxu1 %v9844_v47  ;;  %v4723_v47 = vadd.f32 %v9921_v19, %v9878_v36  ;;  %v4737_v19 = vadd.f32 %v9947_v51, %v9878_v36  ;;  %v4756_v63 = vpop.f32.mrf.mxu0  ;;  %v4816_v11 = vmax.f32 %v4749_v30, 0.0  ;;  %v4819_v35 = vmax.f32 %v4753_v48, 0.0 }
 0x842   : > { %v4822_v34 = vmax.f32 %v4646_v55, 0.0  ;;  %v4853_v9 = vpack.c.bf16 %v4821_v56, %v4817_v29  ;;  %v4808_v45 = vmax.f32 %v4739_v25, 0.0  ;;  %v4757_v6 = vadd.f32 %v4756_v63, %v9878_v36 }
 0x843   : > { %v4807_v8 = vmax.f32 %v4737_v19, 0.0  ;;  %v4758_v12 = vpop.f32.mrf.mxu0 }
 0x844   : > { %v4854_v26 = vpack.c.bf16 %v4822_v34, %v4818_v20  ;;  %7194 = vmatpush2.bf16.msra.mxu1 %v9846_v5  ;;  %v4799_v5 = vmax.f32 %v4727_v53, 0.0  ;;  %v4848_v43 = vpack.c.bf16 %v4808_v45, %v4804_v44  ;;  %v4759_v2 = vadd.f32 %v4758_v12, %v9871_v40  ;;  %v10598_v20 = vld [vmem:[#allocation29_spill] sm:$0xff]  ;;  %v10601_v45 = vld [vmem:[#allocation28_spill] sm:$0xff] }
 0x845   : > { %7179 = vmatprep.subr.bf16.mxu1 %v9850_v38  ;;  %v4795_v38 = vmax.f32 %v4723_v47, 0.0 }
 0x846   : > { %5355 = vmatprep.mubr.bf16.mxu1 %v4854_v26  ;;  %v4824_v42 = vmax.f32 %v4759_v2, 0.0 }
 0x847   : > { %5356 = vmatmul.mubr.bf16.gmra.mxu1 %v4853_v9  ;;  %v4843_v3 = vpack.c.bf16 %v4799_v5, %v4795_v38 }
 0x848   : > { %7195 = vmatpush2.bf16.msra.mxu1 %v9852_v23  ;;  %5438 = vmatprep.mubr.bf16.mxu1 %v4844_v1  ;;  %v4733_v23 = vadd.f32 %v9937_v37, %v9878_v36  ;;  %v4755_v37 = vadd.f32 %v4754_v7, %v9871_v40 }
 0x849   : > { %7180 = vmatprep.subr.bf16.mxu1 %v9856_v24  ;;  %v4745_v24 = vadd.f32 %v4744_v18, %v9871_v40  ;;  %v4823_v18 = vmax.f32 %v4757_v6, 0.0  ;;  %v4921_v40 = vld [vmem:[%s10485_s9] sm:$0x3] }
 0x84a   : > { %v4803_v4 = vmax.f32 %v4733_v23, 0.0  ;;  %v4820_v54 = vmax.f32 %v4755_v37, 0.0  ;;  %v10003_v33 = vrot.slane %v4921_v40, %v8769_v46  ;;  %v10006_v60 = vrot.slane %v4921_v40, %v8774_v50  ;;  %v10599_v50 = vld [vmem:[#allocation27_spill] sm:$0xff] }
 0x84b   : > { %v4855_v62 = vpack.c.bf16 %v4823_v18, %v4819_v35 }
 0x84c   : > { %7196 = vmatpush2.bf16.msra.mxu1 %v9858_v39  ;;  %v4812_v39 = vmax.f32 %v4745_v24, 0.0  ;;  %v4847_v31 = vpack.c.bf16 %v4807_v8, %v4803_v4  ;;  %v4856_v10 = vpack.c.bf16 %v4824_v42, %v4820_v54  ;;  %v10602_v8 = vld [vmem:[#allocation33_spill] sm:$0xff]  ;;  %v10603_v4 = vld [vmem:[#allocation31_spill] sm:$0xff] }
 0x84e   : > { %v4852_v51 = vpack.c.bf16 %v4816_v11, %v4812_v39 }
 0x84f   : > { %5439 = vmatmul.mubr.bf16.vlgmr.msra.gmra.mxu1 %v4843_v3 }
 0x850   : > { %5448 = vmatprep.mubr.bf16.mxu1 %v4848_v43 }
 0x857   : > { %5449 = vmatmul.mubr.bf16.gmra.mxu1 %v4847_v31 }
 0x858   : > { %5458 = vmatprep.mubr.bf16.mxu1 %v4852_v51 }
 0x85f   : > { %5459 = vmatmul.mubr.bf16.gmra.mxu1 %v4851_v32  ;;  %v10605_v32 = vld [vmem:[#allocation32_spill] sm:$0xff] }
 0x860   : > { %5468 = vmatprep.mubr.bf16.mxu1 %v4856_v10 }
 0x867   : > { %5469 = vmatmul.mubr.bf16.gmra.mxu1 %v4855_v62 }
 0x8cf   : > { %v5287_v22 = vpop.f32.mrf.mxu1  ;;  %v5400_v0 = vpop.f32.mrf.mxu0 }
 0x8d0   : > { %v5288_v36 = vadd.f32 %v5287_v22, %v10003_v33 }
 0x8d1   : > { %v5289_v15 = vpop.f32.mrf.mxu1  ;;  %v5402_v49 = vpop.f32.mrf.mxu0 }
 0x8d2   : > { %v5401_v41 = vadd.f32 %v5400_v0, %v5288_v36  ;;  %v5290_v57 = vadd.f32 %v5289_v15, %v10006_v60  ;;  %v10606_v15 = vld [vmem:[#allocation37_spill] sm:$0xff] }
 0x8d3   : > { %v5291_v28 = vpop.f32.mrf.mxu1  ;;  %v5404_v21 = vpop.f32.mrf.mxu0 }
 0x8d4   : > { %v5403_v55 = vadd.f32 %v5402_v49, %v5290_v57  ;;  %v5292_v56 = vadd.f32 %v5291_v28, %v10003_v33  ;;  %v10012_v34 = vadd.f32 %v5401_v41, %v10598_v20  ;;  %v10607_v41 = vld [vmem:[#allocation35_spill] sm:$0xff] }
 0x8d5   : > { %v5293_v13 = vpop.f32.mrf.mxu1  ;;  %v5406_v46 = vpop.f32.mrf.mxu0 }
 0x8d6   : > { %v10015_v59 = vadd.f32 %v5403_v55, %v10599_v50  ;;  %v5405_v29 = vadd.f32 %v5404_v21, %v5292_v56  ;;  %v5294_v52 = vadd.f32 %v5293_v13, %v10006_v60 }
 0x8d7   : > { %v5297_v26 = vpop.f32.mrf.mxu1  ;;  %v5410_v53 = vpop.f32.mrf.mxu0 }
 0x8d8   : > { %v5407_v9 = vadd.f32 %v5406_v46, %v5294_v52  ;;  %v5298_v1 = vadd.f32 %v5297_v26, %v10003_v33  ;;  %v5511_v25 = vadd.f32 %v10015_v59, %v10012_v34  ;;  %v10022_v5 = vadd.f32 %v5405_v29, %v10600_v17  ;;  %v10608_v52 = vld [vmem:[#allocation38_spill] sm:$0xff] }
 0x8d9   : > { %v5299_v47 = vpop.f32.mrf.mxu1  ;;  %v5412_v14 = vpop.f32.mrf.mxu0 }
 0x8da   : > { %v10025_v38 = vadd.f32 %v5407_v9, %v10601_v45  ;;  %v5411_v7 = vadd.f32 %v5410_v53, %v5298_v1  ;;  %v5300_v44 = vadd.f32 %v5299_v47, %v10006_v60  ;;  %5512 = vadd.xlane.f32.xlu0 %v5511_v25  ;;  %v10609_v53 = vld [vmem:[#allocation36_spill] sm:$0xff] }
 0x8db   : > { %v5301_v3 = vpop.f32.mrf.mxu1  ;;  %v5414_v19 = vpop.f32.mrf.mxu0 }
 0x8dc   : > { %v5413_v43 = vadd.f32 %v5412_v14, %v5300_v44  ;;  %v5302_v30 = vadd.f32 %v5301_v3, %v10003_v33  ;;  %v5514_v23 = vadd.f32 %v10025_v38, %v10022_v5  ;;  %v10032_v11 = vadd.f32 %v5411_v7, %v10602_v8  ;;  %v10610_v3 = vld [vmem:[#allocation41_spill] sm:$0xff] }
 0x8dd   : > { %v5303_v63 = vpop.f32.mrf.mxu1  ;;  %v5416_v24 = vpop.f32.mrf.mxu0 }
 0x8de   : > { %v10035_v12 = vadd.f32 %v5413_v43, %v10603_v4  ;;  %v5415_v39 = vadd.f32 %v5414_v19, %v5302_v30  ;;  %v5304_v31 = vadd.f32 %v5303_v63, %v10006_v60  ;;  %5515 = vadd.xlane.f32.xlu1 %v5514_v23  ;;  %v10611_v43 = vld [vmem:[#allocation39_spill] sm:$0xff] }
 0x8df   : > { %v5307_v61 = vpop.f32.mrf.mxu1  ;;  %v5420_v51 = vpop.f32.mrf.mxu0 }
 0x8e0   : > { %v5417_v2 = vadd.f32 %v5416_v24, %v5304_v31  ;;  %v5308_v16 = vadd.f32 %v5307_v61, %v10003_v33  ;;  %v5517_v37 = vadd.f32 %v10035_v12, %v10032_v11  ;;  %v10042_v54 = vadd.f32 %v5415_v39, %v10604_v27  ;;  %v10612_v61 = vld [vmem:[#allocation42_spill] sm:$0xff] }
 0x8e1   : > { %v5309_v58 = vpop.f32.mrf.mxu1  ;;  %v5422_v42 = vpop.f32.mrf.mxu0 }
 0x8e2   : > { %v10045_v6 = vadd.f32 %v5417_v2, %v10605_v32  ;;  %v5421_v10 = vadd.f32 %v5420_v51, %v5308_v16  ;;  %v5310_v48 = vadd.f32 %v5309_v58, %v10006_v60  ;;  %5518 = vadd.xlane.f32.xlu0 %v5517_v37  ;;  %v10613_v2 = vld [vmem:[#allocation40_spill] sm:$0xff] }
 0x8e3   : > { %v5311_v18 = vpop.f32.mrf.mxu1  ;;  %v5424_v35 = vpop.f32.mrf.mxu0 }
 0x8e4   : > { %v5423_v62 = vadd.f32 %v5422_v42, %v5310_v48  ;;  %v5312_v40 = vadd.f32 %v5311_v18, %v10003_v33  ;;  %v5520_v22 = vadd.f32 %v10045_v6, %v10042_v54  ;;  %v10052_v49 = vadd.f32 %v5421_v10, %v10606_v15 }
 0x8e5   : > { %v5313_v0 = vpop.f32.mrf.mxu1  ;;  %v5426_v36 = vpop.f32.mrf.mxu0 }
 0x8e6   : > { %v10055_v57 = vadd.f32 %v5423_v62, %v10607_v41  ;;  %v5425_v28 = vadd.f32 %v5424_v35, %v5312_v40  ;;  %v5314_v21 = vadd.f32 %v5313_v0, %v10006_v60  ;;  %5521 = vadd.xlane.f32.xlu1 %v5520_v22 }
 0x8e7   : > { %v5317_v55 = vpop.f32.mrf.mxu1 }
 0x8e8   : > { %v5430_v56 = vpop.f32.mrf.mxu0  ;;  %v5427_v13 = vadd.f32 %v5426_v36, %v5314_v21  ;;  %v5318_v46 = vadd.f32 %v5317_v55, %v10003_v33  ;;  %v5523_v20 = vadd.f32 %v10055_v57, %v10052_v49  ;;  %v10062_v26 = vadd.f32 %v5425_v28, %v10608_v52 }
 0x8e9   : > { %v5319_v50 = vpop.f32.mrf.mxu1 }
 0x8ea   : > { %v5432_v29 = vpop.f32.mrf.mxu0  ;;  %v10065_v9 = vadd.f32 %v5427_v13, %v10609_v53  ;;  %v5431_v1 = vadd.f32 %v5430_v56, %v5318_v46  ;;  %v5320_v25 = vadd.f32 %v5319_v50, %v10006_v60  ;;  %5524 = vadd.xlane.f32.xlu0 %v5523_v20  ;;  %v10615_v53 = vld [vmem:[#allocation43_spill] sm:$0xff] }
 0x8eb   : > { %v5321_v47 = vpop.f32.mrf.mxu1 }
 0x8ec   : > { %v5434_v14 = vpop.f32.mrf.mxu0  ;;  %v5433_v17 = vadd.f32 %v5432_v29, %v5320_v25  ;;  %v5322_v45 = vadd.f32 %v5321_v47, %v10003_v33  ;;  %v5526_v7 = vadd.f32 %v10065_v9, %v10062_v26  ;;  %v10072_v19 = vadd.f32 %v5431_v1, %v10610_v3  ;;  %v10614_v29 = vld [vmem:[#allocation45_spill] sm:$0xff]  ;;  %v10616_v3 = vld [vmem:[#allocation46_spill] sm:$0xff] }
 0x8ed   : > { %v5323_v44 = vpop.f32.mrf.mxu1 }
 0x8ee   : > { %v10075_v30 = vadd.f32 %v5433_v17, %v10611_v43  ;;  %v5435_v23 = vadd.f32 %v5434_v14, %v5322_v45  ;;  %v5324_v63 = vadd.f32 %v5323_v44, %v10006_v60  ;;  %5527 = vadd.xlane.f32.xlu1 %v5526_v7  ;;  %v5436_v24 = vpop.f32.mrf.mxu0 }
 0x8ef   : > { %v5327_v8 = vpop.f32.mrf.mxu1 }
 0x8f0   : > { %v5437_v4 = vadd.f32 %v5436_v24, %v5324_v63  ;;  %v5529_v39 = vadd.f32 %v10075_v30, %v10072_v19  ;;  %v10081_v51 = vadd.f32 %v5435_v23, %v10612_v61  ;;  %v5328_v41 = vadd.f32 %v5327_v8, %v10003_v33  ;;  %v10617_v23 = vld [vmem:[#allocation44_spill] sm:$0xff] }
 0x8f1   : > { %v5329_v31 = vpop.f32.mrf.mxu1 }
 0x8f2   : > { %v10084_v16 = vadd.f32 %v5437_v4, %v10613_v2  ;;  %5530 = vadd.xlane.f32.xlu0 %v5529_v39  ;;  %v5330_v21 = vadd.f32 %v5329_v31, %v10006_v60 }
 0x8f3   : > { %v5331_v37 = vpop.f32.mrf.mxu1 }
 0x8f4   : > { %v5532_v58 = vadd.f32 %v10084_v16, %v10081_v51  ;;  %v5332_v13 = vadd.f32 %v5331_v37, %v10003_v33  ;;  %v10618_v37 = vld [vmem:[#allocation48_spill] sm:$0xff] }
 0x8f5   : > { %v5333_v42 = vpop.f32.mrf.mxu1 }
 0x8f6   : > { %5533 = vadd.xlane.f32.xlu1 %v5532_v58  ;;  %v5334_v50 = vadd.f32 %v5333_v42, %v10006_v60  ;;  %v10619_v42 = vld [vmem:[#allocation47_spill] sm:$0xff] }
 0x8f7   : > { %v5337_v27 = vpop.f32.mrf.mxu1 }
 0x8f8   : > { %v5338_v14 = vadd.f32 %v5337_v27, %v10003_v33 }
 0x8f9   : > { %v5339_v32 = vpop.f32.mrf.mxu1 }
 0x8fa   : > { %v5340_v44 = vadd.f32 %v5339_v32, %v10006_v60 }
 0x8fb   : > { %v5341_v10 = vpop.f32.mrf.mxu1 }
 0x8fc   : > { %v5342_v4 = vadd.f32 %v5341_v10, %v10003_v33 }
 0x8fd   : > { %v5343_v48 = vpop.f32.mrf.mxu1 }
 0x8fe   : > { %v5344_v2 = vadd.f32 %v5343_v48, %v10006_v60 }
 0x8ff   : > { %v5347_v18 = vpop.f32.mrf.mxu1 }
 0x901   : > { %v5349_v35 = vpop.f32.mrf.mxu1 }
 0x903   : > { %v5351_v62 = vpop.f32.mrf.mxu1 }
 0x905   : > { %v5353_v40 = vpop.f32.mrf.mxu1 }
 0x907   : > { %v5357_v22 = vpop.f32.mrf.mxu1 }
 0x909   : > { %v5359_v0 = vpop.f32.mrf.mxu1 }
 0x90b   : > { %v10088_v36 = vpop.f32.mrf.mxu1 }
 0x90d   : > { %v10090_v15 = vpop.f32.mrf.mxu1 }
 0x90f   : > { %v5440_v28 = vpop.f32.mrf.mxu1 }
 0x910   : > { %v5441_v55 = vadd.f32 %v5440_v28, %v5328_v41  ;;  %v5348_v28 = vadd.f32 %v5347_v18, %v10003_v33 }
 0x911   : > { %v5442_v56 = vpop.f32.mrf.mxu1 }
 0x912   : > { %v5443_v46 = vadd.f32 %v5442_v56, %v5330_v21  ;;  %v10097_v52 = vadd.f32 %v5441_v55, %v10614_v29  ;;  %v5350_v56 = vadd.f32 %v5349_v35, %v10006_v60 }
 0x913   : > { %v5444_v20 = vpop.f32.mrf.mxu1 }
 0x914   : > { %v10100_v1 = vadd.f32 %v5443_v46, %v10615_v53  ;;  %v5445_v25 = vadd.f32 %v5444_v20, %v5332_v13  ;;  %v10620_v13 = vld [vmem:[#allocation50_spill] sm:$0xff]  ;;  %v10621_v46 = vld [vmem:[#allocation49_spill] sm:$0xff]  ;;  %v5352_v53 = vadd.f32 %v5351_v62, %v10003_v33 }
 0x915   : > { %v5446_v47 = vpop.f32.mrf.mxu1 }
 0x916   : > { %v5447_v17 = vadd.f32 %v5446_v47, %v5334_v50  ;;  %v5535_v45 = vadd.f32 %v10100_v1, %v10097_v52  ;;  %v10107_v43 = vadd.f32 %v5445_v25, %v10616_v3 }
 0x917   : > { %v5450_v7 = vpop.f32.mrf.mxu1 }
 0x918   : > { %v10110_v63 = vadd.f32 %v5447_v17, %v10617_v23  ;;  %v5451_v24 = vadd.f32 %v5450_v7, %v5338_v14  ;;  %5536 = vadd.xlane.f32.xlu0 %v5535_v45  ;;  %v5354_v14 = vadd.f32 %v5353_v40, %v10006_v60  ;;  %v10622_v17 = vld [vmem:[#allocation53_spill] sm:$0xff]  ;;  %v10623_v45 = vld [vmem:[#allocation51_spill] sm:$0xff]  ;;  %v5358_v23 = vadd.f32 %v5357_v22, %v10003_v33 }
 0x919   : > { %v5452_v8 = vpop.f32.mrf.mxu1 }
 0x91a   : > { %v5453_v39 = vadd.f32 %v5452_v8, %v5340_v44  ;;  %v5538_v31 = vadd.f32 %v10110_v63, %v10107_v43  ;;  %v10117_v58 = vadd.f32 %v5451_v24, %v10618_v37 }
 0x91b   : > { %v5454_v61 = vpop.f32.mrf.mxu1 }
 0x91c   : > { %v10120_v27 = vadd.f32 %v5453_v39, %v10619_v42  ;;  %v5455_v32 = vadd.f32 %v5454_v61, %v5342_v4  ;;  %5539 = vadd.xlane.f32.xlu1 %v5538_v31  ;;  %v5360_v4 = vadd.f32 %v5359_v0, %v10006_v60  ;;  %v10624_v39 = vld [vmem:[#allocation54_spill] sm:$0xff]  ;;  %v10625_v31 = vld [vmem:[#allocation52_spill] sm:$0xff]  ;;  %v5362_v42 = vadd.f32 %v10088_v36, %v10003_v33 }
 0x91d   : > { %v5456_v41 = vpop.f32.mrf.mxu1  ;;  %v5364_v0 = vadd.f32 %v10090_v15, %v10006_v60  ;;  %v10628_v36 = vld [vmem:[#allocation58_spill] sm:$0xff] }
 0x91e   : > { %v5457_v21 = vadd.f32 %v5456_v41, %v5344_v2  ;;  %v5541_v10 = vadd.f32 %v10120_v27, %v10117_v58  ;;  %v10127_v48 = vadd.f32 %v5455_v32, %v10620_v13 }
 0x91f   : > { %v5460_v55 = vpop.f32.mrf.mxu1 }
 0x920   : > { %v10130_v20 = vadd.f32 %v5457_v21, %v10621_v46  ;;  %v5461_v50 = vadd.f32 %v5460_v55, %v5348_v28  ;;  %5542 = vadd.xlane.f32.xlu0 %v5541_v10  ;;  %v10626_v28 = vld [vmem:[#allocation57_spill] sm:$0xff]  ;;  %v10627_v10 = vld [vmem:[#allocation55_spill] sm:$0xff] }
 0x921   : > { %v5462_v29 = vpop.f32.mrf.mxu1 }
 0x922   : > { %v5463_v25 = vadd.f32 %v5462_v29, %v5350_v56  ;;  %v5544_v18 = vadd.f32 %v10130_v20, %v10127_v48  ;;  %v10137_v35 = vadd.f32 %v5461_v50, %v10622_v17  ;;  %v10629_v29 = vld [vmem:[#allocation56_spill] sm:$0xff] }
 0x923   : > { %v5464_v47 = vpop.f32.mrf.mxu1 }
 0x924   : > { %v10140_v7 = vadd.f32 %v5463_v25, %v10623_v45  ;;  %v5465_v44 = vadd.f32 %v5464_v47, %v5352_v53  ;;  %5545 = vadd.xlane.f32.xlu1 %v5544_v18 }
 0x925   : > { %v5466_v3 = vpop.f32.mrf.mxu1 }
 0x926   : > { %v5467_v24 = vadd.f32 %v5466_v3, %v5354_v14  ;;  %v5547_v62 = vadd.f32 %v10140_v7, %v10137_v35  ;;  %v10147_v40 = vadd.f32 %v5465_v44, %v10624_v39 }
 0x927   : > { %v5470_v8 = vpop.f32.mrf.mxu1 }
 0x928   : > { %v10150_v61 = vadd.f32 %v5467_v24, %v10625_v31  ;;  %v5471_v2 = vadd.f32 %v5470_v8, %v5358_v23  ;;  %5548 = vadd.xlane.f32.xlu0 %v5547_v62 }
 0x929   : > { %v5472_v37 = vpop.f32.mrf.mxu1 }
 0x92a   : > { %v5473_v22 = vadd.f32 %v5472_v37, %v5360_v4  ;;  %v5550_v32 = vadd.f32 %v10150_v61, %v10147_v40  ;;  %v10159_v21 = vadd.f32 %v5471_v2, %v10626_v28 }
 0x92b   : > { %v5474_v41 = vpop.f32.mrf.mxu1 }
 0x92c   : > { %v10162_v55 = vadd.f32 %v5473_v22, %v10627_v10  ;;  %v5475_v56 = vadd.f32 %v5474_v41, %v5362_v42  ;;  %5551 = vadd.xlane.f32.xlu1 %v5550_v32 }
 0x92d   : > { %v5476_v13 = vpop.f32.mrf.mxu1 }
 0x92e   : > { %v5477_v46 = vadd.f32 %v5476_v13, %v5364_v0  ;;  %v5553_v33 = vadd.f32 %v10162_v55, %v10159_v21  ;;  %v10167_v50 = vadd.f32 %v5475_v56, %v10628_v36 }
 0x930   : > { %v10170_v53 = vadd.f32 %v5477_v46, %v10629_v29  ;;  %5554 = vadd.xlane.f32.xlu0 %v5553_v33 }
 0x932   : > { %v5556_v60 = vadd.f32 %v10170_v53, %v10167_v50 }
 0x934   : > { %5557 = vadd.xlane.f32.xlu1 %v5556_v60 }
 0x963   : > { %v5513_v15 = vpop.xlane.xlu0 %5512 }
 0x964   : > { %v5559_v25 = vmul.f32 0.00390625, %v5513_v15 }
 0x966   : > { %v10175_v18 = vsub.f32 %v10012_v34, %v5559_v25  ;;  %v10178_v47 = vsub.f32 %v10015_v59, %v5559_v25 }
 0x967   : > { %v5516_v14 = vpop.xlane.xlu1 %5515 }
 0x968   : > { %v5607_v17 = vmul.f32 %v10175_v18, %v10175_v18  ;;  %v5608_v45 = vmul.f32 %v10178_v47, %v10178_v47  ;;  %v5560_v44 = vmul.f32 0.00390625, %v5516_v14 }
 0x96a   : > { %v10185_v3 = vsub.f32 %v10022_v5, %v5560_v44  ;;  %v10188_v23 = vsub.f32 %v10025_v38, %v5560_v44  ;;  %v5639_v24 = vadd.f32 %v5608_v45, %v5607_v17 }
 0x96b   : > { %v5519_v34 = vpop.xlane.xlu0 %5518 }
 0x96c   : > { %v5609_v59 = vmul.f32 %v10185_v3, %v10185_v3  ;;  %v5610_v62 = vmul.f32 %v10188_v23, %v10188_v23  ;;  %v5561_v8 = vmul.f32 0.00390625, %v5519_v34  ;;  %5640 = vadd.xlane.f32.xlu0 %v5639_v24 }
 0x96e   : > { %v10195_v4 = vsub.f32 %v10032_v11, %v5561_v8  ;;  %v10198_v39 = vsub.f32 %v10035_v12, %v5561_v8  ;;  %v5642_v5 = vadd.f32 %v5610_v62, %v5609_v59 }
 0x96f   : > { %v5522_v31 = vpop.xlane.xlu1 %5521 }
 0x970   : > { %v5611_v38 = vmul.f32 %v10195_v4, %v10195_v4  ;;  %v5612_v2 = vmul.f32 %v10198_v39, %v10198_v39  ;;  %v5562_v37 = vmul.f32 0.00390625, %v5522_v31  ;;  %5643 = vadd.xlane.f32.xlu1 %v5642_v5 }
 0x972   : > { %v10205_v42 = vsub.f32 %v10042_v54, %v5562_v37  ;;  %v10208_v22 = vsub.f32 %v10045_v6, %v5562_v37  ;;  %v5645_v11 = vadd.f32 %v5612_v2, %v5611_v38 }
 0x973   : > { %v5525_v32 = vpop.xlane.xlu0 %5524 }
 0x974   : > { %v5613_v12 = vmul.f32 %v10205_v42, %v10205_v42  ;;  %v5614_v41 = vmul.f32 %v10208_v22, %v10208_v22  ;;  %v5563_v0 = vmul.f32 0.00390625, %v5525_v32  ;;  %5646 = vadd.xlane.f32.xlu0 %v5645_v11 }
 0x976   : > { %v10215_v28 = vsub.f32 %v10052_v49, %v5563_v0  ;;  %v10218_v10 = vsub.f32 %v10055_v57, %v5563_v0  ;;  %v5648_v54 = vadd.f32 %v5614_v41, %v5613_v12 }
 0x977   : > { %v5528_v56 = vpop.xlane.xlu1 %5527 }
 0x978   : > { %v5615_v6 = vmul.f32 %v10215_v28, %v10215_v28  ;;  %v5616_v13 = vmul.f32 %v10218_v10, %v10218_v10  ;;  %v5564_v46 = vmul.f32 0.00390625, %v5528_v56  ;;  %5649 = vadd.xlane.f32.xlu1 %v5648_v54 }
 0x97a   : > { %v10225_v33 = vsub.f32 %v10062_v26, %v5564_v46  ;;  %v10228_v36 = vsub.f32 %v10065_v9, %v5564_v46  ;;  %v5651_v49 = vadd.f32 %v5616_v13, %v5615_v6 }
 0x97b   : > { %v5531_v29 = vpop.xlane.xlu0 %5530 }
 0x97c   : > { %v5617_v57 = vmul.f32 %v10225_v33, %v10225_v33  ;;  %v5618_v60 = vmul.f32 %v10228_v36, %v10228_v36  ;;  %v5565_v15 = vmul.f32 0.00390625, %v5531_v29  ;;  %5652 = vadd.xlane.f32.xlu0 %v5651_v49 }
 0x97e   : > { %v10235_v25 = vsub.f32 %v10072_v19, %v5565_v15  ;;  %v10238_v14 = vsub.f32 %v10075_v30, %v5565_v15  ;;  %v5654_v26 = vadd.f32 %v5618_v60, %v5617_v57 }
 0x97f   : > { %v5534_v17 = vpop.xlane.xlu1 %5533 }
 0x980   : > { %v5619_v9 = vmul.f32 %v10235_v25, %v10235_v25  ;;  %v5620_v45 = vmul.f32 %v10238_v14, %v10238_v14  ;;  %v5566_v44 = vmul.f32 0.00390625, %v5534_v17  ;;  %5655 = vadd.xlane.f32.xlu1 %v5654_v26 }
 0x982   : > { %v10245_v24 = vsub.f32 %v10081_v51, %v5566_v44  ;;  %v10248_v34 = vsub.f32 %v10084_v16, %v5566_v44  ;;  %v5657_v19 = vadd.f32 %v5620_v45, %v5619_v9 }
 0x984   : > { %v5621_v30 = vmul.f32 %v10245_v24, %v10245_v24  ;;  %v5622_v59 = vmul.f32 %v10248_v34, %v10248_v34  ;;  %5658 = vadd.xlane.f32.xlu0 %v5657_v19 }
 0x986   : > { %v5660_v62 = vadd.f32 %v5622_v59, %v5621_v30 }
 0x988   : > { %5661 = vadd.xlane.f32.xlu1 %v5660_v62 }
 0x9a1   : > { %v5537_v8 = vpop.xlane.xlu0 %5536 }
 0x9a2   : > { %v5567_v5 = vmul.f32 0.00390625, %v5537_v8 }
 0x9a4   : > { %v10255_v31 = vsub.f32 %v10097_v52, %v5567_v5  ;;  %v10258_v51 = vsub.f32 %v10100_v1, %v5567_v5 }
 0x9a5   : > { %v5540_v16 = vpop.xlane.xlu1 %5539 }
 0x9a6   : > { %v5623_v38 = vmul.f32 %v10255_v31, %v10255_v31  ;;  %v5624_v2 = vmul.f32 %v10258_v51, %v10258_v51  ;;  %v5568_v37 = vmul.f32 0.00390625, %v5540_v16 }
 0x9a8   : > { %v10265_v11 = vsub.f32 %v10107_v43, %v5568_v37  ;;  %v10268_v32 = vsub.f32 %v10110_v63, %v5568_v37  ;;  %v5663_v12 = vadd.f32 %v5624_v2, %v5623_v38 }
 0x9a9   : > { %v5543_v52 = vpop.xlane.xlu0 %5542 }
 0x9aa   : > { %v5625_v1 = vmul.f32 %v10265_v11, %v10265_v11  ;;  %v5626_v41 = vmul.f32 %v10268_v32, %v10268_v32  ;;  %v5569_v0 = vmul.f32 0.00390625, %v5543_v52  ;;  %5664 = vadd.xlane.f32.xlu0 %v5663_v12 }
 0x9ac   : > { %v10275_v54 = vsub.f32 %v10117_v58, %v5569_v0  ;;  %v10278_v56 = vsub.f32 %v10120_v27, %v5569_v0  ;;  %v5666_v43 = vadd.f32 %v5626_v41, %v5625_v1 }
 0x9ad   : > { %v5546_v6 = vpop.xlane.xlu1 %5545 }
 0x9ae   : > { %v5627_v63 = vmul.f32 %v10275_v54, %v10275_v54  ;;  %v5628_v13 = vmul.f32 %v10278_v56, %v10278_v56  ;;  %v5570_v46 = vmul.f32 0.00390625, %v5546_v6  ;;  %5667 = vadd.xlane.f32.xlu1 %v5666_v43 }
 0x9b0   : > { %v10285_v49 = vsub.f32 %v10127_v48, %v5570_v46  ;;  %v10288_v29 = vsub.f32 %v10130_v20, %v5570_v46  ;;  %v5669_v58 = vadd.f32 %v5628_v13, %v5627_v63 }
 0x9b1   : > { %v5549_v57 = vpop.xlane.xlu0 %5548 }
 0x9b2   : > { %v5629_v27 = vmul.f32 %v10285_v49, %v10285_v49  ;;  %v5630_v60 = vmul.f32 %v10288_v29, %v10288_v29  ;;  %v5571_v15 = vmul.f32 0.00390625, %v5549_v57  ;;  %5670 = vadd.xlane.f32.xlu0 %v5669_v58 }
 0x9b4   : > { %v10295_v26 = vsub.f32 %v10137_v35, %v5571_v15  ;;  %v10298_v17 = vsub.f32 %v10140_v7, %v5571_v15  ;;  %v5672_v48 = vadd.f32 %v5630_v60, %v5629_v27 }
 0x9b5   : > { %v5552_v9 = vpop.xlane.xlu1 %5551 }
 0x9b6   : > { %v5631_v20 = vmul.f32 %v10295_v26, %v10295_v26  ;;  %v5632_v45 = vmul.f32 %v10298_v17, %v10298_v17  ;;  %v5572_v44 = vmul.f32 0.00390625, %v5552_v9  ;;  %5673 = vadd.xlane.f32.xlu1 %v5672_v48 }
 0x9b8   : > { %v10305_v19 = vsub.f32 %v10147_v40, %v5572_v44  ;;  %v10308_v30 = vsub.f32 %v10150_v61, %v5572_v44  ;;  %v5675_v35 = vadd.f32 %v5632_v45, %v5631_v20 }
 0x9b9   : > { %v5555_v59 = vpop.xlane.xlu0 %5554 }
 0x9ba   : > { %v5633_v7 = vmul.f32 %v10305_v19, %v10305_v19  ;;  %v5634_v62 = vmul.f32 %v10308_v30, %v10308_v30  ;;  %v5573_v8 = vmul.f32 0.00390625, %v5555_v59  ;;  %5676 = vadd.xlane.f32.xlu0 %v5675_v35 }
 0x9bc   : > { %v10315_v5 = vsub.f32 %v10159_v21, %v5573_v8  ;;  %v10318_v16 = vsub.f32 %v10162_v55, %v5573_v8  ;;  %v5678_v40 = vadd.f32 %v5634_v62, %v5633_v7 }
 0x9bd   : > { %v5558_v38 = vpop.xlane.xlu1 %5557 }
 0x9be   : > { %v5635_v61 = vmul.f32 %v10315_v5, %v10315_v5  ;;  %v5636_v2 = vmul.f32 %v10318_v16, %v10318_v16  ;;  %v5574_v37 = vmul.f32 0.00390625, %v5558_v38  ;;  %5679 = vadd.xlane.f32.xlu1 %v5678_v40 }
 0x9c0   : > { %v10325_v12 = vsub.f32 %v10167_v50, %v5574_v37  ;;  %v10328_v52 = vsub.f32 %v10170_v53, %v5574_v37  ;;  %v5681_v21 = vadd.f32 %v5636_v2, %v5635_v61 }
 0x9c2   : > { %v5637_v55 = vmul.f32 %v10325_v12, %v10325_v12  ;;  %v5638_v1 = vmul.f32 %v10328_v52, %v10328_v52  ;;  %5682 = vadd.xlane.f32.xlu0 %v5681_v21 }
 0x9c4   : > { %v5684_v41 = vadd.f32 %v5638_v1, %v5637_v55 }
 0x9c6   : > { %5685 = vadd.xlane.f32.xlu1 %v5684_v41 }
 0x9f5   : > { %v5641_v0 = vpop.xlane.xlu0 %5640 }
 0x9f6   : > { %v5687_v43 = vmul.f32 0.003921569, %v5641_v0 }
 0x9f8   : > { %7956 = vrsqrt.f32 %v5687_v43  ;;  %vm5705_vm0 = vcmp.eq.f32.partialorder %v5687_v43, inf  ;;  %v5708_v15 = vand.u32 2147483648, %v5687_v43  ;;  %vm5707_vm1 = vcmp.eq.f32.partialorder %v5687_v43, 0.0 }
 0x9f9   : > { %v5644_v6 = vpop.xlane.xlu1 %5643 }
 0x9fa   : > { %v5688_v63 = vmul.f32 0.003921569, %v5644_v6 }
 0x9fc   : > { %7958 = vrsqrt.f32 %v5688_v63  ;;  %vm5712_vm2 = vcmp.eq.f32.partialorder %v5688_v63, inf  ;;  %v5715_v7 = vand.u32 2147483648, %v5688_v63  ;;  %vm5714_vm3 = vcmp.eq.f32.partialorder %v5688_v63, 0.0 }
 0x9fd   : > { %v5647_v50 = vpop.xlane.xlu0 %5646 }
 0x9fe   : > { %v5689_v13 = vmul.f32 0.003921569, %v5647_v50 }
 0xa00   : > { %7960 = vrsqrt.f32 %v5689_v13  ;;  %vm5719_vm4 = vcmp.eq.f32.partialorder %v5689_v13, inf  ;;  %v5722_v21 = vand.u32 2147483648, %v5689_v13  ;;  %vm5721_vm5 = vcmp.eq.f32.partialorder %v5689_v13, 0.0 }
 0xa01   : > { %v5650_v53 = vpop.xlane.xlu1 %5649 }
 0xa02   : > { %v5690_v46 = vmul.f32 0.003921569, %v5650_v53 }
 0xa04   : > { %7962 = vrsqrt.f32 %v5690_v46  ;;  %vm5726_vm6 = vcmp.eq.f32.partialorder %v5690_v46, inf  ;;  %v5729_v50 = vand.u32 2147483648, %v5690_v46  ;;  %vm5728_vm7 = vcmp.eq.f32.partialorder %v5690_v46, 0.0 }
 0xa05   : > { %v7957_v58 = vpop.eup %7956  ;;  %v5653_v57 = vpop.xlane.xlu0 %5652 }
 0xa06   : > { %v5704_v27 = vmul.f32 %v7957_v58, %v5687_v43  ;;  %v5691_v60 = vmul.f32 0.003921569, %v5653_v57 }
 0xa08   : > { %v5706_v48 = vsel %vm5705_vm0, %v5687_v43, %v5704_v27  ;;  %7964 = vrsqrt.f32 %v5691_v60  ;;  %vm5733_vm8 = vcmp.eq.f32.partialorder %v5691_v60, inf  ;;  %vm5735_vm9 = vcmp.eq.f32.partialorder %v5691_v60, 0.0 }
 0xa09   : > { %v7959_v9 = vpop.eup %7958  ;;  %v5709_v20 = vsel %vm5707_vm1, %v5708_v15, %v5706_v48  ;;  %v5656_v45 = vpop.xlane.xlu1 %5655  ;;  %v5736_v15 = vand.u32 2147483648, %v5691_v60 }
 0xa0a   : > { %v5815_v44 = vadd.f32 1e-06, %v5709_v20  ;;  %v5711_v35 = vmul.f32 %v7959_v9, %v5688_v63  ;;  %v5692_v59 = vmul.f32 0.003921569, %v5656_v45 }
 0xa0c   : > { %7966 = vrcp.f32 %v5815_v44  ;;  %v5713_v62 = vsel %vm5712_vm2, %v5688_v63, %v5711_v35  ;;  %vm5740_vm10 = vcmp.eq.f32.partialorder %v5692_v59, inf  ;;  %vm5742_vm11 = vcmp.eq.f32.partialorder %v5692_v59, 0.0 }
 0xa0d   : > { %v7961_v8 = vpop.eup %7960  ;;  %v5716_v40 = vsel %vm5714_vm3, %v5715_v7, %v5713_v62  ;;  %7968 = vrsqrt.f32 %v5692_v59  ;;  %v5659_v38 = vpop.xlane.xlu0 %5658 }
 0xa0e   : > { %v5816_v61 = vadd.f32 1e-06, %v5716_v40  ;;  %v5718_v2 = vmul.f32 %v7961_v8, %v5689_v13  ;;  %v10334_v37 = vmul.f32 0.003921569, %v5659_v38 }
 0xa10   : > { %7970 = vrcp.f32 %v5816_v61  ;;  %v5720_v55 = vsel %vm5719_vm4, %v5689_v13, %v5718_v2  ;;  %vm5747_vm12 = vcmp.eq.f32.partialorder %v10334_v37, inf  ;;  %vm5749_vm13 = vcmp.eq.f32.partialorder %v10334_v37, 0.0 }
 0xa11   : > { %v7963_v1 = vpop.eup %7962  ;;  %v5723_v41 = vsel %vm5721_vm5, %v5722_v21, %v5720_v55  ;;  %7972 = vrsqrt.f32 %v10334_v37  ;;  %v5662_v0 = vpop.xlane.xlu1 %5661  ;;  %v5750_v21 = vand.u32 2147483648, %v10334_v37 }
 0xa12   : > { %v5817_v43 = vadd.f32 1e-06, %v5723_v41  ;;  %v5725_v6 = vmul.f32 %v7963_v1, %v5690_v46  ;;  %v10337_v63 = vmul.f32 0.003921569, %v5662_v0 }
 0xa14   : > { %7974 = vrcp.f32 %v5817_v43  ;;  %v5727_v53 = vsel %vm5726_vm6, %v5690_v46, %v5725_v6  ;;  %vm5754_vm14 = vcmp.eq.f32.partialorder %v10337_v63, inf  ;;  %v5757_v6 = vand.u32 2147483648, %v10337_v63 }
 0xa15   : > { %v7965_v58 = vpop.eup %7964  ;;  %v5730_v57 = vsel %vm5728_vm7, %v5729_v50, %v5727_v53  ;;  %7976 = vrsqrt.f32 %v10337_v63  ;;  %vm5756_vm15 = vcmp.eq.f32.partialorder %v10337_v63, 0.0 }
 0xa16   : > { %v5818_v13 = vadd.f32 1e-06, %v5730_v57  ;;  %v5732_v27 = vmul.f32 %v7965_v58, %v5691_v60 }
 0xa18   : > { %7978 = vrcp.f32 %v5818_v13  ;;  %v5734_v48 = vsel %vm5733_vm8, %v5691_v60, %v5732_v27  ;;  %v5743_v60 = vand.u32 2147483648, %v5692_v59 }
 0xa19   : > { %v7967_v9 = vpop.eup %7966  ;;  %v5737_v20 = vsel %vm5735_vm9, %v5736_v15, %v5734_v48 }
 0xa1a   : > { %v7969_v45 = vpop.eup %7968  ;;  %v5863_v44 = vmul.f32 %v7967_v9, %v10175_v18  ;;  %v5864_v35 = vmul.f32 %v7967_v9, %v10178_v47  ;;  %v5819_v46 = vadd.f32 1e-06, %v5737_v20 }
 0xa1b   : > { %v5739_v7 = vmul.f32 %v7969_v45, %v5692_v59 }
 0xa1c   : > { %5895 = vst [vmem:[%s10344_s8] sm:$0xff] %v5863_v44  ;;  %5896 = vst [vmem:[%s10344_s8 + $0x8] sm:$0xff] %v5864_v35  ;;  %7980 = vrcp.f32 %v5819_v46 }
 0xa1d   : > { %v7971_v62 = vpop.eup %7970  ;;  %v5741_v8 = vsel %vm5740_vm10, %v5692_v59, %v5739_v7 }
 0xa1e   : > { %v7973_v18 = vpop.eup %7972  ;;  %v5865_v47 = vmul.f32 %v7971_v62, %v10185_v3  ;;  %v5866_v40 = vmul.f32 %v7971_v62, %v10188_v23  ;;  %v5744_v38 = vsel %vm5742_vm11, %v5743_v60, %v5741_v8 }
 0xa1f   : > { %v5820_v61 = vadd.f32 1e-06, %v5744_v38  ;;  %v5746_v2 = vmul.f32 %v7973_v18, %v10334_v37 }
 0xa20   : > { %5897 = vst [vmem:[%s10344_s8 + $0x10] sm:$0xff] %v5865_v47  ;;  %5898 = vst [vmem:[%s10344_s8 + $0x18] sm:$0xff] %v5866_v40 }
 0xa21   : > { %v7975_v55 = vpop.eup %7974  ;;  %7982 = vrcp.f32 %v5820_v61  ;;  %v5748_v59 = vsel %vm5747_vm12, %v10334_v37, %v5746_v2 }
 0xa22   : > { %v7977_v3 = vpop.eup %7976  ;;  %v5867_v23 = vmul.f32 %v7975_v55, %v10195_v4  ;;  %v5868_v1 = vmul.f32 %v7975_v55, %v10198_v39  ;;  %v5751_v41 = vsel %vm5749_vm13, %v5750_v21, %v5748_v59 }
 0xa23   : > { %v5821_v0 = vadd.f32 1e-06, %v5751_v41  ;;  %v5753_v43 = vmul.f32 %v7977_v3, %v10337_v63 }
 0xa24   : > { %5899 = vst [vmem:[%s10344_s8 + $0x20] sm:$0xff] %v5867_v23  ;;  %5900 = vst [vmem:[%s10344_s8 + $0x28] sm:$0xff] %v5868_v1 }
 0xa25   : > { %v7979_v37 = vpop.eup %7978  ;;  %7984 = vrcp.f32 %v5821_v0  ;;  %v5755_v4 = vsel %vm5754_vm14, %v10337_v63, %v5753_v43 }
 0xa26   : > { %v5869_v39 = vmul.f32 %v7979_v37, %v10205_v42  ;;  %v5870_v50 = vmul.f32 %v7979_v37, %v10208_v22  ;;  %v5758_v53 = vsel %vm5756_vm15, %v5757_v6, %v5755_v4 }
 0xa27   : > { %v5822_v58 = vadd.f32 1e-06, %v5758_v53 }
 0xa28   : > { %5901 = vst [vmem:[%s10344_s8 + $0x30] sm:$0xff] %v5869_v39  ;;  %5902 = vst [vmem:[%s10344_s8 + $0x38] sm:$0xff] %v5870_v50 }
 0xa29   : > { %v7981_v57 = vpop.eup %7980  ;;  %7986 = vrcp.f32 %v5822_v58 }
 0xa2a   : > { %v5871_v13 = vmul.f32 %v7981_v57, %v10215_v28  ;;  %v5872_v27 = vmul.f32 %v7981_v57, %v10218_v10 }
 0xa2c   : > { %5903 = vst [vmem:[%s10344_s8 + $0x40] sm:$0xff] %v5871_v13  ;;  %5904 = vst [vmem:[%s10344_s8 + $0x48] sm:$0xff] %v5872_v27 }
 0xa2e   : > { %v7983_v63 = vpop.eup %7982 }
 0xa2f   : > { %v5873_v42 = vmul.f32 %v7983_v63, %v10225_v33  ;;  %v5874_v15 = vmul.f32 %v7983_v63, %v10228_v36 }
 0xa31   : > { %5905 = vst [vmem:[%s10344_s8 + $0x50] sm:$0xff] %v5873_v42  ;;  %5906 = vst [vmem:[%s10344_s8 + $0x58] sm:$0xff] %v5874_v15 }
 0xa32   : > { %v7985_v22 = vpop.eup %7984 }
 0xa33   : > { %v5875_v48 = vmul.f32 %v7985_v22, %v10235_v25  ;;  %v5876_v9 = vmul.f32 %v7985_v22, %v10238_v14  ;;  %v5665_v20 = vpop.xlane.xlu0 %5664 }
 0xa34   : > { %v5695_v28 = vmul.f32 0.003921569, %v5665_v20 }
 0xa35   : > { %5907 = vst [vmem:[%s10344_s8 + $0x60] sm:$0xff] %v5875_v48  ;;  %5908 = vst [vmem:[%s10344_s8 + $0x68] sm:$0xff] %v5876_v9 }
 0xa36   : > { %v7987_v10 = vpop.eup %7986  ;;  %7988 = vrsqrt.f32 %v5695_v28  ;;  %vm5761_vm0 = vcmp.eq.f32.partialorder %v5695_v28, inf  ;;  %v5764_v18 = vand.u32 2147483648, %v5695_v28  ;;  %vm5763_vm1 = vcmp.eq.f32.partialorder %v5695_v28, 0.0 }
 0xa37   : > { %v5877_v45 = vmul.f32 %v7987_v10, %v10245_v24  ;;  %v5878_v33 = vmul.f32 %v7987_v10, %v10248_v34  ;;  %v5668_v36 = vpop.xlane.xlu1 %5667 }
 0xa38   : > { %v5696_v44 = vmul.f32 0.003921569, %v5668_v36 }
 0xa39   : > { %5909 = vst [vmem:[%s10344_s8 + $0x70] sm:$0xff] %v5877_v45  ;;  %5910 = vst [vmem:[%s10344_s8 + $0x78] sm:$0xff] %v5878_v33 }
 0xa3a   : > { %7990 = vrsqrt.f32 %v5696_v44  ;;  %vm5768_vm2 = vcmp.eq.f32.partialorder %v5696_v44, inf  ;;  %v5771_v21 = vand.u32 2147483648, %v5696_v44  ;;  %vm5770_vm3 = vcmp.eq.f32.partialorder %v5696_v44, 0.0 }
 0xa3b   : > { %v5671_v35 = vpop.xlane.xlu0 %5670 }
 0xa3c   : > { %v5697_v46 = vmul.f32 0.003921569, %v5671_v35 }
 0xa3e   : > { %7992 = vrsqrt.f32 %v5697_v46  ;;  %vm5775_vm4 = vcmp.eq.f32.partialorder %v5697_v46, inf  ;;  %v5778_v43 = vand.u32 2147483648, %v5697_v46  ;;  %vm5777_vm5 = vcmp.eq.f32.partialorder %v5697_v46, 0.0 }
 0xa3f   : > { %v5674_v25 = vpop.xlane.xlu1 %5673 }
 0xa40   : > { %v5698_v14 = vmul.f32 0.003921569, %v5674_v25 }
 0xa42   : > { %7994 = vrsqrt.f32 %v5698_v14  ;;  %vm5782_vm6 = vcmp.eq.f32.partialorder %v5698_v14, inf  ;;  %v5785_v57 = vand.u32 2147483648, %v5698_v14  ;;  %vm5784_vm7 = vcmp.eq.f32.partialorder %v5698_v14, 0.0 }
 0xa43   : > { %v7989_v7 = vpop.eup %7988  ;;  %v5677_v60 = vpop.xlane.xlu0 %5676 }
 0xa44   : > { %v5760_v62 = vmul.f32 %v7989_v7, %v5695_v28  ;;  %v5699_v8 = vmul.f32 0.003921569, %v5677_v60 }
 0xa46   : > { %v5762_v24 = vsel %vm5761_vm0, %v5695_v28, %v5760_v62  ;;  %7996 = vrsqrt.f32 %v5699_v8  ;;  %vm5789_vm8 = vcmp.eq.f32.partialorder %v5699_v8, inf  ;;  %v5792_v22 = vand.u32 2147483648, %v5699_v8 }
 0xa47   : > { %v7991_v34 = vpop.eup %7990  ;;  %v5765_v47 = vsel %vm5763_vm1, %v5764_v18, %v5762_v24  ;;  %v5680_v40 = vpop.xlane.xlu1 %5679  ;;  %vm5791_vm9 = vcmp.eq.f32.partialorder %v5699_v8, 0.0 }
 0xa48   : > { %v5823_v38 = vadd.f32 1e-06, %v5765_v47  ;;  %v5767_v61 = vmul.f32 %v7991_v34, %v5696_v44  ;;  %v5700_v2 = vmul.f32 0.003921569, %v5680_v40 }
 0xa4a   : > { %7998 = vrcp.f32 %v5823_v38  ;;  %v5769_v55 = vsel %vm5768_vm2, %v5696_v44, %v5767_v61  ;;  %vm5796_vm10 = vcmp.eq.f32.partialorder %v5700_v2, inf  ;;  %v5799_v44 = vand.u32 2147483648, %v5700_v2 }
 0xa4b   : > { %v7993_v59 = vpop.eup %7992  ;;  %v5772_v3 = vsel %vm5770_vm3, %v5771_v21, %v5769_v55  ;;  %8000 = vrsqrt.f32 %v5700_v2  ;;  %v5683_v23 = vpop.xlane.xlu0 %5682  ;;  %vm5798_vm11 = vcmp.eq.f32.partialorder %v5700_v2, 0.0 }
 0xa4c   : > { %v5824_v1 = vadd.f32 1e-06, %v5772_v3  ;;  %v5774_v41 = vmul.f32 %v7993_v59, %v5697_v46  ;;  %v5701_v0 = vmul.f32 0.003921569, %v5683_v23 }
 0xa4e   : > { %8002 = vrcp.f32 %v5824_v1  ;;  %v5776_v6 = vsel %vm5775_vm4, %v5697_v46, %v5774_v41  ;;  %vm5803_vm12 = vcmp.eq.f32.partialorder %v5701_v0, inf  ;;  %v5806_v62 = vand.u32 2147483648, %v5701_v0 }
 0xa4f   : > { %v7995_v37 = vpop.eup %7994  ;;  %v5779_v4 = vsel %vm5777_vm5, %v5778_v43, %v5776_v6  ;;  %8004 = vrsqrt.f32 %v5701_v0  ;;  %v5686_v39 = vpop.xlane.xlu1 %5685  ;;  %vm5805_vm13 = vcmp.eq.f32.partialorder %v5701_v0, 0.0 }
 0xa50   : > { %v5825_v50 = vadd.f32 1e-06, %v5779_v4  ;;  %v5781_v53 = vmul.f32 %v7995_v37, %v5698_v14  ;;  %v10386_v58 = vmul.f32 0.003921569, %v5686_v39 }
 0xa52   : > { %8006 = vrcp.f32 %v5825_v50  ;;  %v5783_v13 = vsel %vm5782_vm6, %v5698_v14, %v5781_v53  ;;  %vm5810_vm14 = vcmp.eq.f32.partialorder %v10386_v58, inf  ;;  %v5813_v38 = vand.u32 2147483648, %v10386_v58 }
 0xa53   : > { %v7997_v27 = vpop.eup %7996  ;;  %v5786_v63 = vsel %vm5784_vm7, %v5785_v57, %v5783_v13  ;;  %8008 = vrsqrt.f32 %v10386_v58  ;;  %vm5812_vm15 = vcmp.eq.f32.partialorder %v10386_v58, 0.0 }
 0xa54   : > { %v5826_v42 = vadd.f32 1e-06, %v5786_v63  ;;  %v5788_v15 = vmul.f32 %v7997_v27, %v5699_v8 }
 0xa56   : > { %8010 = vrcp.f32 %v5826_v42  ;;  %v5790_v48 = vsel %vm5789_vm8, %v5699_v8, %v5788_v15 }
 0xa57   : > { %v7999_v9 = vpop.eup %7998  ;;  %v5793_v20 = vsel %vm5791_vm9, %v5792_v22, %v5790_v48 }
 0xa58   : > { %v8001_v28 = vpop.eup %8000  ;;  %v5879_v10 = vmul.f32 %v7999_v9, %v10255_v31  ;;  %v5880_v45 = vmul.f32 %v7999_v9, %v10258_v51  ;;  %v5827_v33 = vadd.f32 1e-06, %v5793_v20 }
 0xa59   : > { %v5795_v36 = vmul.f32 %v8001_v28, %v5700_v2 }
 0xa5a   : > { %5911 = vst [vmem:[%s10344_s8 + $0x80] sm:$0xff] %v5879_v10  ;;  %5912 = vst [vmem:[%s10344_s8 + $0x88] sm:$0xff] %v5880_v45  ;;  %8012 = vrcp.f32 %v5827_v33 }
 0xa5b   : > { %v8003_v35 = vpop.eup %8002  ;;  %v5797_v46 = vsel %vm5796_vm10, %v5700_v2, %v5795_v36 }
 0xa5c   : > { %v8005_v25 = vpop.eup %8004  ;;  %v5881_v14 = vmul.f32 %v8003_v35, %v10265_v11  ;;  %v5882_v7 = vmul.f32 %v8003_v35, %v10268_v32  ;;  %v5800_v31 = vsel %vm5798_vm11, %v5799_v44, %v5797_v46 }
 0xa5d   : > { %v5828_v60 = vadd.f32 1e-06, %v5800_v31  ;;  %v5802_v51 = vmul.f32 %v8005_v25, %v5701_v0 }
 0xa5e   : > { %5913 = vst [vmem:[%s10344_s8 + $0x90] sm:$0xff] %v5881_v14  ;;  %5914 = vst [vmem:[%s10344_s8 + $0x98] sm:$0xff] %v5882_v7 }
 0xa5f   : > { %v8007_v8 = vpop.eup %8006  ;;  %8014 = vrcp.f32 %v5828_v60  ;;  %v5804_v18 = vsel %vm5803_vm12, %v5701_v0, %v5802_v51 }
 0xa60   : > { %v8009_v24 = vpop.eup %8008  ;;  %v5883_v34 = vmul.f32 %v8007_v8, %v10275_v54  ;;  %v5884_v11 = vmul.f32 %v8007_v8, %v10278_v56  ;;  %v5807_v32 = vsel %vm5805_vm13, %v5806_v62, %v5804_v18 }
 0xa61   : > { %v5829_v47 = vadd.f32 1e-06, %v5807_v32  ;;  %v5809_v40 = vmul.f32 %v8009_v24, %v10386_v58 }
 0xa62   : > { %5915 = vst [vmem:[%s10344_s8 + $0xa0] sm:$0xff] %v5883_v34  ;;  %5916 = vst [vmem:[%s10344_s8 + $0xa8] sm:$0xff] %v5884_v11 }
 0xa63   : > { %v8011_v61 = vpop.eup %8010  ;;  %8016 = vrcp.f32 %v5829_v47  ;;  %v5811_v54 = vsel %vm5810_vm14, %v10386_v58, %v5809_v40 }
 0xa64   : > { %v5885_v56 = vmul.f32 %v8011_v61, %v10285_v49  ;;  %v5886_v2 = vmul.f32 %v8011_v61, %v10288_v29  ;;  %v5814_v21 = vsel %vm5812_vm15, %v5813_v38, %v5811_v54 }
 0xa65   : > { %v5830_v55 = vadd.f32 1e-06, %v5814_v21 }
 0xa66   : > { %5917 = vst [vmem:[%s10344_s8 + $0xb0] sm:$0xff] %v5885_v56  ;;  %5918 = vst [vmem:[%s10344_s8 + $0xb8] sm:$0xff] %v5886_v2 }
 0xa67   : > { %v8013_v59 = vpop.eup %8012  ;;  %8018 = vrcp.f32 %v5830_v55 }
 0xa68   : > { %v5887_v3 = vmul.f32 %v8013_v59, %v10295_v26  ;;  %v5888_v23 = vmul.f32 %v8013_v59, %v10298_v17 }
 0xa6a   : > { %5919 = vst [vmem:[%s10344_s8 + $0xc0] sm:$0xff] %v5887_v3  ;;  %5920 = vst [vmem:[%s10344_s8 + $0xc8] sm:$0xff] %v5888_v23 }
 0xa6c   : > { %v8015_v49 = vpop.eup %8014 }
 0xa6d   : > { %v5889_v1 = vmul.f32 %v8015_v49, %v10305_v19  ;;  %v5890_v29 = vmul.f32 %v8015_v49, %v10308_v30 }
 0xa6f   : > { %5921 = vst [vmem:[%s10344_s8 + $0xd0] sm:$0xff] %v5889_v1  ;;  %5922 = vst [vmem:[%s10344_s8 + $0xd8] sm:$0xff] %v5890_v29 }
 0xa70   : > { %v8017_v41 = vpop.eup %8016 }
 0xa71   : > { %v5891_v0 = vmul.f32 %v8017_v41, %v10315_v5  ;;  %v5892_v26 = vmul.f32 %v8017_v41, %v10318_v16 }
 0xa73   : > { %5923 = vst [vmem:[%s10344_s8 + $0xe0] sm:$0xff] %v5891_v0  ;;  %5924 = vst [vmem:[%s10344_s8 + $0xe8] sm:$0xff] %v5892_v26 }
 0xa74   : > { %v8019_v17 = vpop.eup %8018 }
 0xa75   : > { %v5893_v19 = vmul.f32 %v8019_v17, %v10325_v12  ;;  %v5894_v30 = vmul.f32 %v8019_v17, %v10328_v52 }
 0xa77   : > { %5925 = vst [vmem:[%s10344_s8 + $0xf0] sm:$0xff] %v5893_v19  ;;  %5926 = vst [vmem:[%s10344_s8 + $0xf8] sm:$0xff] %v5894_v30 }
 0xa78   : > { %8251 = shalt.err (!%p8248_p11)
}
 0xa79   : > { %s8252_s21 = scalar_lea.hbm %s10427_s3, 4096  ;;  %s8256_s17 = scalar_lea.hbm %s10486_s10, 8192 }
 0xa7a   : > { %p8253_p3 = scmp.ne.s32.totalorder %s10427_s3, %s8252_s21  ;;  %p8257_p0 = scmp.lt.s32.totalorder %s10427_s3, %s10486_s10 }
 0xa7b   : > { %p8258_p4 = scmp.lt.s32.totalorder %s8256_s17, %s8252_s21 }
 0xa7c   : > { %p8254_p9 = pnand %p8253_p3, %p10630_p7 }
 0xa7d   : > { %p8259_p2 = por %p8258_p4, %p8257_p0 }
 0xa7e   : > { %p8255_p8 = pneg %p8254_p9 }
 0xa80   : > { %p8260_p5 = pnand %p8259_p2, %p8255_p8 }
 0xa82   : > { %8263 = shalt.err (!%p8260_p5)
}
 0xa83   : > { %s8335_s11 = smov 256   ;;  %s8336_s0 = smov 16  }
 0xa84   : > { %7221 = dma.vmem_to_hbm [thread:$0]  (%p10630_p7), %s10429_s23, 4096, %s10427_s3, %s5928_s19, %s8335_s11, %s8335_s11, %s8336_s0  }
 0xa85 PF: > { %s5956_s8 = sand.u32 1, %s8306_s13   ;;  %p10631_p10 = scmp.ne.s32.totalorder %s10548_s29, 0 }
 0xa86   : > { %p10632_p13 = scmp.ge.s32.totalorder %s8318_s16, 2  ;;  %s5957_s25 = scalar_lea.sflag [#allocation8], %s5956_s8 }
 0xa88   : > { %p7247_p1 = pnand %p10632_p13, %p10631_p10 }
 0xa8a   : > { %p7248_p6 = pneg %p7247_p1 }
 0xa8c   : > { %8301 = dma.done.wait (%p7248_p6), %s5957_s25, 4096  }
 0xa8d   : > { %8303 = vsyncadd (%p7248_p6), %s5957_s25, 4294963200  ;;  %s10633_s15 = sld [smem:[#allocation25_spill]]  ;;  %p28_p12 = scmp.ge.s32.totalorder %s8490_s26, 4  }
 0xa8e   : > { %s10634_s12 = sld [smem:[#allocation26_spill]]  ;;  %s10635_s13 = smov %s8310_s14 }
 0xa8f   : > { %s10638_s16 = smov %s8490_s26 }
 0xa90   :  { %30 = sbr.rel (!%p28_p12) target bundleno = 16 (0x10), region = 141 }
 0xa93   : > { %s10636_s14 = smov %s10633_s15 }
 0xa94   : > { %s10637_s15 = smov %s10634_s12 }
 0xa95   :  { %5962 = vsyncpa [#allocation7], 1 }
 0xa96   :  { %5964 = vsyncpa [#allocation7 + $0x1], 1 }
 0xa97   :  { %5965 = vsyncpa [#allocation10], 1 }
 0xa98   :  { %5967 = vsyncpa [#allocation10 + $0x1], 1 }
 0xa99   :  { %5968 = vsyncpa [#allocation13], 1 }
 0xa9a   :  { %5969 = vsyncpa [#allocation16], 1 }
 0xa9b   :  { %5970 = vsyncpa [#allocation8], 1 }
 0xa9c   :  { %5972 = vsyncpa [#allocation8 + $0x1], 1 }

</bundles_post_ra>
